<compile_context>
chip_gen: v5e
topology: v5e:2x2
jax: 0.10.0
libtpu: 0.0.40
codegen_flags: <defaults>
</compile_context>

<pallas_src>
import functools

import jax
import jax.numpy as jnp
from jax import lax
from jax.experimental import pallas as pl
from jax.experimental.pallas import tpu as pltpu


LRELU_SLOPE = 0.1  # BaseConv(act='lrelu') -> nn.LeakyReLU(0.1)


def _lrelu(x):
    # LeakyReLU(0.1): max(x, 0.1*x) (pure VPU, no EUP traffic).
    return jnp.maximum(x, LRELU_SLOPE * x)


def _res_layer_kernel(x_ref, xt_ref, xb_ref, w1_ref, sb1_ref, w2_ref, sb2_ref,
                      o_ref, hp_ref, *, flat_out):
    # Per grid step:
    #   x_ref  : (NB, TH, W, Cin)  bf16  main rows of this tile
    #   xt_ref : (NB, 1,  W, Cin)  bf16  row above the tile (clamped at t == 0)
    #   xb_ref : (NB, 1,  W, Cin)  bf16  row below the tile (clamped at t == last)
    #   w1_ref : (Cin, Ch)         bf16  1x1 conv weights
    #   sb1_ref: (2, Ch)           f32   folded BN1 [scale; bias]
    #   w2_ref : (9*Ch, Cout)      bf16  3x3 conv weights, (ky, kx, cin) major->minor
    #   sb2_ref: (2, Cout)         f32   folded BN2 [scale; bias]
    #   o_ref  : (NB, TH, W*Cout) or (NB, TH, W, Cout)  f32
    #   hp_ref : (NB, TH+2, W+2, Ch) bf16 scratch: zero-padded hidden activation
    NB, TH, W, Cin = x_ref.shape
    Ch = w1_ref.shape[1]
    Cout = w2_ref.shape[1]
    t = pl.program_id(1)
    nt = pl.num_programs(1)

    # ---- conv1 (1x1) + BN1 + LeakyReLU over the TH + 2 halo rows -----------------
    x_main = x_ref[...]
    x_full = jnp.concatenate([xt_ref[...], x_main, xb_ref[...]], axis=1)
    m1 = NB * (TH + 2) * W
    h = jnp.dot(x_full.reshape(m1, Cin), w1_ref[...],
                preferred_element_type=jnp.float32)                      # f32 acc
    sb1 = sb1_ref[...]
    h = _lrelu(h * sb1[0:1, :] + sb1[1:2, :])
    h = h.reshape(NB, TH + 2, W, Ch).astype(jnp.bfloat16)

    # ---- build the zero-padded hidden tile in VMEM scratch (no concatenate pads) --
    zcol = jnp.zeros((NB, TH + 2, 1, Ch), jnp.bfloat16)
    hp_ref[:, :, 0:1, :] = zcol                 # left zero column
    hp_ref[:, :, W + 1:W + 2, :] = zcol         # right zero column
    hp_ref[:, :, 1:W + 1, :] = h                # interior (all TH + 2 rows)

    # conv2's zero padding applies to its *input* (the hidden activation), so halo
    # rows lying outside the image must be exactly zero.
    zrow = jnp.zeros((NB, 1, W + 2, Ch), jnp.bfloat16)

    @pl.when(t == 0)
    def _():
        hp_ref[:, 0:1, :, :] = zrow

    @pl.when(t == nt - 1)
    def _():
        hp_ref[:, TH + 1:TH + 2, :, :] = zrow

    # ---- conv2 (3x3, pad=1) as one im2col matmul ---------------------------------
    # (K = 9*Ch keeps the 256-wide MXUs on v6e/v7x busy; for Ch >= 256 the split
    #  9-tap accumulate form would be equally good.)
    m2 = NB * TH * W
    taps = [hp_ref[:, ky:ky + TH, kx:kx + W, :].reshape(m2, Ch)
            for ky in range(3) for kx in range(3)]
    patches = jnp.concatenate(taps, axis=-1)                             # (m2, 9*Ch)
    y = jnp.dot(patches, w2_ref[...], preferred_element_type=jnp.float32)
    sb2 = sb2_ref[...]
    y = _lrelu(y * sb2[0:1, :] + sb2[1:2, :])

    # ---- residual add (Cin == Cout for ResLayer), kept in f32 ---------------------
    y = y + x_main.reshape(m2, Cin).astype(jnp.float32)
    y = y.reshape(NB, TH, W, Cout)

    if flat_out:
        # Lane-dense store: build the (NB, TH, W*Cout) slab by concatenating the W
        # channel chunks along the lane axis (avoids a minor-dim reshape).
        o_ref[...] = jnp.concatenate([y[:, :, w, :] for w in range(W)], axis=-1)
    else:
        o_ref[...] = y


def res_layer_forward_nhwc(x_nhwc, params, *, row_tile=8, batch_tile=1):
    """NHWC-native entry point: (N, H, W, C) f32 -> (N, H, W, C) f32."""
    w1, sb1, w2, sb2 = params
    N, H, W, Cin = x_nhwc.shape
    Ch = w1.shape[1]
    Cout = w2.shape[1]
    assert Cin == Cout, "ResLayer requires in_channels == out_channels"

    TH = min(row_tile, H)
    assert H % TH == 0 and (TH % 8 == 0 or TH == H), "row tile must keep blocks 8-aligned"
    NB = min(batch_tile, N)
    assert N % NB == 0

    # bf16 inputs/weights halve HBM+VMEM traffic and run natively on the MXU;
    # accumulation / BN / activation / residual stay f32 inside the kernel.
    x = x_nhwc.astype(jnp.bfloat16)

    # Lane-dense output slab when Cout alone under-fills the 128-lane vregs.
    flat_out = (Cout % 128 != 0) and ((W * Cout) % 128 == 0)
    if flat_out:
        out_shape = jax.ShapeDtypeStruct((N, H, W * Cout), jnp.float32)
        out_spec = pl.BlockSpec((NB, TH, W * Cout), lambda n, t: (n, t, 0))
    else:
        out_shape = jax.ShapeDtypeStruct((N, H, W, Cout), jnp.float32)
        out_spec = pl.BlockSpec((NB, TH, W, Cout), lambda n, t: (n, t, 0, 0))

    last_row = H - 1
    kernel = functools.partial(_res_layer_kernel, flat_out=flat_out)

    out = pl.pallas_call(
        kernel,
        out_shape=out_shape,
        grid_spec=pltpu.PrefetchScalarGridSpec(
            num_scalar_prefetch=0,
            grid=(N // NB, H // TH),
            in_specs=[
                # main rows of this tile
                pl.BlockSpec((NB, TH, W, Cin), lambda n, t: (n, t, 0, 0)),
                # halo row above (H-block size 1 => block index == row index),
                # clamped at the top edge; the kernel zeroes its hidden row there.
                pl.BlockSpec((NB, 1, W, Cin),
                             lambda n, t: (n, jnp.maximum(t * TH - 1, 0), 0, 0)),
                # halo row below, clamped at the bottom edge.
                pl.BlockSpec((NB, 1, W, Cin),
                             lambda n, t: (n, jnp.minimum(t * TH + TH, last_row), 0, 0)),
                pl.BlockSpec((Cin, Ch), lambda n, t: (0, 0)),
                pl.BlockSpec((2, Ch), lambda n, t: (0, 0)),
                pl.BlockSpec((9 * Ch, Cout), lambda n, t: (0, 0, )[:2]),
                pl.BlockSpec((2, Cout), lambda n, t: (0, 0)),
            ],
            out_specs=out_spec,
            scratch_shapes=[pltpu.VMEM((NB, TH + 2, W + 2, Ch), jnp.bfloat16)],
        ),
        compiler_params=pltpu.CompilerParams(
            # Every output tile is written exactly once -> both axes parallel;
            # on v7x the two TensorCores split the (N, H) tile grid.
            dimension_semantics=("parallel", "parallel"),
            # Explicit scoped-VMEM budget: above the 16 MiB (v5e) / 32 MiB (v6e, v7x)
            # defaults, safely below v7x's 64 MiB physical VMEM.
            vmem_limit_bytes=48 * 1024 * 1024,
        ),
    )(x, x, x, w1, sb1, w2, sb2)

    if flat_out:
        out = out.reshape(N, H, W, Cout)
    return out


def res_layer_forward_nchw(x_nchw, params, **kwargs):
    """PyTorch-parity wrapper: (N, C, H, W) f32 -> (N, C, H, W) f32."""
    # TODO(synk): if the surrounding graph can stay NHWC, call
    # res_layer_forward_nhwc directly and drop these two full-HBM-round-trip
    # transposes.
    x = jnp.transpose(x_nchw, (0, 2, 3, 1))
    y = res_layer_forward_nhwc(x, params, **kwargs)
    return jnp.transpose(y, (0, 3, 1, 2))


def init_params(key, in_channels, eps=1e-5):
    """Deterministic synthetic parameters (conv weights + folded eval-mode BN)."""
    mid = in_channels // 2
    ks = jax.random.split(key, 10)
    # Conv weights in PyTorch OIHW layout.
    w1_oihw = jax.random.normal(ks[0], (mid, in_channels, 1, 1), jnp.float32) * 0.1
    w2_oihw = jax.random.normal(ks[1], (in_channels, mid, 3, 3), jnp.float32) * 0.1
    # BatchNorm (eval mode) parameters.
    g1 = jax.random.uniform(ks[2], (mid,), minval=0.5, maxval=1.5)
    b1 = jax.random.normal(ks[3], (mid,)) * 0.1
    m1 = jax.random.normal(ks[4], (mid,)) * 0.1
    v1 = jax.random.uniform(ks[5], (mid,), minval=0.5, maxval=1.5)
    g2 = jax.random.uniform(ks[6], (in_channels,), minval=0.5, maxval=1.5)
    b2 = jax.random.normal(ks[7], (in_channels,)) * 0.1
    m2 = jax.random.normal(ks[8], (in_channels,)) * 0.1
    v2 = jax.random.uniform(ks[9], (in_channels,), minval=0.5, maxval=1.5)
    scale1 = g1 / jnp.sqrt(v1 + eps)
    bias1 = b1 - m1 * scale1
    scale2 = g2 / jnp.sqrt(v2 + eps)
    bias2 = b2 - m2 * scale2
    # Kernel-layout params (weights bf16; BN scale/bias stay f32).
    w1 = w1_oihw[:, :, 0, 0].T.astype(jnp.bfloat16)                    # (Cin, Ch)
    w2 = (jnp.transpose(w2_oihw, (2, 3, 1, 0))                          # (ky, kx, Ch, Cout)
          .reshape(9 * mid, in_channels).astype(jnp.bfloat16))          # (9*Ch, Cout)
    sb1 = jnp.stack([scale1, bias1]).astype(jnp.float32)                # (2, Ch)
    sb2 = jnp.stack([scale2, bias2]).astype(jnp.float32)                # (2, Cout)
    kernel_params = (w1, sb1, w2, sb2)
    raw_params = (w1_oihw, w2_oihw, scale1, bias1, scale2, bias2)
    return kernel_params, raw_params


def ref_forward(x_nchw, raw_params):
    """Pure-JAX f32 reference mirroring the PyTorch ResLayer forward (eval-mode BN)."""
    w1_oihw, w2_oihw, scale1, bias1, scale2, bias2 = raw_params
    dn = ('NCHW', 'OIHW', 'NCHW')
    h = lax.conv_general_dilated(x_nchw, w1_oihw, (1, 1), 'VALID',
                                 dimension_numbers=dn)
    h = h * scale1[None, :, None, None] + bias1[None, :, None, None]
    h = jnp.where(h > 0, h, LRELU_SLOPE * h)
    y = lax.conv_general_dilated(h, w2_oihw, (1, 1), ((1, 1), (1, 1)),
                                 dimension_numbers=dn)
    y = y * scale2[None, :, None, None] + bias2[None, :, None, None]
    y = jnp.where(y > 0, y, LRELU_SLOPE * y)
    return x_nchw + y


if __name__ == "__main__":
    key = jax.random.PRNGKey(0)
    kx, kp = jax.random.split(key)

    N, C, H, W = 2, 16, 16, 16             # ResLayer: mid_channels = C // 2 = 8
    x = jax.random.normal(kx, (N, C, H, W), jnp.float32)
    kernel_params, raw_params = init_params(kp, C)

    y = res_layer_forward_nchw(x, kernel_params, row_tile=8, batch_tile=1)
    y = jax.block_until_ready(y)

    y_ref = ref_forward(x, raw_params)
    assert y.shape == (N, C, H, W)
    # Tolerance sized for bf16 activations/weights on the MXU path
    # (f32 accumulate / BN / activation / residual).
    max_err = float(jnp.max(jnp.abs(y - y_ref)))
    assert jnp.allclose(y, y_ref, atol=1e-1, rtol=2e-2), max_err

    print("KERNEL_OK")
</pallas_src>

<mosaic_0001>
module attributes {stable_mosaic.version = 11 : i64} {
  func.func @_res_layer_kernel(%arg0: i32, %arg1: i32, %arg2: memref<1x8x16x16xbf16, #tpu.memory_space<vmem>>, %arg3: memref<1x1x16x16xbf16, #tpu.memory_space<vmem>>, %arg4: memref<1x1x16x16xbf16, #tpu.memory_space<vmem>>, %arg5: memref<16x8xbf16, #tpu.memory_space<vmem>>, %arg6: memref<2x8xf32, #tpu.memory_space<vmem>>, %arg7: memref<72x16xbf16, #tpu.memory_space<vmem>>, %arg8: memref<2x16xf32, #tpu.memory_space<vmem>>, %arg9: memref<1x8x256xf32, #tpu.memory_space<vmem>>, %arg10: memref<1x10x18x8xbf16, #tpu.memory_space<vmem>>) attributes {dimension_semantics = [#tpu.dimension_semantics<parallel>, #tpu.dimension_semantics<parallel>], iteration_bounds = array<i64: 2, 2>, scalar_prefetch = 0 : i64, scratch_operands = 1 : i64, tpu.core_type = #tpu.core_type<tc>, window_params = [{transform_indices = @transform_0, window_bounds = array<i64: 1, 8, 16, 16>}, {transform_indices = @transform_1, window_bounds = array<i64: 1, 1, 16, 16>}, {transform_indices = @transform_2, window_bounds = array<i64: 1, 1, 16, 16>}, {pipeline_mode = #tpu.pipeline_mode<synchronous>, transform_indices = @transform_3, window_bounds = array<i64: 16, 8>}, {pipeline_mode = #tpu.pipeline_mode<synchronous>, transform_indices = @transform_4, window_bounds = array<i64: 2, 8>}, {pipeline_mode = #tpu.pipeline_mode<synchronous>, transform_indices = @transform_5, window_bounds = array<i64: 72, 16>}, {pipeline_mode = #tpu.pipeline_mode<synchronous>, transform_indices = @transform_6, window_bounds = array<i64: 2, 16>}, {transform_indices = @transform_7, window_bounds = array<i64: 1, 8, 256>}]} {
    %c0 = arith.constant 0 : index
    %c0_0 = arith.constant 0 : index
    %c0_1 = arith.constant 0 : index
    %c0_2 = arith.constant 0 : index
    %0 = vector.load %arg2[%c0, %c0_0, %c0_1, %c0_2] : memref<1x8x16x16xbf16, #tpu.memory_space<vmem>>, vector<1x8x16x16xbf16>
    %c0_3 = arith.constant 0 : index
    %c0_4 = arith.constant 0 : index
    %c0_5 = arith.constant 0 : index
    %c0_6 = arith.constant 0 : index
    %1 = vector.load %arg3[%c0_3, %c0_4, %c0_5, %c0_6] : memref<1x1x16x16xbf16, #tpu.memory_space<vmem>>, vector<1x1x16x16xbf16>
    %c0_7 = arith.constant 0 : index
    %c0_8 = arith.constant 0 : index
    %c0_9 = arith.constant 0 : index
    %c0_10 = arith.constant 0 : index
    %2 = vector.load %arg4[%c0_7, %c0_8, %c0_9, %c0_10] : memref<1x1x16x16xbf16, #tpu.memory_space<vmem>>, vector<1x1x16x16xbf16>
    %3 = tpu.concatenate %1, %0, %2 in 1 : vector<1x1x16x16xbf16>, vector<1x8x16x16xbf16>, vector<1x1x16x16xbf16> -> vector<1x10x16x16xbf16>
    %4 = vector.shape_cast %3 : vector<1x10x16x16xbf16> to vector<160x16xbf16>
    %c0_11 = arith.constant 0 : index
    %c0_12 = arith.constant 0 : index
    %5 = vector.load %arg5[%c0_11, %c0_12] : memref<16x8xbf16, #tpu.memory_space<vmem>>, vector<16x8xbf16>
    %cst = arith.constant dense<0.000000e+00> : vector<160x8xf32>
    %6 = tpu.matmul %4, %5, %cst {dimension_numbers = #tpu.dot_dimension_numbers<[1], [0], [0], [1], [0, 0, 1, 1], [], []>} : vector<160x16xbf16>, vector<16x8xbf16>, vector<160x8xf32> -> vector<160x8xf32>
    %c0_13 = arith.constant 0 : index
    %c0_14 = arith.constant 0 : index
    %7 = vector.load %arg6[%c0_13, %c0_14] : memref<2x8xf32, #tpu.memory_space<vmem>>, vector<2x8xf32>
    %8 = vector.extract_strided_slice %7 {offsets = [0, 0], sizes = [1, 8], strides = [1, 1]} : vector<2x8xf32> to vector<1x8xf32>
    %9 = vector.broadcast %8 : vector<1x8xf32> to vector<160x8xf32>
    %10 = arith.mulf %6, %9 : vector<160x8xf32>
    %11 = vector.extract_strided_slice %7 {offsets = [1, 0], sizes = [1, 8], strides = [1, 1]} : vector<2x8xf32> to vector<1x8xf32>
    %12 = vector.broadcast %11 : vector<1x8xf32> to vector<160x8xf32>
    %13 = arith.addf %10, %12 : vector<160x8xf32>
    %cst_15 = arith.constant 1.000000e-01 : f32
    %14 = vector.broadcast %cst_15 : f32 to vector<160x8xf32>
    %15 = arith.mulf %14, %13 : vector<160x8xf32>
    %16 = arith.maximumf %13, %15 : vector<160x8xf32>
    %17 = vector.shape_cast %16 : vector<160x8xf32> to vector<1x10x16x8xf32>
    %18 = arith.truncf %17 : vector<1x10x16x8xf32> to vector<1x10x16x8xbf16>
    %cst_16 = arith.constant 0.000000e+00 : bf16
    %19 = vector.broadcast %cst_16 : bf16 to vector<1x10x1x8xbf16>
    %c0_17 = arith.constant 0 : index
    %c0_18 = arith.constant 0 : index
    %c0_19 = arith.constant 0 : index
    %c0_20 = arith.constant 0 : index
    %20 = vector.load %arg10[%c0_17, %c0_18, %c0_19, %c0_20] : memref<1x10x18x8xbf16, #tpu.memory_space<vmem>>, vector<1x10x1x8xbf16>
    tpu.vector_store %arg10[%c0_17, %c0_18, %c0_19, %c0_20], %19 {strides = array<i32>} : memref<1x10x18x8xbf16, #tpu.memory_space<vmem>>, vector<1x10x1x8xbf16>,
    %c0_21 = arith.constant 0 : index
    %c0_22 = arith.constant 0 : index
    %c17 = arith.constant 17 : index
    %c0_23 = arith.constant 0 : index
    %21 = vector.load %arg10[%c0_21, %c0_22, %c17, %c0_23] : memref<1x10x18x8xbf16, #tpu.memory_space<vmem>>, vector<1x10x1x8xbf16>
    tpu.vector_store %arg10[%c0_21, %c0_22, %c17, %c0_23], %19 {strides = array<i32>} : memref<1x10x18x8xbf16, #tpu.memory_space<vmem>>, vector<1x10x1x8xbf16>,
    %c0_24 = arith.constant 0 : index
    %c0_25 = arith.constant 0 : index
    %c1 = arith.constant 1 : index
    %c0_26 = arith.constant 0 : index
    %22 = vector.load %arg10[%c0_24, %c0_25, %c1, %c0_26] : memref<1x10x18x8xbf16, #tpu.memory_space<vmem>>, vector<1x10x16x8xbf16>
    tpu.vector_store %arg10[%c0_24, %c0_25, %c1, %c0_26], %18 {strides = array<i32>} : memref<1x10x18x8xbf16, #tpu.memory_space<vmem>>, vector<1x10x16x8xbf16>,
    %cst_27 = arith.constant 0.000000e+00 : bf16
    %23 = vector.broadcast %cst_27 : bf16 to vector<1x1x18x8xbf16>
    %c0_i32 = arith.constant 0 : i32
    %24 = arith.cmpi eq, %arg1, %c0_i32 : i32
    %25 = arith.extui %24 : i1 to i32
    %c0_i32_28 = arith.constant 0 : i32
    %26 = arith.cmpi ne, %25, %c0_i32_28 : i32
    scf.if %26 {
      %c0_74 = arith.constant 0 : index
      %c0_75 = arith.constant 0 : index
      %c0_76 = arith.constant 0 : index
      %c0_77 = arith.constant 0 : index
      %99 = vector.load %arg10[%c0_74, %c0_75, %c0_76, %c0_77] : memref<1x10x18x8xbf16, #tpu.memory_space<vmem>>, vector<1x1x18x8xbf16>
      tpu.vector_store %arg10[%c0_74, %c0_75, %c0_76, %c0_77], %23 {strides = array<i32>} : memref<1x10x18x8xbf16, #tpu.memory_space<vmem>>, vector<1x1x18x8xbf16>,
    } else {
    }
    %c1_i32 = arith.constant 1 : i32
    %27 = arith.cmpi eq, %arg1, %c1_i32 : i32
    %28 = arith.extui %27 : i1 to i32
    %c0_i32_29 = arith.constant 0 : i32
    %29 = arith.cmpi ne, %28, %c0_i32_29 : i32
    scf.if %29 {
      %c0_74 = arith.constant 0 : index
      %c9 = arith.constant 9 : index
      %c0_75 = arith.constant 0 : index
      %c0_76 = arith.constant 0 : index
      %99 = vector.load %arg10[%c0_74, %c9, %c0_75, %c0_76] : memref<1x10x18x8xbf16, #tpu.memory_space<vmem>>, vector<1x1x18x8xbf16>
      tpu.vector_store %arg10[%c0_74, %c9, %c0_75, %c0_76], %23 {strides = array<i32>} : memref<1x10x18x8xbf16, #tpu.memory_space<vmem>>, vector<1x1x18x8xbf16>,
    } else {
    }
    %c0_30 = arith.constant 0 : index
    %c0_31 = arith.constant 0 : index
    %c0_32 = arith.constant 0 : index
    %c0_33 = arith.constant 0 : index
    %30 = vector.load %arg10[%c0_30, %c0_31, %c0_32, %c0_33] : memref<1x10x18x8xbf16, #tpu.memory_space<vmem>>, vector<1x8x16x8xbf16>
    %31 = vector.shape_cast %30 : vector<1x8x16x8xbf16> to vector<128x8xbf16>
    %c0_34 = arith.constant 0 : index
    %c0_35 = arith.constant 0 : index
    %c1_36 = arith.constant 1 : index
    %c0_37 = arith.constant 0 : index
    %32 = vector.load %arg10[%c0_34, %c0_35, %c1_36, %c0_37] : memref<1x10x18x8xbf16, #tpu.memory_space<vmem>>, vector<1x8x16x8xbf16>
    %33 = vector.shape_cast %32 : vector<1x8x16x8xbf16> to vector<128x8xbf16>
    %c0_38 = arith.constant 0 : index
    %c0_39 = arith.constant 0 : index
    %c2 = arith.constant 2 : index
    %c0_40 = arith.constant 0 : index
    %34 = vector.load %arg10[%c0_38, %c0_39, %c2, %c0_40] : memref<1x10x18x8xbf16, #tpu.memory_space<vmem>>, vector<1x8x16x8xbf16>
    %35 = vector.shape_cast %34 : vector<1x8x16x8xbf16> to vector<128x8xbf16>
    %c0_41 = arith.constant 0 : index
    %c1_42 = arith.constant 1 : index
    %c0_43 = arith.constant 0 : index
    %c0_44 = arith.constant 0 : index
    %36 = vector.load %arg10[%c0_41, %c1_42, %c0_43, %c0_44] : memref<1x10x18x8xbf16, #tpu.memory_space<vmem>>, vector<1x8x16x8xbf16>
    %37 = vector.shape_cast %36 : vector<1x8x16x8xbf16> to vector<128x8xbf16>
    %c0_45 = arith.constant 0 : index
    %c1_46 = arith.constant 1 : index
    %c1_47 = arith.constant 1 : index
    %c0_48 = arith.constant 0 : index
    %38 = vector.load %arg10[%c0_45, %c1_46, %c1_47, %c0_48] : memref<1x10x18x8xbf16, #tpu.memory_space<vmem>>, vector<1x8x16x8xbf16>
    %39 = vector.shape_cast %38 : vector<1x8x16x8xbf16> to vector<128x8xbf16>
    %c0_49 = arith.constant 0 : index
    %c1_50 = arith.constant 1 : index
    %c2_51 = arith.constant 2 : index
    %c0_52 = arith.constant 0 : index
    %40 = vector.load %arg10[%c0_49, %c1_50, %c2_51, %c0_52] : memref<1x10x18x8xbf16, #tpu.memory_space<vmem>>, vector<1x8x16x8xbf16>
    %41 = vector.shape_cast %40 : vector<1x8x16x8xbf16> to vector<128x8xbf16>
    %c0_53 = arith.constant 0 : index
    %c2_54 = arith.constant 2 : index
    %c0_55 = arith.constant 0 : index
    %c0_56 = arith.constant 0 : index
    %42 = vector.load %arg10[%c0_53, %c2_54, %c0_55, %c0_56] : memref<1x10x18x8xbf16, #tpu.memory_space<vmem>>, vector<1x8x16x8xbf16>
    %43 = vector.shape_cast %42 : vector<1x8x16x8xbf16> to vector<128x8xbf16>
    %c0_57 = arith.constant 0 : index
    %c2_58 = arith.constant 2 : index
    %c1_59 = arith.constant 1 : index
    %c0_60 = arith.constant 0 : index
    %44 = vector.load %arg10[%c0_57, %c2_58, %c1_59, %c0_60] : memref<1x10x18x8xbf16, #tpu.memory_space<vmem>>, vector<1x8x16x8xbf16>
    %45 = vector.shape_cast %44 : vector<1x8x16x8xbf16> to vector<128x8xbf16>
    %c0_61 = arith.constant 0 : index
    %c2_62 = arith.constant 2 : index
    %c2_63 = arith.constant 2 : index
    %c0_64 = arith.constant 0 : index
    %46 = vector.load %arg10[%c0_61, %c2_62, %c2_63, %c0_64] : memref<1x10x18x8xbf16, #tpu.memory_space<vmem>>, vector<1x8x16x8xbf16>
    %47 = vector.shape_cast %46 : vector<1x8x16x8xbf16> to vector<128x8xbf16>
    %48 = tpu.concatenate %31, %33, %35, %37, %39, %41, %43, %45, %47 in 1 : vector<128x8xbf16>, vector<128x8xbf16>, vector<128x8xbf16>, vector<128x8xbf16>, vector<128x8xbf16>, vector<128x8xbf16>, vector<128x8xbf16>, vector<128x8xbf16>, vector<128x8xbf16> -> vector<128x72xbf16>
    %c0_65 = arith.constant 0 : index
    %c0_66 = arith.constant 0 : index
    %49 = vector.load %arg7[%c0_65, %c0_66] : memref<72x16xbf16, #tpu.memory_space<vmem>>, vector<72x16xbf16>
    %cst_67 = arith.constant dense<0.000000e+00> : vector<128x16xf32>
    %50 = tpu.matmul %48, %49, %cst_67 {dimension_numbers = #tpu.dot_dimension_numbers<[1], [0], [0], [1], [0, 0, 1, 1], [], []>} : vector<128x72xbf16>, vector<72x16xbf16>, vector<128x16xf32> -> vector<128x16xf32>
    %c0_68 = arith.constant 0 : index
    %c0_69 = arith.constant 0 : index
    %51 = vector.load %arg8[%c0_68, %c0_69] : memref<2x16xf32, #tpu.memory_space<vmem>>, vector<2x16xf32>
    %52 = vector.extract_strided_slice %51 {offsets = [0, 0], sizes = [1, 16], strides = [1, 1]} : vector<2x16xf32> to vector<1x16xf32>
    %53 = vector.broadcast %52 : vector<1x16xf32> to vector<128x16xf32>
    %54 = arith.mulf %50, %53 : vector<128x16xf32>
    %55 = vector.extract_strided_slice %51 {offsets = [1, 0], sizes = [1, 16], strides = [1, 1]} : vector<2x16xf32> to vector<1x16xf32>
    %56 = vector.broadcast %55 : vector<1x16xf32> to vector<128x16xf32>
    %57 = arith.addf %54, %56 : vector<128x16xf32>
    %cst_70 = arith.constant 1.000000e-01 : f32
    %58 = vector.broadcast %cst_70 : f32 to vector<128x16xf32>
    %59 = arith.mulf %58, %57 : vector<128x16xf32>
    %60 = arith.maximumf %57, %59 : vector<128x16xf32>
    %61 = vector.shape_cast %0 : vector<1x8x16x16xbf16> to vector<128x16xbf16>
    %62 = arith.extf %61 : vector<128x16xbf16> to vector<128x16xf32>
    %63 = arith.addf %60, %62 : vector<128x16xf32>
    %64 = vector.shape_cast %63 : vector<128x16xf32> to vector<1x8x16x16xf32>
    %65 = vector.extract_strided_slice %64 {offsets = [0, 0, 0, 0], sizes = [1, 8, 1, 16], strides = [1, 1, 1, 1]} : vector<1x8x16x16xf32> to vector<1x8x1x16xf32>
    %66 = vector.shape_cast %65 : vector<1x8x1x16xf32> to vector<1x8x16xf32>
    %67 = vector.extract_strided_slice %64 {offsets = [0, 0, 1, 0], sizes = [1, 8, 1, 16], strides = [1, 1, 1, 1]} : vector<1x8x16x16xf32> to vector<1x8x1x16xf32>
    %68 = vector.shape_cast %67 : vector<1x8x1x16xf32> to vector<1x8x16xf32>
    %69 = vector.extract_strided_slice %64 {offsets = [0, 0, 2, 0], sizes = [1, 8, 1, 16], strides = [1, 1, 1, 1]} : vector<1x8x16x16xf32> to vector<1x8x1x16xf32>
    %70 = vector.shape_cast %69 : vector<1x8x1x16xf32> to vector<1x8x16xf32>
    %71 = vector.extract_strided_slice %64 {offsets = [0, 0, 3, 0], sizes = [1, 8, 1, 16], strides = [1, 1, 1, 1]} : vector<1x8x16x16xf32> to vector<1x8x1x16xf32>
    %72 = vector.shape_cast %71 : vector<1x8x1x16xf32> to vector<1x8x16xf32>
    %73 = vector.extract_strided_slice %64 {offsets = [0, 0, 4, 0], sizes = [1, 8, 1, 16], strides = [1, 1, 1, 1]} : vector<1x8x16x16xf32> to vector<1x8x1x16xf32>
    %74 = vector.shape_cast %73 : vector<1x8x1x16xf32> to vector<1x8x16xf32>
    %75 = vector.extract_strided_slice %64 {offsets = [0, 0, 5, 0], sizes = [1, 8, 1, 16], strides = [1, 1, 1, 1]} : vector<1x8x16x16xf32> to vector<1x8x1x16xf32>
    %76 = vector.shape_cast %75 : vector<1x8x1x16xf32> to vector<1x8x16xf32>
    %77 = vector.extract_strided_slice %64 {offsets = [0, 0, 6, 0], sizes = [1, 8, 1, 16], strides = [1, 1, 1, 1]} : vector<1x8x16x16xf32> to vector<1x8x1x16xf32>
    %78 = vector.shape_cast %77 : vector<1x8x1x16xf32> to vector<1x8x16xf32>
    %79 = vector.extract_strided_slice %64 {offsets = [0, 0, 7, 0], sizes = [1, 8, 1, 16], strides = [1, 1, 1, 1]} : vector<1x8x16x16xf32> to vector<1x8x1x16xf32>
    %80 = vector.shape_cast %79 : vector<1x8x1x16xf32> to vector<1x8x16xf32>
    %81 = vector.extract_strided_slice %64 {offsets = [0, 0, 8, 0], sizes = [1, 8, 1, 16], strides = [1, 1, 1, 1]} : vector<1x8x16x16xf32> to vector<1x8x1x16xf32>
    %82 = vector.shape_cast %81 : vector<1x8x1x16xf32> to vector<1x8x16xf32>
    %83 = vector.extract_strided_slice %64 {offsets = [0, 0, 9, 0], sizes = [1, 8, 1, 16], strides = [1, 1, 1, 1]} : vector<1x8x16x16xf32> to vector<1x8x1x16xf32>
    %84 = vector.shape_cast %83 : vector<1x8x1x16xf32> to vector<1x8x16xf32>
    %85 = vector.extract_strided_slice %64 {offsets = [0, 0, 10, 0], sizes = [1, 8, 1, 16], strides = [1, 1, 1, 1]} : vector<1x8x16x16xf32> to vector<1x8x1x16xf32>
    %86 = vector.shape_cast %85 : vector<1x8x1x16xf32> to vector<1x8x16xf32>
    %87 = vector.extract_strided_slice %64 {offsets = [0, 0, 11, 0], sizes = [1, 8, 1, 16], strides = [1, 1, 1, 1]} : vector<1x8x16x16xf32> to vector<1x8x1x16xf32>
    %88 = vector.shape_cast %87 : vector<1x8x1x16xf32> to vector<1x8x16xf32>
    %89 = vector.extract_strided_slice %64 {offsets = [0, 0, 12, 0], sizes = [1, 8, 1, 16], strides = [1, 1, 1, 1]} : vector<1x8x16x16xf32> to vector<1x8x1x16xf32>
    %90 = vector.shape_cast %89 : vector<1x8x1x16xf32> to vector<1x8x16xf32>
    %91 = vector.extract_strided_slice %64 {offsets = [0, 0, 13, 0], sizes = [1, 8, 1, 16], strides = [1, 1, 1, 1]} : vector<1x8x16x16xf32> to vector<1x8x1x16xf32>
    %92 = vector.shape_cast %91 : vector<1x8x1x16xf32> to vector<1x8x16xf32>
    %93 = vector.extract_strided_slice %64 {offsets = [0, 0, 14, 0], sizes = [1, 8, 1, 16], strides = [1, 1, 1, 1]} : vector<1x8x16x16xf32> to vector<1x8x1x16xf32>
    %94 = vector.shape_cast %93 : vector<1x8x1x16xf32> to vector<1x8x16xf32>
    %95 = vector.extract_strided_slice %64 {offsets = [0, 0, 15, 0], sizes = [1, 8, 1, 16], strides = [1, 1, 1, 1]} : vector<1x8x16x16xf32> to vector<1x8x1x16xf32>
    %96 = vector.shape_cast %95 : vector<1x8x1x16xf32> to vector<1x8x16xf32>
    %97 = tpu.concatenate %66, %68, %70, %72, %74, %76, %78, %80, %82, %84, %86, %88, %90, %92, %94, %96 in 2 : vector<1x8x16xf32>, vector<1x8x16xf32>, vector<1x8x16xf32>, vector<1x8x16xf32>, vector<1x8x16xf32>, vector<1x8x16xf32>, vector<1x8x16xf32>, vector<1x8x16xf32>, vector<1x8x16xf32>, vector<1x8x16xf32>, vector<1x8x16xf32>, vector<1x8x16xf32>, vector<1x8x16xf32>, vector<1x8x16xf32>, vector<1x8x16xf32>, vector<1x8x16xf32> -> vector<1x8x256xf32>
    %c0_71 = arith.constant 0 : index
    %c0_72 = arith.constant 0 : index
    %c0_73 = arith.constant 0 : index
    %98 = vector.load %arg9[%c0_71, %c0_72, %c0_73] : memref<1x8x256xf32, #tpu.memory_space<vmem>>, vector<1x8x256xf32>
    tpu.vector_store %arg9[%c0_71, %c0_72, %c0_73], %97 {strides = array<i32>} : memref<1x8x256xf32, #tpu.memory_space<vmem>>, vector<1x8x256xf32>,
    return
  }
  func.func @transform_0(%arg0: i32, %arg1: i32) -> (i32, i32, i32, i32) {
    %c0_i32 = arith.constant 0 : i32
    %c0_i32_0 = arith.constant 0 : i32
    %c0_i32_1 = arith.constant 0 : i32
    return %arg0, %arg1, %c0_i32, %c0_i32_0 : i32, i32, i32, i32
  }
  func.func @transform_1(%arg0: i32, %arg1: i32) -> (i32, i32, i32, i32) {
    %c8_i32 = arith.constant 8 : i32
    %0 = arith.muli %arg1, %c8_i32 : i32
    %c1_i32 = arith.constant 1 : i32
    %1 = arith.subi %0, %c1_i32 : i32
    %c0_i32 = arith.constant 0 : i32
    %2 = arith.maxsi %1, %c0_i32 : i32
    %c0_i32_0 = arith.constant 0 : i32
    %c0_i32_1 = arith.constant 0 : i32
    %c0_i32_2 = arith.constant 0 : i32
    return %arg0, %2, %c0_i32_0, %c0_i32_1 : i32, i32, i32, i32
  }
  func.func @transform_2(%arg0: i32, %arg1: i32) -> (i32, i32, i32, i32) {
    %c8_i32 = arith.constant 8 : i32
    %0 = arith.muli %arg1, %c8_i32 : i32
    %c8_i32_0 = arith.constant 8 : i32
    %1 = arith.addi %0, %c8_i32_0 : i32
    %c15_i32 = arith.constant 15 : i32
    %2 = arith.minsi %1, %c15_i32 : i32
    %c0_i32 = arith.constant 0 : i32
    %c0_i32_1 = arith.constant 0 : i32
    %c0_i32_2 = arith.constant 0 : i32
    return %arg0, %2, %c0_i32, %c0_i32_1 : i32, i32, i32, i32
  }
  func.func @transform_3(%arg0: i32, %arg1: i32) -> (i32, i32) {
    %c0_i32 = arith.constant 0 : i32
    %c0_i32_0 = arith.constant 0 : i32
    %c0_i32_1 = arith.constant 0 : i32
    return %c0_i32, %c0_i32_0 : i32, i32
  }
  func.func @transform_4(%arg0: i32, %arg1: i32) -> (i32, i32) {
    %c0_i32 = arith.constant 0 : i32
    %c0_i32_0 = arith.constant 0 : i32
    %c0_i32_1 = arith.constant 0 : i32
    return %c0_i32, %c0_i32_0 : i32, i32
  }
  func.func @transform_5(%arg0: i32, %arg1: i32) -> (i32, i32) {
    %c0_i32 = arith.constant 0 : i32
    %c0_i32_0 = arith.constant 0 : i32
    %c0_i32_1 = arith.constant 0 : i32
    return %c0_i32, %c0_i32_0 : i32, i32
  }
  func.func @transform_6(%arg0: i32, %arg1: i32) -> (i32, i32) {
    %c0_i32 = arith.constant 0 : i32
    %c0_i32_0 = arith.constant 0 : i32
    %c0_i32_1 = arith.constant 0 : i32
    return %c0_i32, %c0_i32_0 : i32, i32
  }
  func.func @transform_7(%arg0: i32, %arg1: i32) -> (i32, i32, i32) {
    %c0_i32 = arith.constant 0 : i32
    %c0_i32_0 = arith.constant 0 : i32
    return %arg0, %arg1, %c0_i32 : i32, i32, i32
  }
}

</mosaic_0001>

<bundles_post_ra>
// kernel: tpu_custom_call.1
= control target key start
LH: loop header
LB: loop body
LE: loop exit
PB: predicated region body
PF: predicated region fallthrough
CT: control target
= control target key end

     0   :  { %s5524_s0 = inlined_call_operand.hbm [shape: bf16[2,16,16,16], index: 0, kind: input, shape index: {}]   ;;  %s5525_s1 = inlined_call_operand.hbm [shape: bf16[2,16,16,16], index: 1, kind: input, shape index: {}]   ;;  %s5526_s2 = inlined_call_operand.hbm [shape: bf16[2,16,16,16], index: 2, kind: input, shape index: {}]   ;;  %s5527_s3 = inlined_call_operand.vmem [shape: bf16[16,8], index: 3, kind: input, shape index: {}]   ;;  %s5528_s4 = inlined_call_operand.vmem [shape: f32[2,8], index: 4, kind: input, shape index: {}]   ;;  %s5529_s5 = inlined_call_operand.vmem [shape: bf16[72,16], index: 5, kind: input, shape index: {}]   ;;  %s5530_s6 = inlined_call_operand.vmem [shape: f32[2,16], index: 6, kind: input, shape index: {}]   ;;  %s5531_s7 = inlined_call_operand.hbm [shape: f32[2,16,256], index: 7, kind: output, shape index: {}]  }
   0x1   :  { %5549 = sst [smem:[#allocation27_spill]] %s5524_s0 }
   0x2   :  { %5550 = sst [smem:[#allocation28_spill]] %s5525_s1 }
   0x3   :  { %5551 = sst [smem:[#allocation29_spill]] %s5527_s3 }
   0x4   :  { %5552 = sst [smem:[#allocation30_spill]] %s5528_s4 }
   0x5   :  { %5553 = sst [smem:[#allocation31_spill]] %s5529_s5 }
   0x6   :  { %5554 = sst [smem:[#allocation32_spill]] %s5530_s6 }
   0x7   :  { %5555 = sst [smem:[#allocation33_spill]] %s5531_s7 }
   0x8   :  { %12 = vsyncpa [#allocation4], 0 }
   0x9   :  { %14 = vsyncpa [#allocation4 + $0x1], 0 }
   0xa   :  { %15 = vsyncpa [#allocation7], 0 }
   0xb   :  { %17 = vsyncpa [#allocation7 + $0x1], 0 }
   0xc   :  { %18 = vsyncpa [#allocation5], 0 }
   0xd   :  { %20 = vsyncpa [#allocation5 + $0x1], 0  ;;  %s3905_s24 = smov 0   ;;  %s3907_s25 = smov 0  }
   0xe   :  { %s3909_s26 = smov 0   ;;  %s3911_s27 = smov 0  }
   0xf   :  { %s3913_s28 = smov 0   ;;  %s3915_s29 = smov 0  }
  0x10   :  { %s3917_s30 = smov 0   ;;  %s3919_s8 = smov 0  }
  0x11   :  { %s3921_s9 = smov 0   ;;  %s3923_s10 = smov 0  }
  0x12   :  { %s3925_s11 = smov 0   ;;  %s3927_s12 = smov 0  }
  0x13   :  { %s3929_s13 = smov 0   ;;  %s3931_s14 = smov 0  }
  0x14 LB: > { %5556 = sst [smem:[#allocation14_spill]] %s3816_s29  ;;  %s3976_s15 = sadd.s32 4294967295, %s3848_s14   ;;  %s3848_s14 = sphi %s3931_s14, %s26_s14   ;;  %s3844_s13 = sphi %s3929_s13, %s5635_s13   ;;  %s3840_s12 = sphi %s3927_s12, %s5634_s12   ;;  %s3836_s11 = sphi %s3925_s11, %s5633_s11   ;;  %s3832_s10 = sphi %s3923_s10, %s5632_s10   ;;  %s3828_s9 = sphi %s3921_s9, %s5631_s9   ;;  %s3824_s8 = sphi %s3919_s8, %s5642_s8   ;;  %s3820_s30 = sphi %s3917_s30, %s5641_s30   ;;  %s3816_s29 = sphi %s3915_s29, %s5629_s29   ;;  %s3812_s28 = sphi %s3913_s28, %s5640_s28   ;;  %s3808_s27 = sphi %s3911_s27, %s5639_s27   ;;  %s3804_s26 = sphi %s3909_s26, %s5638_s26   ;;  %s3800_s25 = sphi %s3907_s25, %s5637_s25   ;;  %s3796_s24 = sphi %s3905_s24, %s5636_s24  }
  0x15   : > { %5557 = sst [smem:[#allocation15_spill]] %s3820_s30  ;;  %s35_s16 = sadd.s32 1, %s3840_s12 }
  0x16   : > { %5558 = sst [smem:[#allocation16_spill]] %s3828_s9  ;;  %p36_p0 = scmp.ge.s32.totalorder %s35_s16, 2 }
  0x17   : > { %5559 = sst [smem:[#allocation17_spill]] %s3832_s10  ;;  %s38_s17 = sadd.s32 1, %s3844_s13 }
  0x18   : > { %5560 = sst [smem:[#allocation18_spill]] %s3836_s11  ;;  %p55_p1 = scmp.eq.s32.totalorder %s3848_s14, 0 }
  0x19   : > { %5561 = sst [smem:[#allocation19_spill]] %s3840_s12  ;;  %p61_p2 = scmp.eq.s32.totalorder %s3976_s15, 0 }
  0x1a   : > { %5562 = sst [smem:[#allocation20_spill]] %s3844_s13  ;;  %s5644_s16 = smov (%p36_p0, %s35_s16), 0 }
  0x1b   : > { %5563 = sst [smem:[#allocation21_spill]] %s5644_s16  ;;  %s5646_s17 = smov (!%p36_p0, %s38_s17), %s3844_s13 }
  0x1c   : > { %s43_s18 = ssub.s32 %s3840_s12, %s5644_s16  ;;  %s3172_s19 = sshll.u32 %s3840_s12, 3 }
  0x1d   : > { %p40_p3 = scmp.ge.s32.totalorder %s5646_s17, 2  ;;  %s3173_s20 = sadd.s32 4294967295, %s3172_s19 }
  0x1e   : > { %p72_p4 = scmp.gt.s32.totalorder %s3173_s20, 0  ;;  %s3174_s21 = sshll.u32 %s5644_s16, 3 }
  0x1f   : > { %s5648_s17 = smov (%p40_p3, %s5646_s17), 0  ;;  %s3175_s23 = sadd.s32 4294967295, %s3174_s21 }
  0x20   : > { %5564 = sst [smem:[#allocation22_spill]] %s5648_s17  ;;  %s5650_s20 = smov (!%p72_p4, %s3173_s20), 0 }
  0x21   : > { %s3993_s22 = ssub.s32 %s3844_s13, %s5648_s17  ;;  %p76_p5 = scmp.gt.s32.totalorder %s3175_s23, 0 }
  0x22   : > { %s3996_s7 = sor.u32 %s43_s18, %s3993_s22  ;;  %s83_s11 = sadd.s32 1, %s3816_s29 }
  0x23   : > { %p45_p6 = scmp.eq.s32.totalorder %s3996_s7, 0  ;;  %s5652_s23 = smov (!%p76_p5, %s3175_s23), 0 }
  0x24   : > { %p90_p7 = scmp.ne.s32.totalorder %s3816_s29, %s3812_s28  ;;  %p96_p8 = scmp.ne.s32.totalorder %s3812_s28, %s3808_s27 }
  0x25   : > { %s79_s16 = ssub.s32 %s5650_s20, %s5652_s23  ;;  %s4004_s17 = sadd.s32 8, %s3172_s19 }
  0x26   : > { %s80_s6 = sor.u32 %s79_s16, %s3993_s22  ;;  %p4009_p9 = por %p90_p7, %p55_p1 }
  0x27   : > { %p81_p10 = scmp.eq.s32.totalorder %s80_s6, 0  ;;  %p4015_p11 = por %p96_p8, %p61_p2 }
  0x28   : > { %s4020_s27 = sadd.s32 8, %s3174_s21  ;;  %p5547_p0 = scmp.lt.s32.totalorder %s3848_s14, 4 }
  0x29   : > { %s5566_s5 = scalar_select %p4015_p11, 1, 0 }
  0x2a   : > { %s4023_s19 = scalar_select %p81_p10, %s3816_s29, %s83_s11  }
  0x2b   : > { %5567 = sst [smem:[#allocation23_spill]] %s5566_s5  ;;  %s4028_s16 = sshll.u32 %s3844_s13, 5 }
  0x2c   : > { %5568 = sst [smem:[#allocation24_spill]] %s4023_s19  ;;  %s305_s6 = sand.u32 1, %s3848_s14  }
  0x2d   : > { %s307_s23 = sand.u32 1, %s3816_s29   ;;  %s3188_s4 = sshll.u32 %s5650_s20, 1 }
  0x2e   : > { %s3185_s10 = sshll.u32 %s307_s23, 3  ;;  %s318_s3 = sadd.s32 %s3188_s4, %s4028_s16 }
  0x2f   : > { %s309_s5 = scalar_lea.vmem [#allocation6], %s3185_s10  ;;  %s3190_s11 = sshll.u32 %s318_s3, 2 }
  0x30   : > { %s323_s21 = sshll.u32 %s309_s5, 4  ;;  %s5569_s1 = sld [smem:[#allocation28_spill]]  ;;  %s324_s21 = int_to_ptr.vmem [resolvable:$true] %s323_s21 }
  0x31   : > { %p3465_p3 = pnand %p5547_p0, %p4009_p9  ;;  %p3196_p4 = scmp.ge.s32.totalorder %s3848_s14, 1 }
  0x32   : > { %s4041_s5 = scalar_lea.sflag [#allocation7], %s305_s6  ;;  %s5540_s3 = smov 64  }
  0x33   : > { %s5542_s10 = smov 4   ;;  %p359_p5 = scmp.lt.s32.totalorder %s3848_s14, 5 }
  0x34   : > { %s47_s20 = sadd.s32 1, %s3828_s9  ;;  %p54_p8 = scmp.ne.s32.totalorder %s3828_s9, %s3824_s8 }
  0x35   : > { %p4048_p7 = pnand %p3196_p4, %p359_p5  ;;  %p60_p9 = scmp.ne.s32.totalorder %s3824_s8, %s3820_s30 }
  0x36   : > { %s320_s29 = scalar_lea.hbm %s5569_s1, %s3190_s11  ;;  %p242_p10 = scmp.eq.s32.totalorder %s3976_s15, 3 }
  0x37   : > { %s321_s4 = sshll.u32 %s320_s29, 4  ;;  %s3171_s29 = sadd.s32 4294967294, %s3848_s14   ;;  %s322_s4 = int_to_ptr.hbm [resolvable:$true] %s321_s4 }
  0x38   : > { %3467 = dma.hbm_to_vmem [thread:$0]  (!%p3465_p3), %s322_s4, 128, %s324_s21, %s4041_s5, %s5540_s3, %s5540_s3, %s5542_s10  }
  0x39   : > { %s4057_s18 = scalar_select %p45_p6, %s3828_s9, %s47_s20  }
  0x3a   : > { %p248_p13 = scmp.eq.s32.totalorder %s3171_s29, 3  ;;  %p4066_p12 = por %p55_p1, %p54_p8 }
  0x3b   : > { %5571 = sst [smem:[#allocation25_spill]] %s4057_s18  ;;  %p4072_p3 = por %p61_p2, %p60_p9 }
  0x3c   : > { %p4076_p4 = por %p242_p10, %p54_p8  ;;  %p4080_p6 = por %p248_p13, %p60_p9 }
  0x3d   : > { %s280_s21 = sand.u32 1, %s3828_s9   ;;  %s3407_s11 = sshll.u32 %s3840_s12, 4 }
  0x3e   : > { %s5575_s23 = scalar_select %p4080_p6, 1, 0 }
  0x3f   : > { %s3180_s4 = sshll.u32 %s280_s21, 6  ;;  %s290_s29 = sadd.s32 %s3407_s11, %s4028_s16 }
  0x40   : > { %5576 = sst [smem:[#allocation26_spill]] %s5575_s23  ;;  %s3184_s20 = sshll.u32 %s290_s29, 2 }
  0x41   : > { %s284_s3 = scalar_lea.vmem [#allocation3], %s3180_s4  ;;  %s5577_s0 = sld [smem:[#allocation27_spill]] }
  0x42   : > { %s295_s10 = sshll.u32 %s284_s3, 4  ;;  %p3462_p13 = pnand %p5547_p0, %p4066_p12  ;;  %s296_s10 = int_to_ptr.vmem [resolvable:$true] %s295_s10 }
  0x43   : > { %s281_s11 = scalar_lea.sflag [#allocation4], %s280_s21  ;;  %s5578_s12 = smov 4  }
  0x44   : > { %s5579_s29 = smov 64   ;;  %p5580_p5 = scmp.lt.s32.totalorder %s4004_s17, 15 }
  0x45   : > { %p5581_p8 = scmp.lt.s32.totalorder %s4020_s27, 15  ;;  %s119_s1 = sadd.s32 1, %s3804_s26 }
  0x46   : > { %s5654_s17 = smov (!%p5580_p5, %s4004_s17), 15  ;;  %p126_p9 = scmp.ne.s32.totalorder %s3804_s26, %s3800_s25 }
  0x47   : > { %s292_s23 = scalar_lea.hbm %s5577_s0, %s3184_s20  ;;  %s5656_s27 = smov (!%p5581_p8, %s4020_s27), 15 }
  0x48   : > { %s293_s9 = sshll.u32 %s292_s23, 4  ;;  %s115_s3 = ssub.s32 %s5654_s17, %s5656_s27  ;;  %s294_s9 = int_to_ptr.hbm [resolvable:$true] %s293_s9 }
  0x49   : > { %3464 = dma.hbm_to_vmem [thread:$0]  (!%p3462_p13), %s294_s9, 1024, %s296_s10, %s281_s11, %s5579_s29, %s5579_s29, %s5578_s12  }
  0x4a   : > { %p132_p10 = scmp.ne.s32.totalorder %s3800_s25, %s3796_s24  ;;  %s116_s18 = sor.u32 %s115_s3, %s3993_s22 }
  0x4b   : > { %p4111_p12 = por %p126_p9, %p55_p1  ;;  %p117_p0 = scmp.eq.s32.totalorder %s116_s18, 0 }
  0x4c   : > { %p4117_p13 = por %p132_p10, %p61_p2  ;;  %s335_s10 = sand.u32 1, %s3804_s26  }
  0x4d   : > { %s3193_s23 = sshll.u32 %s5654_s17, 1  ;;  %s3191_s24 = sshll.u32 %s335_s10, 3 }
  0x4e   : > { %s4123_s21 = scalar_select %p117_p0, %s3804_s26, %s119_s1  }
  0x4f   : > { %s346_s22 = sadd.s32 %s3193_s23, %s4028_s16  ;;  %s337_s3 = scalar_lea.vmem [#allocation8], %s3191_s24 }
  0x50   : > { %s3195_s27 = sshll.u32 %s346_s22, 2  ;;  %s351_s0 = sshll.u32 %s337_s3, 4  ;;  %s352_s0 = int_to_ptr.vmem [resolvable:$true] %s351_s0 }
  0x51   : > { %s348_s11 = scalar_lea.hbm %s5526_s2, %s3195_s27  ;;  %p5584_p1 = scmp.lt.s32.totalorder %s3848_s14, 4 }
  0x52   : > { %s349_s30 = sshll.u32 %s348_s11, 4  ;;  %363 = sbr.rel (%p4048_p7) target bundleno = 945 (0x3b1), region = 48  ;;  %s350_s30 = int_to_ptr.hbm [resolvable:$true] %s349_s30 }
  0x53   : > { %p3468_p2 = pnand %p5584_p1, %p4111_p12  ;;  %s4140_s17 = sand.u32 (!%p4048_p7), 1, %s3824_s8  }
  0x54   : > { %s3197_s16 = sshll.u32 (!%p4048_p7), %s4140_s17, 6  ;;  %s366_s1 = scalar_lea.sflag (!%p4048_p7), [#allocation4], %s4140_s17 }
  0x55   : > { %3470 = dma.hbm_to_vmem [thread:$0]  (!%p3468_p2), %s350_s30, 128, %s352_s0, %s4041_s5, %s5579_s29, %s5579_s29, %s5578_s12  }
  0x56   : > { %s4144_s18 = scalar_lea.vmem (!%p4048_p7), [#allocation3], %s3197_s16 }
  0x57   : > { %3779 = dma.done.wait (%p4072_p3), %s366_s1, 1024  }
  0x58   : > { %3781 = vsyncadd (%p4072_p3), %s366_s1, 4294966272  ;;  %s375_s30 = sand.u32 1, %s3976_s15   ;;  %s377_s12 = sand.u32 1, %s3812_s28  }
  0x59   : > { %s3198_s5 = sshll.u32 %s377_s12, 3  ;;  %s376_s13 = scalar_lea.sflag [#allocation7], %s375_s30 }
  0x5a   : > { %s379_s29 = scalar_lea.vmem [#allocation6], %s3198_s5 }
  0x5b   : > { %3783 = dma.done.wait (%p4015_p11), %s376_s13, 128  }
  0x5c   : > { %3785 = vsyncadd (%p4015_p11), %s376_s13, 4294967168  ;;  %s387_s19 = sand.u32 1, %s3800_s25  }
  0x5d   : > { %s4157_s10 = sshll.u32 %s387_s19, 3 }
  0x5e   : > { %s389_s6 = scalar_lea.vmem [#allocation8], %s4157_s10 }
  0x5f   : > { %3787 = dma.done.wait (%p4117_p13), %s376_s13, 128  }
  0x60   : > { %3789 = vsyncadd (%p4117_p13), %s376_s13, 4294967168  ;;  %s3200_s15 = sshll.u32 %s4140_s17, 4  ;;  %v4166_v0 = vld [vmem:[%s4144_s18] sm:$0xff]   ;;  %v4169_v1 = vld [vmem:[%s4144_s18 + $0x8] sm:$0xff]   ;;  %s5586_s24 = sld [smem:[#allocation29_spill]]  ;;  %vm519_vm0 = vcmask 130048  }
  0x61   : > { %v4172_v2 = vld [vmem:[%s4144_s18 + $0x10] sm:$0xff]   ;;  %v4175_v3 = vld [vmem:[%s4144_s18 + $0x18] sm:$0xff]   ;;  %v4178_v4 = vld [vmem:[%s4144_s18 + $0x20] sm:$0xff]   ;;  %vm712_vm1 = vcmask 57344   ;;  %vm713_vm2 = vsmask.f32 256 }
  0x62   : > { %v4181_v5 = vld [vmem:[%s4144_s18 + $0x28] sm:$0xff]   ;;  %v4184_v6 = vld [vmem:[%s4144_s18 + $0x30] sm:$0xff]   ;;  %v4187_v7 = vld [vmem:[%s4144_s18 + $0x38] sm:$0xff]   ;;  %vm745_vm4 = vsmask.f32 7938  ;;  %s5591_s4 = sld [smem:[#allocation30_spill]] }
  0x63   : > { %v3416_v9 = vld [vmem:[%s379_s29] sm:$0xff]  ;;  %v3414_v14 = vld [vmem:[%s4144_s18 + $0x30] sm:$0xff]  ;;  %v3415_v16 = vld [vmem:[%s4144_s18 + $0x38] sm:$0xff]  ;;  %vm979_vm6 = vcmask 60416   ;;  %vm777_vm8 = vsmask.f32 4368 }
  0x64   : > { %v3412_v10 = vld [vmem:[%s4144_s18 + $0x20] sm:$0xff]  ;;  %v3413_v12 = vld [vmem:[%s4144_s18 + $0x28] sm:$0xff]  ;;  %v3410_v15 = vld [vmem:[%s4144_s18 + $0x10] sm:$0xff]  ;;  %s4395_s20 = scalar_lea.vmem [#allocation9], %s3200_s15  ;;  %s5596_s11 = sld [smem:[#allocation17_spill]] }
  0x65   : > { %v3408_v11 = vld [vmem:[%s4144_s18] sm:$0xff]  ;;  %v3409_v13 = vld [vmem:[%s4144_s18 + $0x8] sm:$0xff]  ;;  %v3411_v17 = vld [vmem:[%s4144_s18 + $0x18] sm:$0xff] }
  0x66   : > { %v3418_v8 = vld [vmem:[%s5586_s24] sm:$0xff]  ;;  %v3417_v18 = vld [vmem:[%s389_s6] sm:$0xff]  ;;  %vm4214_vm3 = vmand %vm712_vm1, %vm713_vm2 }
  0x67   : > { %557 = vmatpush.bf16.msra.mxu0 %v3418_v8  ;;  %3447 = vmatpush.bf16.msra.mxu2 %v3418_v8  ;;  %v715_v20 = vld [vmem:[#allocation2] sm:$0x1]  ;;  %vm4222_vm5 = vmand %vm712_vm1, %vm745_vm4  ;;  %v730_v23 = vld [vmem:[#allocation2 + $0x3c] sm:$0x1] }
  0x68   : > { %v716_v21 = vsel %vm4214_vm3, 0, %v715_v20  ;;  %v731_v24 = vsel %vm4214_vm3, 0, %v730_v23  ;;  %v747_v25 = vld [vmem:[#allocation2 + $0x8] sm:$0x1]  ;;  %v762_v27 = vld [vmem:[#allocation2 + $0x44] sm:$0x1]  ;;  %vm4257_vm7 = vmand %vm979_vm6, %vm745_vm4 }
  0x69   : > { %717 = vst [vmem:[#allocation2] sm:$0x1] %v716_v21  ;;  %v748_v26 = vsel %vm4222_vm5, 0, %v747_v25  ;;  %v763_v28 = vsel %vm4222_vm5, 0, %v762_v27  ;;  %v609_v29 = vld [vmem:[%s5591_s4] sm:$0x3]  ;;  %vm4273_vm9 = vmor %vm713_vm2, %vm777_vm8 }
  0x6a   : > { %3245 = vmatmul.msk.bf16.vlgmr.msra.gmra.mxu0 %vm519_vm0, %v3416_v9  ;;  %3250 = vmatmul.msk.bf16.vlgmr.msra.gmra.mxu2 %vm519_vm0, %v3412_v10  ;;  %732 = vst [vmem:[#allocation2 + $0x3c] sm:$0x1] %v731_v24  ;;  %v718_v30 = vld [vmem:[#allocation2 + $0xc] sm:$0x1]  ;;  %v4237_v32 = vperm.slane %v609_v29, 0  ;;  %v4239_v33 = vperm.slane %v609_v29, 1 }
  0x6b   : > { %749 = vst [vmem:[#allocation2 + $0x8] sm:$0x1] %v748_v26  ;;  %v719_v31 = vsel %vm4214_vm3, 0, %v718_v30  ;;  %v733_v34 = vld [vmem:[#allocation2 + $0x48] sm:$0x1]  ;;  %p3255_p11 = scmp.ne.s32.totalorder %s5596_s11, 0 }
  0x6c   : > { %764 = vst [vmem:[#allocation2 + $0x44] sm:$0x1] %v763_v28  ;;  %v734_v36 = vsel %vm4214_vm3, 0, %v733_v34  ;;  %v750_v38 = vld [vmem:[#allocation2 + $0x14] sm:$0x1] }
  0x6d   : > { %720 = vst [vmem:[#allocation2 + $0xc] sm:$0x1] %v719_v31  ;;  %v751_v39 = vsel %vm4222_vm5, 0, %v750_v38  ;;  %v765_v45 = vld [vmem:[#allocation2 + $0x50] sm:$0x1] }
  0x6e   : > { %735 = vst [vmem:[#allocation2 + $0x48] sm:$0x1] %v734_v36  ;;  %v766_v47 = vsel %vm4222_vm5, 0, %v765_v45  ;;  %v721_v55 = vld [vmem:[#allocation2 + $0x18] sm:$0x1] }
  0x6f   : > { %752 = vst [vmem:[#allocation2 + $0x14] sm:$0x1] %v751_v39  ;;  %v722_v56 = vsel %vm4214_vm3, 0, %v721_v55  ;;  %v736_v10 = vld [vmem:[#allocation2 + $0x54] sm:$0x1] }
  0x70   : > { %767 = vst [vmem:[#allocation2 + $0x50] sm:$0x1] %v766_v47  ;;  %v981_v61 = vld [vmem:[#allocation2] sm:$0xf] }
  0x71   : > { %723 = vst [vmem:[#allocation2 + $0x18] sm:$0x1] %v722_v56  ;;  %v1017_v26 = vld [vmem:[#allocation2 + $0x3c] sm:$0xf] }
  0x72   : > { %v986_v36 = vld [vmem:[#allocation2 + $0x8] sm:$0x1] }
  0x7a   : > { %3246 = vmatmul.msk.bf16.gmra.mxu0 %vm519_vm0, %v3408_v11  ;;  %3251 = vmatmul.msk.bf16.gmra.mxu2 %vm519_vm0, %v3413_v12 }
  0x8a   : > { %3247 = vmatmul.msk.bf16.gmra.mxu0 %vm519_vm0, %v3409_v13  ;;  %3252 = vmatmul.msk.bf16.gmra.mxu2 %vm519_vm0, %v3414_v14  ;;  %v737_v13 = vsel %vm4214_vm3, 0, %v736_v10 }
  0x8b   : > { %738 = vst [vmem:[#allocation2 + $0x54] sm:$0x1] %v737_v13 }
  0x9a   : > { %3248 = vmatmul.msk.bf16.gmra.mxu0 %vm519_vm0, %v3410_v15  ;;  %3253 = vmatmul.msk.bf16.gmra.mxu2 %vm519_vm0, %v3415_v16 }
  0xaa   : > { %3249 = vmatmul.msk.bf16.gmra.mxu0 %vm519_vm0, %v3411_v17  ;;  %3254 = vmatmul.msk.bf16.gmra.mxu2 %vm519_vm0, %v3417_v18  ;;  %v753_v17 = vld [vmem:[#allocation2 + $0x20] sm:$0x1] }
  0xab   : > { %v754_v21 = vsel %vm4222_vm5, 0, %v753_v17 }
  0xac   : > { %755 = vst [vmem:[#allocation2 + $0x20] sm:$0x1] %v754_v21  ;;  %v739_v21 = vld [vmem:[#allocation2 + $0x60] sm:$0x1] }
  0xe7   : > { %v559_v35 = vpop.f32.mrf.mxu0 }
  0xe8   : > { %v611_v37 = vmul.f32 %v4237_v32, %v559_v35 }
  0xea   : > { %v632_v40 = vadd.f32 %v4239_v33, %v611_v37 }
  0xec   : > { %v652_v41 = vmul.f32 0.1, %v632_v40 }
  0xed   : > { %v584_v42 = vpop.f32.mrf.mxu2 }
  0xee   : > { %v672_v43 = vmax.f32 %v632_v40, %v652_v41  ;;  %v621_v44 = vmul.f32 %v4237_v32, %v584_v42 }
  0xef   : > { %v561_v46 = vpop.f32.mrf.mxu0 }
  0xf0   : > { %v692_v48 = vpack.c.bf16 %v672_v43, %v672_v43  ;;  %v642_v49 = vadd.f32 %v4239_v33, %v621_v44  ;;  %v612_v50 = vmul.f32 %v4237_v32, %v561_v46  ;;  %v768_v44 = vld [vmem:[#allocation2 + $0x5c] sm:$0x1] }
  0xf2   : > { %v780_v51 = vshrl.u32 %v692_v48, 16  ;;  %v783_v52 = vshll.u32 %v692_v48, 16  ;;  %v662_v53 = vmul.f32 0.1, %v642_v49  ;;  %v633_v54 = vadd.f32 %v4239_v33, %v612_v50 }
  0xf3   : > { %v769_v48 = vsel %vm4222_vm5, 0, %v768_v44 }
  0xf4   : > { %v782_v57 = vrot.slane %v780_v51, 7  ;;  %v682_v58 = vmax.f32 %v642_v49, %v662_v53  ;;  %v653_v59 = vmul.f32 0.1, %v633_v54  ;;  %770 = vst [vmem:[#allocation2 + $0x5c] sm:$0x1] %v769_v48 }
  0xf5   : > { %v586_v62 = vpop.f32.mrf.mxu2  ;;  %v993_v48 = vld [vmem:[#allocation2 + $0x14] sm:$0x1] }
  0xf6   : > { %v785_v63 = vor.u32 %v783_v52, %v782_v57  ;;  %v702_v8 = vpack.c.bf16 %v682_v58, %v682_v58  ;;  %v673_v9 = vmax.f32 %v633_v54, %v653_v59  ;;  %v622_v11 = vmul.f32 %v4237_v32, %v586_v62  ;;  %v724_v58 = vld [vmem:[#allocation2 + $0x24] sm:$0x1] }
  0xf7   : > { %v564_v12 = vpop.f32.mrf.mxu0  ;;  %v786_v34 = vrot.slane %v782_v57, 4 }
  0xf8   : > { %v982_v14 = vsel %vm4257_vm7, %v785_v63, %v981_v61  ;;  %v865_v15 = vshrl.u32 %v702_v8, 16  ;;  %v693_v16 = vpack.c.bf16 %v673_v9, %v673_v9  ;;  %v643_v18 = vadd.f32 %v4239_v33, %v622_v11 }
  0xf9   : > { %983 = vst [vmem:[#allocation2] sm:$0xf] %v982_v14  ;;  %v613_v20 = vmul.f32 %v4237_v32, %v564_v12  ;;  %v868_v24 = vshll.u32 %v702_v8, 16  ;;  %v725_v63 = vsel %vm4214_vm3, 0, %v724_v58  ;;  %v1021_v8 = vld [vmem:[#allocation2 + $0x44] sm:$0x1] }
  0xfa   : > { %v867_v23 = vrot.slane %v865_v15, 7  ;;  %v788_v25 = vshrl.u32 %v693_v16, 16  ;;  %v663_v27 = vmul.f32 0.1, %v643_v18  ;;  %v791_v31 = vshll.u32 %v693_v16, 16 }
  0xfb   : > { %v634_v28 = vadd.f32 %v4239_v33, %v613_v20  ;;  %726 = vst [vmem:[#allocation2 + $0x24] sm:$0x1] %v725_v63  ;;  %v989_v16 = vld [vmem:[#allocation2 + $0xc] sm:$0xf] }
  0xfc   : > { %v870_v29 = vor.u32 %v868_v24, %v867_v23  ;;  %v790_v30 = vrot.slane %v788_v25, 7  ;;  %v683_v37 = vmax.f32 %v643_v18, %v663_v27  ;;  %v871_v11 = vrot.slane %v867_v23, 4 }
  0xfd   : > { %v654_v38 = vmul.f32 0.1, %v634_v28  ;;  %v589_v39 = vpop.f32.mrf.mxu2 }
  0xfe   : > { %v1018_v40 = vsel %vm4257_vm7, %v870_v29, %v1017_v26  ;;  %v793_v41 = vor.u32 %v791_v31, %v790_v30  ;;  %v795_v42 = vrot.slane %v790_v30, 4  ;;  %v623_v43 = vmul.f32 %v4237_v32, %v589_v39  ;;  %v756_v30 = vld [vmem:[#allocation2 + $0x2c] sm:$0x1] }
  0xff   : > { %1019 = vst [vmem:[#allocation2 + $0x3c] sm:$0xf] %v1018_v40  ;;  %v703_v45 = vpack.c.bf16 %v683_v37, %v683_v37  ;;  %v674_v46 = vmax.f32 %v634_v28, %v654_v38  ;;  %v566_v47 = vpop.f32.mrf.mxu0  ;;  %v757_v37 = vsel %vm4222_vm5, 0, %v756_v30  ;;  %v996_v30 = vld [vmem:[#allocation2 + $0x18] sm:$0xf] }
 0x100   : > { %v794_v49 = vsel %vm4273_vm9, %v786_v34, %v793_v41  ;;  %v987_v50 = vsel %vm4214_vm3, %v795_v42, %v986_v36  ;;  %v644_v51 = vadd.f32 %v4239_v33, %v623_v43  ;;  %v614_v52 = vmul.f32 %v4237_v32, %v566_v47  ;;  %v1024_v41 = vld [vmem:[#allocation2 + $0x48] sm:$0xf]  ;;  %758 = vst [vmem:[#allocation2 + $0x2c] sm:$0x1] %v757_v37  ;;  %v742_v37 = vld [vmem:[#allocation2 + $0x6c] sm:$0x1] }
 0x101   : > { %985 = vst.msk [vmem:[#allocation2 + $0x4] sm:$0xf] %vm979_vm6, %v794_v49  ;;  %v873_v53 = vshrl.u32 %v703_v45, 16  ;;  %v876_v54 = vshll.u32 %v703_v45, 16  ;;  %v694_v55 = vpack.c.bf16 %v674_v46, %v674_v46  ;;  %v740_v36 = vsel %vm4214_vm3, 0, %v739_v21 }
 0x102   : > { %988 = vst [vmem:[#allocation2 + $0x8] sm:$0x1] %v987_v50  ;;  %v664_v56 = vmul.f32 0.1, %v644_v51  ;;  %v635_v57 = vadd.f32 %v4239_v33, %v614_v52 }
 0x103   : > { %v875_v59 = vrot.slane %v873_v53, 7  ;;  %v797_v61 = vshrl.u32 %v694_v55, 16  ;;  %v800_v62 = vshll.u32 %v694_v55, 16  ;;  %741 = vst [vmem:[#allocation2 + $0x60] sm:$0x1] %v740_v36 }
 0x104   : > { %v684_v9 = vmax.f32 %v644_v51, %v664_v56  ;;  %v655_v10 = vmul.f32 0.1, %v635_v57  ;;  %v771_v56 = vld [vmem:[#allocation2 + $0x68] sm:$0x1] }
 0x105   : > { %v878_v12 = vor.u32 %v876_v54, %v875_v59  ;;  %v880_v13 = vrot.slane %v875_v59, 4  ;;  %v799_v14 = vrot.slane %v797_v61, 7  ;;  %v591_v15 = vpop.f32.mrf.mxu2  ;;  %v772_v61 = vsel %vm4222_vm5, 0, %v771_v56 }
 0x106   : > { %v704_v17 = vpack.c.bf16 %v684_v9, %v684_v9  ;;  %v675_v18 = vmax.f32 %v635_v57, %v655_v10  ;;  %v624_v20 = vmul.f32 %v4237_v32, %v591_v15  ;;  %773 = vst [vmem:[#allocation2 + $0x68] sm:$0x1] %v772_v61  ;;  %v1000_v61 = vld [vmem:[#allocation2 + $0x20] sm:$0x1] }
 0x107   : > { %v879_v24 = vsel %vm4273_vm9, %v871_v11, %v878_v12  ;;  %v1022_v25 = vsel %vm4214_vm3, %v880_v13, %v1021_v8  ;;  %v802_v26 = vor.u32 %v800_v62, %v799_v14  ;;  %v569_v27 = vpop.f32.mrf.mxu0  ;;  %v803_v47 = vrot.slane %v799_v14, 4 }
 0x108   : > { %1020 = vst.msk [vmem:[#allocation2 + $0x40] sm:$0xf] %vm979_vm6, %v879_v24  ;;  %v882_v23 = vshrl.u32 %v704_v17, 16  ;;  %v695_v28 = vpack.c.bf16 %v675_v18, %v675_v18  ;;  %v645_v29 = vadd.f32 %v4239_v33, %v624_v20  ;;  %v615_v34 = vmul.f32 %v4237_v32, %v569_v27 }
 0x109   : > { %1023 = vst [vmem:[#allocation2 + $0x44] sm:$0x1] %v1022_v25  ;;  %v990_v31 = vsel %vm4257_vm7, %v802_v26, %v989_v16  ;;  %v885_v39 = vshll.u32 %v704_v17, 16  ;;  %v1028_v16 = vld [vmem:[#allocation2 + $0x50] sm:$0x1] }
 0x10a   : > { %991 = vst [vmem:[#allocation2 + $0xc] sm:$0xf] %v990_v31  ;;  %v884_v38 = vrot.slane %v882_v23, 7  ;;  %v805_v40 = vshrl.u32 %v695_v28, 16  ;;  %v665_v42 = vmul.f32 0.1, %v645_v29  ;;  %v636_v43 = vadd.f32 %v4239_v33, %v615_v34 }
 0x10b   : > { %v808_v46 = vshll.u32 %v695_v28, 16  ;;  %v727_v25 = vld [vmem:[#allocation2 + $0x30] sm:$0x1] }
 0x10c   : > { %v887_v44 = vor.u32 %v885_v39, %v884_v38  ;;  %v807_v45 = vrot.slane %v805_v40, 7  ;;  %v685_v49 = vmax.f32 %v645_v29, %v665_v42  ;;  %v656_v50 = vmul.f32 0.1, %v636_v43 }
 0x10d   : > { %v594_v51 = vpop.f32.mrf.mxu2  ;;  %v888_v20 = vrot.slane %v884_v38, 4  ;;  %v728_v29 = vsel %vm4214_vm3, 0, %v727_v25 }
 0x10e   : > { %v1025_v52 = vsel %vm4257_vm7, %v887_v44, %v1024_v41  ;;  %v810_v53 = vor.u32 %v808_v46, %v807_v45  ;;  %v812_v54 = vrot.slane %v807_v45, 4  ;;  %v625_v55 = vmul.f32 %v4237_v32, %v594_v51  ;;  %729 = vst [vmem:[#allocation2 + $0x30] sm:$0x1] %v728_v29  ;;  %v759_v45 = vld [vmem:[#allocation2 + $0x38] sm:$0x1] }
 0x10f   : > { %1026 = vst [vmem:[#allocation2 + $0x48] sm:$0xf] %v1025_v52  ;;  %v705_v57 = vpack.c.bf16 %v685_v49, %v685_v49  ;;  %v676_v58 = vmax.f32 %v636_v43, %v656_v50  ;;  %v571_v59 = vpop.f32.mrf.mxu0  ;;  %v760_v49 = vsel %vm4222_vm5, 0, %v759_v45 }
 0x110   : > { %v811_v62 = vsel %vm4273_vm9, %v803_v47, %v810_v53  ;;  %v994_v63 = vsel %vm4214_vm3, %v812_v54, %v993_v48  ;;  %v646_v8 = vadd.f32 %v4239_v33, %v625_v55  ;;  %v616_v9 = vmul.f32 %v4237_v32, %v571_v59  ;;  %v1031_v53 = vld [vmem:[#allocation2 + $0x54] sm:$0xf]  ;;  %761 = vst [vmem:[#allocation2 + $0x38] sm:$0x1] %v760_v49 }
 0x111   : > { %992 = vst.msk [vmem:[#allocation2 + $0x10] sm:$0xf] %vm979_vm6, %v811_v62  ;;  %v890_v10 = vshrl.u32 %v705_v57, 16  ;;  %v696_v11 = vpack.c.bf16 %v676_v58, %v676_v58  ;;  %v893_v15 = vshll.u32 %v705_v57, 16  ;;  %v743_v48 = vsel %vm4214_vm3, 0, %v742_v37 }
 0x112   : > { %995 = vst [vmem:[#allocation2 + $0x14] sm:$0x1] %v994_v63  ;;  %v666_v12 = vmul.f32 0.1, %v646_v8  ;;  %v637_v13 = vadd.f32 %v4239_v33, %v616_v9 }
 0x113   : > { %v892_v14 = vrot.slane %v890_v10, 7  ;;  %v814_v17 = vshrl.u32 %v696_v11, 16  ;;  %v817_v18 = vshll.u32 %v696_v11, 16  ;;  %744 = vst [vmem:[#allocation2 + $0x6c] sm:$0x1] %v743_v48 }
 0x114   : > { %v686_v21 = vmax.f32 %v646_v8, %v666_v12  ;;  %v657_v24 = vmul.f32 0.1, %v637_v13 }
 0x115   : > { %v895_v26 = vor.u32 %v893_v15, %v892_v14  ;;  %v897_v27 = vrot.slane %v892_v14, 4  ;;  %v816_v23 = vrot.slane %v814_v17, 7  ;;  %v596_v28 = vpop.f32.mrf.mxu2 }
 0x116   : > { %v706_v31 = vpack.c.bf16 %v686_v21, %v686_v21  ;;  %v677_v34 = vmax.f32 %v637_v13, %v657_v24  ;;  %v626_v36 = vmul.f32 %v4237_v32, %v596_v28  ;;  %v774_v13 = vld [vmem:[#allocation2 + $0x74] sm:$0x1] }
 0x117   : > { %v896_v38 = vsel %vm4273_vm9, %v888_v20, %v895_v26  ;;  %v1029_v39 = vsel %vm4214_vm3, %v897_v27, %v1028_v16  ;;  %v819_v40 = vor.u32 %v817_v18, %v816_v23  ;;  %v574_v41 = vpop.f32.mrf.mxu0  ;;  %v820_v59 = vrot.slane %v816_v23, 4 }
 0x118   : > { %1027 = vst.msk [vmem:[#allocation2 + $0x4c] sm:$0xf] %vm979_vm6, %v896_v38  ;;  %v899_v42 = vshrl.u32 %v706_v31, 16  ;;  %v697_v43 = vpack.c.bf16 %v677_v34, %v677_v34  ;;  %v647_v44 = vadd.f32 %v4239_v33, %v626_v36  ;;  %v617_v47 = vmul.f32 %v4237_v32, %v574_v41 }
 0x119   : > { %1030 = vst [vmem:[#allocation2 + $0x50] sm:$0x1] %v1029_v39  ;;  %v997_v46 = vsel %vm4257_vm7, %v819_v40, %v996_v30  ;;  %v902_v51 = vshll.u32 %v706_v31, 16  ;;  %v775_v17 = vsel %vm4222_vm5, 0, %v774_v13  ;;  %v1035_v31 = vld [vmem:[#allocation2 + $0x5c] sm:$0x1] }
 0x11a   : > { %998 = vst [vmem:[#allocation2 + $0x18] sm:$0xf] %v997_v46  ;;  %v901_v50 = vrot.slane %v899_v42, 7  ;;  %v822_v52 = vshrl.u32 %v697_v43, 16  ;;  %v667_v54 = vmul.f32 0.1, %v647_v44  ;;  %v638_v55 = vadd.f32 %v4239_v33, %v617_v47 }
 0x11b   : > { %v825_v58 = vshll.u32 %v697_v43, 16  ;;  %776 = vst [vmem:[#allocation2 + $0x74] sm:$0x1] %v775_v17  ;;  %v1003_v42 = vld [vmem:[#allocation2 + $0x24] sm:$0xf] }
 0x11c   : > { %v904_v56 = vor.u32 %v902_v51, %v901_v50  ;;  %v824_v57 = vrot.slane %v822_v52, 7  ;;  %v687_v62 = vmax.f32 %v647_v44, %v667_v54  ;;  %v658_v63 = vmul.f32 0.1, %v638_v55 }
 0x11d   : > { %v599_v8 = vpop.f32.mrf.mxu2  ;;  %v905_v37 = vrot.slane %v901_v50, 4 }
 0x11e   : > { %v1032_v9 = vsel %vm4257_vm7, %v904_v56, %v1031_v53  ;;  %v827_v10 = vor.u32 %v825_v58, %v824_v57  ;;  %v829_v11 = vrot.slane %v824_v57, 4  ;;  %v627_v12 = vmul.f32 %v4237_v32, %v599_v8  ;;  %v1038_v58 = vld [vmem:[#allocation2 + $0x60] sm:$0xf] }
 0x11f   : > { %1033 = vst [vmem:[#allocation2 + $0x54] sm:$0xf] %v1032_v9  ;;  %v707_v14 = vpack.c.bf16 %v687_v62, %v687_v62  ;;  %v678_v15 = vmax.f32 %v638_v55, %v658_v63  ;;  %v576_v16 = vpop.f32.mrf.mxu0 }
 0x120   : > { %v828_v18 = vsel %vm4273_vm9, %v820_v59, %v827_v10  ;;  %v1001_v20 = vsel %vm4214_vm3, %v829_v11, %v1000_v61  ;;  %v648_v21 = vadd.f32 %v4239_v33, %v627_v12  ;;  %v618_v24 = vmul.f32 %v4237_v32, %v576_v16  ;;  %v1007_v10 = vld [vmem:[#allocation2 + $0x2c] sm:$0x1] }
 0x121   : > { %999 = vst.msk [vmem:[#allocation2 + $0x1c] sm:$0xf] %vm979_vm6, %v828_v18  ;;  %v907_v25 = vshrl.u32 %v707_v14, 16  ;;  %v698_v26 = vpack.c.bf16 %v678_v15, %v678_v15  ;;  %v910_v28 = vshll.u32 %v707_v14, 16 }
 0x122   : > { %1002 = vst [vmem:[#allocation2 + $0x20] sm:$0x1] %v1001_v20  ;;  %v668_v27 = vmul.f32 0.1, %v648_v21  ;;  %v639_v22 = vadd.f32 %v4239_v33, %v618_v24 }
 0x123   : > { %v909_v23 = vrot.slane %v907_v25, 7  ;;  %v831_v29 = vshrl.u32 %v698_v26, 16  ;;  %v834_v30 = vshll.u32 %v698_v26, 16 }
 0x124   : > { %v688_v34 = vmax.f32 %v648_v21, %v668_v27  ;;  %v659_v36 = vmul.f32 0.1, %v639_v22 }
 0x125   : > { %v912_v38 = vor.u32 %v910_v28, %v909_v23  ;;  %v914_v39 = vrot.slane %v909_v23, 4  ;;  %v833_v40 = vrot.slane %v831_v29, 7  ;;  %v601_v41 = vpop.f32.mrf.mxu2 }
 0x126   : > { %v708_v43 = vpack.c.bf16 %v688_v34, %v688_v34  ;;  %v679_v44 = vmax.f32 %v639_v22, %v659_v36  ;;  %v628_v45 = vmul.f32 %v4237_v32, %v601_v41 }
 0x127   : > { %v913_v46 = vsel %vm4273_vm9, %v905_v37, %v912_v38  ;;  %v1036_v47 = vsel %vm4214_vm3, %v914_v39, %v1035_v31  ;;  %v836_v48 = vor.u32 %v834_v30, %v833_v40  ;;  %v579_v49 = vpop.f32.mrf.mxu0  ;;  %v837_v9 = vrot.slane %v833_v40, 4  ;;  %v1042_v37 = vld [vmem:[#allocation2 + $0x68] sm:$0x1] }
 0x128   : > { %1034 = vst.msk [vmem:[#allocation2 + $0x58] sm:$0xf] %vm979_vm6, %v913_v46  ;;  %v916_v50 = vshrl.u32 %v708_v43, 16  ;;  %v699_v51 = vpack.c.bf16 %v679_v44, %v679_v44  ;;  %v649_v52 = vadd.f32 %v4239_v33, %v628_v45  ;;  %v619_v54 = vmul.f32 %v4237_v32, %v579_v49  ;;  %v1010_v45 = vld [vmem:[#allocation2 + $0x30] sm:$0xf] }
 0x129   : > { %1037 = vst [vmem:[#allocation2 + $0x5c] sm:$0x1] %v1036_v47  ;;  %v1004_v53 = vsel %vm4257_vm7, %v836_v48, %v1003_v42  ;;  %v919_v56 = vshll.u32 %v708_v43, 16 }
 0x12a   : > { %1005 = vst [vmem:[#allocation2 + $0x24] sm:$0xf] %v1004_v53  ;;  %v918_v55 = vrot.slane %v916_v50, 7  ;;  %v839_v57 = vshrl.u32 %v699_v51, 16  ;;  %v669_v59 = vmul.f32 0.1, %v649_v52  ;;  %v640_v61 = vadd.f32 %v4239_v33, %v619_v54 }
 0x12b   : > { %v842_v8 = vshll.u32 %v699_v51, 16 }
 0x12c   : > { %v921_v62 = vor.u32 %v919_v56, %v918_v55  ;;  %v841_v63 = vrot.slane %v839_v57, 7  ;;  %v689_v11 = vmax.f32 %v649_v52, %v669_v59  ;;  %v660_v12 = vmul.f32 0.1, %v640_v61 }
 0x12d   : > { %v604_v13 = vpop.f32.mrf.mxu2  ;;  %v922_v40 = vrot.slane %v918_v55, 4 }
 0x12e   : > { %v1039_v14 = vsel %vm4257_vm7, %v921_v62, %v1038_v58  ;;  %v844_v15 = vor.u32 %v842_v8, %v841_v63  ;;  %v846_v16 = vrot.slane %v841_v63, 4  ;;  %v629_v17 = vmul.f32 %v4237_v32, %v604_v13  ;;  %v1045_v58 = vld [vmem:[#allocation2 + $0x6c] sm:$0xf]  ;;  %v1014_v8 = vld [vmem:[#allocation2 + $0x38] sm:$0x1] }
 0x12f   : > { %1040 = vst [vmem:[#allocation2 + $0x60] sm:$0xf] %v1039_v14  ;;  %v709_v18 = vpack.c.bf16 %v689_v11, %v689_v11  ;;  %v680_v20 = vmax.f32 %v640_v61, %v660_v12  ;;  %v581_v21 = vpop.f32.mrf.mxu0 }
 0x130   : > { %v845_v24 = vsel %vm4273_vm9, %v837_v9, %v844_v15  ;;  %v1008_v25 = vsel %vm4214_vm3, %v846_v16, %v1007_v10  ;;  %v650_v26 = vadd.f32 %v4239_v33, %v629_v17  ;;  %v620_v27 = vmul.f32 %v4237_v32, %v581_v21 }
 0x131   : > { %1006 = vst.msk [vmem:[#allocation2 + $0x28] sm:$0xf] %vm979_vm6, %v845_v24  ;;  %v924_v22 = vshrl.u32 %v709_v18, 16  ;;  %v700_v23 = vpack.c.bf16 %v680_v20, %v680_v20  ;;  %v927_v31 = vshll.u32 %v709_v18, 16  ;;  %v1049_v20 = vld [vmem:[#allocation2 + $0x74] sm:$0x1] }
 0x132   : > { %1009 = vst [vmem:[#allocation2 + $0x2c] sm:$0x1] %v1008_v25  ;;  %v670_v28 = vmul.f32 0.1, %v650_v26  ;;  %v641_v29 = vadd.f32 %v4239_v33, %v620_v27 }
 0x133   : > { %v926_v30 = vrot.slane %v924_v22, 7  ;;  %v848_v34 = vshrl.u32 %v700_v23, 16  ;;  %v851_v36 = vshll.u32 %v700_v23, 16 }
 0x134   : > { %v690_v38 = vmax.f32 %v650_v26, %v670_v28  ;;  %v661_v39 = vmul.f32 0.1, %v641_v29 }
 0x135   : > { %v929_v41 = vor.u32 %v927_v31, %v926_v30  ;;  %v931_v42 = vrot.slane %v926_v30, 4  ;;  %v850_v43 = vrot.slane %v848_v34, 7  ;;  %v606_v44 = vpop.f32.mrf.mxu2 }
 0x136   : > { %v710_v46 = vpack.c.bf16 %v690_v38, %v690_v38  ;;  %v681_v47 = vmax.f32 %v641_v29, %v661_v39  ;;  %v630_v48 = vmul.f32 %v4237_v32, %v606_v44 }
 0x137   : > { %v930_v49 = vsel %vm4273_vm9, %v922_v40, %v929_v41  ;;  %v1043_v50 = vsel %vm4214_vm3, %v931_v42, %v1042_v37  ;;  %v853_v51 = vor.u32 %v851_v36, %v850_v43  ;;  %v854_v10 = vrot.slane %v850_v43, 4 }
 0x138   : > { %1041 = vst.msk [vmem:[#allocation2 + $0x64] sm:$0xf] %vm979_vm6, %v930_v49  ;;  %v933_v52 = vshrl.u32 %v710_v46, 16  ;;  %v701_v53 = vpack.c.bf16 %v681_v47, %v681_v47  ;;  %v651_v54 = vadd.f32 %v4239_v33, %v630_v48  ;;  %v936_v32 = vshll.u32 %v710_v46, 16 }
 0x139   : > { %1044 = vst [vmem:[#allocation2 + $0x68] sm:$0x1] %v1043_v50  ;;  %v1011_v55 = vsel %vm4257_vm7, %v853_v51, %v1010_v45 }
 0x13a   : > { %1012 = vst [vmem:[#allocation2 + $0x30] sm:$0xf] %v1011_v55  ;;  %v935_v56 = vrot.slane %v933_v52, 7  ;;  %v856_v57 = vshrl.u32 %v701_v53, 16  ;;  %v671_v59 = vmul.f32 0.1, %v651_v54 }
 0x13b   : > { %v859_v63 = vshll.u32 %v701_v53, 16 }
 0x13c   : > { %v938_v61 = vor.u32 %v936_v32, %v935_v56  ;;  %v858_v62 = vrot.slane %v856_v57, 7  ;;  %v691_v9 = vmax.f32 %v651_v54, %v671_v59  ;;  %v939_v60 = vrot.slane %v935_v56, 4 }
 0x13e   : > { %v1046_v11 = vsel %vm4257_vm7, %v938_v61, %v1045_v58  ;;  %v861_v33 = vor.u32 %v859_v63, %v858_v62  ;;  %v863_v12 = vrot.slane %v858_v62, 4  ;;  %v711_v13 = vpack.c.bf16 %v691_v9, %v691_v9 }
 0x13f   : > { %1047 = vst [vmem:[#allocation2 + $0x6c] sm:$0xf] %v1046_v11 }
 0x140   : > { %v862_v14 = vsel %vm4273_vm9, %v854_v10, %v861_v33  ;;  %v1015_v15 = vsel %vm4214_vm3, %v863_v12, %v1014_v8  ;;  %v941_v16 = vshrl.u32 %v711_v13, 16  ;;  %v944_v18 = vshll.u32 %v711_v13, 16 }
 0x141   : > { %1013 = vst.msk [vmem:[#allocation2 + $0x34] sm:$0xf] %vm979_vm6, %v862_v14 }
 0x142   : > { %1016 = vst [vmem:[#allocation2 + $0x38] sm:$0x1] %v1015_v15  ;;  %v943_v17 = vrot.slane %v941_v16, 7 }
 0x144   : > { %v946_v21 = vor.u32 %v944_v18, %v943_v17  ;;  %v948_v24 = vrot.slane %v943_v17, 4  ;;  %1055 = sbr.rel (%p3255_p11) target bundleno = 333 (0x14d), region = 64 }
 0x146   : > { %v947_v25 = vsel %vm4273_vm9, %v939_v60, %v946_v21  ;;  %v1050_v26 = vsel %vm4214_vm3, %v948_v24, %v1049_v20 }
 0x147   : > { %1048 = vst.msk [vmem:[#allocation2 + $0x70] sm:$0xf] %vm979_vm6, %v947_v25 }
 0x148   : > { %1051 = vst [vmem:[#allocation2 + $0x74] sm:$0x1] %v1050_v26 }
 0x149   : > { %v3852_v27 = vmov 0  }
 0x14a   : > { %1056 = vst.msk [vmem:[#allocation2] sm:$0xf] %vm979_vm6, %v3852_v27 }
 0x14b   : > { %1057 = vst.msk [vmem:[#allocation2 + $0x4] sm:$0xf] %vm979_vm6, %v3852_v27 }
 0x14c   : > { %1059 = vst.msk [vmem:[#allocation2 + $0x8] sm:$0x1] %vm712_vm1, %v3852_v27 }
 0x14d PF: > { %s5597_s3 = sld [smem:[#allocation17_spill]] }
 0x153   : > { %p3256_p0 = scmp.ne.s32.totalorder %s5597_s3, 1 }
 0x155   : > { %1063 = sbr.rel (%p3256_p0) target bundleno = 350 (0x15e), region = 68 }
 0x15a   : > { %v3853_v19 = vmov 0  }
 0x15b   : > { %1065 = vst.msk [vmem:[#allocation2 + $0x6c] sm:$0xf] %vm979_vm6, %v3853_v19 }
 0x15c   : > { %1066 = vst.msk [vmem:[#allocation2 + $0x70] sm:$0xf] %vm979_vm6, %v3853_v19 }
 0x15d   : > { %1068 = vst.msk [vmem:[#allocation2 + $0x74] sm:$0x1] %vm712_vm1, %v3853_v19 }
 0x15e PF: > { %v3431_v35 = vld [vmem:[#allocation2 + $0x3c] sm:$0xff]  ;;  %v1078_v22 = vld [vmem:[#allocation2 + $0x34] sm:$0xf]  ;;  %v1089_v23 = vld [vmem:[#allocation2 + $0x38] sm:$0x1]  ;;  %vm1320_vm10 = vcmask 1042432  }
 0x15f   : > { %v1292_v28 = vld [vmem:[#allocation2 + $0x30] sm:$0xe]  ;;  %vm1321_vm11 = vcmask 1046532   ;;  %v1353_v29 = vrot.slane %v1078_v22, 5  ;;  %s3854_s16 = smov 24   ;;  %v1212_v30 = vshll.u32 %v1089_v23, 16 }
 0x160   : > { %2141 = vrot.lane.b32.xlu1 %v3431_v35, %s3854_s16  ;;  %vm4406_vm12 = vmor %vm1320_vm10, %vm1321_vm11  ;;  %v3261_v34 = vrot.slane %v1292_v28, 9  ;;  %v1356_v36 = vrot.slane %v1089_v23, 5  ;;  %v1206_v37 = vshrl.u32 %v1078_v22, 16  ;;  %v1069_v38 = vld [vmem:[#allocation2] sm:$0xf]  ;;  %v1202_v32 = vshll.u32 %v1078_v22, 16 }
 0x161   : > { %v1355_v39 = vrot.slane %v1353_v29, 4  ;;  %v4410_v40 = vld [vmem:[#allocation2 + $0x4] sm:$0xf]  ;;  %v4412_v41 = vld [vmem:[#allocation2 + $0x8] sm:$0x1]  ;;  %v1097_v42 = vshrl.u32 %v1069_v38, 16 }
 0x162   : > { %v1354_v43 = vsel %vm4406_vm12, %v3261_v34, %v1353_v29  ;;  %vm1093_vm13 = vsmask.f32 3328  ;;  %vm1094_vm14 = vsmask.f32 7440  ;;  %v1100_v44 = vshll.u32 %v1069_v38, 16  ;;  %s3855_s1 = smov 16  }
 0x163   : > { %v1357_v45 = vsel %vm4406_vm12, %v1355_v39, %v1356_v36  ;;  %v2069_v46 = vunpack.c.l.b16 %v1354_v43  ;;  %v1099_v47 = vrot.slane %v1097_v42, 4  ;;  %v1106_v48 = vshll.u32 %v4410_v40, 16  ;;  %v1077_v49 = vld [vmem:[#allocation2 + $0x30] sm:$0xf]  ;;  %v1600_v57 = vld [vmem:[#allocation2 + $0x3c] sm:$0xe]  ;;  %vm4427_vm15 = vmor %vm1093_vm13, %vm1094_vm14 }
 0x164   : > { %v2070_v50 = vunpack.c.l.b16 %v1357_v45  ;;  %v1102_v51 = vrot.slane %v1100_v44, 5  ;;  %v1110_v52 = vshrl.u32 %v4410_v40, 16  ;;  %v1116_v53 = vshll.u32 %v4412_v41, 16  ;;  %v4421_v63 = vld [vmem:[#allocation2 + $0x40] sm:$0xf]  ;;  %s3856_s18 = smov 8  }
 0x165   : > { %v1108_v54 = vrot.slane %v1106_v48, 5  ;;  %v1193_v55 = vshrl.u32 %v1077_v49, 16  ;;  %v1196_v56 = vshll.u32 %v1077_v49, 16  ;;  %v4423_v8 = vld [vmem:[#allocation2 + $0x44] sm:$0x1]  ;;  %v1204_v33 = vrot.slane %v1202_v32, 5 }
 0x166   : > { %v2081_v58 = vpack.c.b16 %v2070_v50, %v2069_v46  ;;  %v1103_v59 = vor.u32 %v1102_v51, %v1099_v47  ;;  %v1112_v61 = vrot.slane %v1110_v52, 4  ;;  %v1118_v62 = vrot.slane %v1116_v53, 5  ;;  %v4431_v13 = vld [vmem:[#allocation2 + $0x10] sm:$0xf]  ;;  %v1596_v18 = vld [vmem:[#allocation2 + $0xc] sm:$0xe] }
 0x167   : > { %v1195_v10 = vrot.slane %v1193_v55, 4  ;;  %v1198_v11 = vrot.slane %v1196_v56, 5  ;;  %v1208_v12 = vrot.slane %v1206_v37, 4  ;;  %v1214_v16 = vrot.slane %v1212_v30, 5  ;;  %v4441_v29 = vld [vmem:[#allocation2 + $0x14] sm:$0x1] }
 0x168   : > { %2093 = vrot.lane.b32.xlu0 %v2081_v58, %s3855_s1  ;;  %v1104_v14 = vrot.slane %v1103_v59, 4  ;;  %v1113_v15 = vor.u32 %v1112_v61, %v1108_v54  ;;  %v3269_v17 = vrot.slane %v1600_v57, 9  ;;  %v1658_v21 = vrot.slane %v4421_v63, 5  ;;  %v1288_v38 = vld [vmem:[#allocation2] sm:$0xe]  ;;  %s3857_s0 = smov 40  }
 0x169   : > { %v1199_v20 = vor.u32 %v1198_v11, %v1195_v10  ;;  %v1209_v60 = vor.u32 %v1208_v12, %v1204_v33  ;;  %v1661_v24 = vrot.slane %v4423_v8, 5  ;;  %v3265_v27 = vrot.slane %v1596_v18, 9  ;;  %v4454_v49 = vld [vmem:[#allocation2 + $0x4c] sm:$0xf]  ;;  %v1905_v50 = vld [vmem:[#allocation2 + $0x48] sm:$0xe] }
 0x16a   : > { %v1109_v25 = vsel %vm4427_vm15, %v1104_v14, %v1108_v54  ;;  %v1114_v26 = vrot.slane %v1113_v15, 4  ;;  %v1630_v19 = vrot.slane %v4431_v13, 5  ;;  %v1659_v28 = vsel %vm4406_vm12, %v3269_v17, %v1658_v21  ;;  %v4456_v55 = vld [vmem:[#allocation2 + $0x50] sm:$0x1]  ;;  %v1388_v56 = vld [vmem:[#allocation2 + $0x3c] sm:$0xf] }
 0x16b   : > { %v2021_v35 = vunpack.c.l.b16 %v1109_v25  ;;  %v1200_v22 = vrot.slane %v1199_v20, 4  ;;  %v1210_v23 = vrot.slane %v1209_v60, 4  ;;  %v1660_v34 = vrot.slane %v1658_v21, 4  ;;  %v1079_v18 = vld [vmem:[#allocation2 + $0x3c] sm:$0xf]  ;;  %s3858_s30 = smov 48  }
 0x16c   : > { %v1119_v30 = vsel %vm4427_vm15, %v1114_v26, %v1118_v62  ;;  %v2197_v36 = vunpack.c.l.b16 %v1659_v28  ;;  %v1631_v37 = vsel %vm4406_vm12, %v3265_v27, %v1630_v19  ;;  %v1632_v44 = vrot.slane %v1630_v19, 4  ;;  %s3859_s12 = smov 32   ;;  %s3860_s5 = smov 64  }
 0x16d   : > { %v2022_v39 = vunpack.c.l.b16 %v1119_v30  ;;  %v1205_v42 = vsel %vm4427_vm15, %v1200_v22, %v1204_v33  ;;  %v1215_v43 = vsel %vm4427_vm15, %v1210_v23, %v1214_v16  ;;  %v1662_v47 = vsel %vm4406_vm12, %v1660_v34, %v1661_v24  ;;  %v3427_v22 = vld [vmem:[#allocation2 + $0xc] sm:$0xff]  ;;  %v4481_v34 = vld [vmem:[#allocation2 + $0x44] sm:$0x1]  ;;  %s3861_s13 = smov 56   ;;  %s5602_s10 = sld [smem:[#allocation31_spill]] }
 0x16e   : > { %v2029_v45 = vunpack.c.l.b16 %v1205_v42  ;;  %v2030_v46 = vunpack.c.l.b16 %v1215_v43  ;;  %v1633_v48 = vrot.slane %v4441_v29, 5  ;;  %v2198_v52 = vunpack.c.l.b16 %v1662_v47  ;;  %v1380_v43 = vld [vmem:[#allocation2 + $0xc] sm:$0xf]  ;;  %s5624_s23 = sld [smem:[#allocation33_spill]]  ;;  %s3031_s22 = sshll.u32 %s4395_s20, 4  ;;  %s3032_s22 = int_to_ptr.vmem [resolvable:$true] %s3031_s22 }
 0x16f   : > { %v2037_v51 = vpack.c.b16 %v2022_v39, %v2021_v35  ;;  %v2189_v53 = vunpack.c.l.b16 %v1631_v37  ;;  %v3257_v54 = vrot.slane %v1288_v38, 9  ;;  %v1325_v58 = vrot.slane %v4410_v40, 5  ;;  %v4478_v35 = vld [vmem:[#allocation2 + $0x40] sm:$0xf]  ;;  %s3016_s4 = scalar_lea.sflag [#allocation5], %s4140_s17 }
 0x170   : > { %v2041_v32 = vpack.c.b16 %v2030_v46, %v2029_v45  ;;  %v1634_v57 = vsel %vm4406_vm12, %v1632_v44, %v1633_v48  ;;  %v1328_v59 = vrot.slane %v4412_v41, 5  ;;  %v2209_v61 = vpack.c.b16 %v2198_v52, %v2197_v36 }
 0x171   : > { %2045 = vrot.lane.b32.xlu1 %v2037_v51, %s3856_s18  ;;  %v2190_v62 = vunpack.c.l.b16 %v1634_v57  ;;  %v3277_v10 = vrot.slane %v1905_v50, 9  ;;  %v1963_v11 = vrot.slane %v4454_v49, 5  ;;  %v1326_v33 = vsel %vm4406_vm12, %v3257_v54, %v1325_v58 }
 0x172   : > { %2053 = vrot.lane.b32.xlu0 %v2041_v32, %s3856_s18  ;;  %v1327_v12 = vrot.slane %v1325_v58, 4  ;;  %v1966_v14 = vrot.slane %v4456_v55, 5  ;;  %v1501_v15 = vshrl.u32 %v1388_v56, 16  ;;  %v2061_v41 = vunpack.c.l.b16 %v1326_v33  ;;  %v3439_v33 = vld [vmem:[#allocation2 + $0x48] sm:$0xff] }
 0x173   : > { %v4468_v40 = vpack.c.b16 %v2190_v62, %v2189_v53  ;;  %v1964_v16 = vsel %vm4406_vm12, %v3277_v10, %v1963_v11  ;;  %v1965_v17 = vrot.slane %v1963_v11, 4  ;;  %v1504_v24 = vshll.u32 %v1388_v56, 16  ;;  %v1901_v11 = vld [vmem:[#allocation2 + $0x18] sm:$0xe]  ;;  %s5603_s6 = smov %s5602_s10 }
 0x174   : > { %v1329_v20 = vsel %vm4406_vm12, %v1327_v12, %v1328_v59  ;;  %v2325_v60 = vunpack.c.l.b16 %v1964_v16  ;;  %v1503_v21 = vrot.slane %v1501_v15, 4  ;;  %v1510_v27 = vshll.u32 %v4421_v63, 16 }
 0x175   : > { %v2062_v25 = vunpack.c.l.b16 %v1329_v20  ;;  %v1967_v26 = vsel %vm4406_vm12, %v1965_v17, %v1966_v14  ;;  %v1514_v19 = vshrl.u32 %v4421_v63, 16  ;;  %v1506_v28 = vrot.slane %v1504_v24, 5 }
 0x176   : > { %v2326_v23 = vunpack.c.l.b16 %v1967_v26  ;;  %v1520_v30 = vshll.u32 %v4423_v8, 16  ;;  %v1217_v36 = vshrl.u32 %v1079_v18, 16  ;;  %v1512_v38 = vrot.slane %v1510_v27, 5 }
 0x177   : > { %v2077_v37 = vpack.c.b16 %v2062_v25, %v2061_v41  ;;  %v1516_v39 = vrot.slane %v1514_v19, 4  ;;  %v1220_v42 = vshll.u32 %v1079_v18, 16  ;;  %v1507_v45 = vor.u32 %v1506_v28, %v1503_v21  ;;  %v4499_v21 = vld [vmem:[#allocation2 + $0x20] sm:$0x1]  ;;  %v1693_v19 = vld [vmem:[#allocation2 + $0x48] sm:$0xf] }
 0x178   : > { %v4483_v44 = vpack.c.b16 %v2326_v23, %v2325_v60  ;;  %v1522_v46 = vrot.slane %v1520_v30, 5  ;;  %v1219_v63 = vrot.slane %v1217_v36, 4  ;;  %v1226_v48 = vshll.u32 %v4478_v35, 16  ;;  %v4497_v60 = vld [vmem:[#allocation2 + $0x1c] sm:$0xf] }
 0x179   : > { %2221 = vrot.lane.b32.xlu1 %v2209_v61, %s3857_s0  ;;  %2085 = vrot.lane.b32.xlu2 %v2077_v37, %s3855_s1  ;;  %v1517_v47 = vor.u32 %v1516_v39, %v1512_v38  ;;  %v1222_v8 = vrot.slane %v1220_v42, 5  ;;  %v1230_v50 = vshrl.u32 %v4478_v35, 16  ;;  %v1508_v51 = vrot.slane %v1507_v45, 4 }
 0x17a   : > { %2133 = vrot.lane.b32.xlu0 %v3427_v22, %s3854_s16  ;;  %v1236_v52 = vshll.u32 %v4481_v34, 16  ;;  %v1405_v53 = vshrl.u32 %v1380_v43, 16  ;;  %v1408_v54 = vshll.u32 %v1380_v43, 16  ;;  %v1228_v57 = vrot.slane %v1226_v48, 5 }
 0x17b   : > { %v1518_v56 = vrot.slane %v1517_v47, 4  ;;  %v1223_v32 = vor.u32 %v1222_v8, %v1219_v63  ;;  %v1232_v58 = vrot.slane %v1230_v50, 4  ;;  %v1513_v59 = vsel %vm4427_vm15, %v1508_v51, %v1512_v38  ;;  %v1071_v47 = vld [vmem:[#allocation2 + $0xc] sm:$0xf] }
 0x17c   : > { %v1238_v61 = vrot.slane %v1236_v52, 5  ;;  %v1407_v62 = vrot.slane %v1405_v53, 4  ;;  %v1410_v10 = vrot.slane %v1408_v54, 5  ;;  %v2157_v14 = vunpack.c.l.b16 %v1513_v59 }
 0x17d   : > { %v1523_v12 = vsel %vm4427_vm15, %v1518_v56, %v1522_v46  ;;  %v1224_v15 = vrot.slane %v1223_v32, 4  ;;  %v1233_v41 = vor.u32 %v1232_v58, %v1228_v57  ;;  %v1414_v18 = vshll.u32 %v4431_v13, 16  ;;  %v3435_v32 = vld [vmem:[#allocation2 + $0x18] sm:$0xff] }
 0x17e   : > { %v2158_v16 = vunpack.c.l.b16 %v1523_v12  ;;  %v1411_v17 = vor.u32 %v1410_v10, %v1407_v62  ;;  %v1418_v20 = vshrl.u32 %v4431_v13, 16  ;;  %v1424_v26 = vshll.u32 %v4441_v29, 16  ;;  %v4531_v12 = vld [vmem:[#allocation2 + $0x14] sm:$0x1] }
 0x17f   : > { %v1229_v24 = vsel %vm4427_vm15, %v1224_v15, %v1228_v57  ;;  %v1234_v25 = vrot.slane %v1233_v41, 4  ;;  %v3273_v27 = vrot.slane %v1901_v11, 9  ;;  %v1416_v30 = vrot.slane %v1414_v18, 5 }
 0x180   : > { %v2169_v22 = vpack.c.b16 %v2158_v16, %v2157_v14  ;;  %v4504_v23 = vunpack.c.l.b16 %v1229_v24  ;;  %v1412_v28 = vrot.slane %v1411_v17, 4  ;;  %v1420_v36 = vrot.slane %v1418_v20, 4  ;;  %v1685_v17 = vld [vmem:[#allocation2 + $0x18] sm:$0xf] }
 0x181   : > { %2213 = vrot.lane.b32.xlu1 %v4468_v40, %s3857_s0  ;;  %v1239_v13 = vsel %vm4427_vm15, %v1234_v25, %v1238_v61  ;;  %v1426_v37 = vrot.slane %v1424_v26, 5  ;;  %v1935_v38 = vrot.slane %v4497_v60, 5  ;;  %v1938_v40 = vrot.slane %v4499_v21, 5  ;;  %v4527_v61 = vld [vmem:[#allocation2 + $0x10] sm:$0xf] }
 0x182   : > { %2269 = vrot.lane.b32.xlu0 %v3439_v33, %s3858_s30  ;;  %2181 = vrot.lane.b32.xlu2 %v2169_v22, %s3859_s12  ;;  %v4513_v29 = vunpack.c.l.b16 %v1239_v13  ;;  %v1417_v39 = vsel %vm4427_vm15, %v1412_v28, %v1416_v30  ;;  %v1806_v42 = vshrl.u32 %v1693_v19, 16  ;;  %v1421_v43 = vor.u32 %v1420_v36, %v1416_v30 }
 0x183   : > { %v2149_v45 = vunpack.c.l.b16 %v1417_v39  ;;  %v1936_v46 = vsel %vm4406_vm12, %v3273_v27, %v1935_v38  ;;  %v1937_v63 = vrot.slane %v1935_v38, 4  ;;  %v1809_v51 = vshll.u32 %v1693_v19, 16  ;;  %v1390_v38 = vld [vmem:[#allocation2 + $0x48] sm:$0xf] }
 0x184   : > { %v2042_v8 = vpack.c.b16 %v4513_v29, %v4504_v23  ;;  %v2317_v48 = vunpack.c.l.b16 %v1936_v46  ;;  %v1808_v50 = vrot.slane %v1806_v42, 4  ;;  %v1422_v52 = vrot.slane %v1421_v43, 4 }
 0x185   : > { %v1939_v53 = vsel %vm4406_vm12, %v1937_v63, %v1938_v40  ;;  %v1815_v54 = vshll.u32 %v4454_v49, 16  ;;  %v1819_v56 = vshrl.u32 %v4454_v49, 16  ;;  %v1811_v58 = vrot.slane %v1809_v51, 5  ;;  %v4549_v51 = vld [vmem:[#allocation2 + $0x4c] sm:$0xf] }
 0x186   : > { %v2318_v57 = vunpack.c.l.b16 %v1939_v53  ;;  %v1825_v59 = vshll.u32 %v4456_v55, 16  ;;  %v1121_v62 = vshrl.u32 %v1071_v47, 16  ;;  %v1427_v10 = vsel %vm4427_vm15, %v1422_v52, %v1426_v37 }
 0x187   : > { %v1817_v11 = vrot.slane %v1815_v54, 5  ;;  %v1821_v33 = vrot.slane %v1819_v56, 4  ;;  %v1124_v14 = vshll.u32 %v1071_v47, 16  ;;  %v2150_v15 = vunpack.c.l.b16 %v1427_v10 }
 0x188   : > { %v2333_v41 = vpack.c.b16 %v2318_v57, %v2317_v48  ;;  %v1812_v16 = vor.u32 %v1811_v58, %v1808_v50  ;;  %v1827_v49 = vrot.slane %v1825_v59, 5  ;;  %v1123_v18 = vrot.slane %v1121_v62, 4  ;;  %v4551_v57 = vld [vmem:[#allocation2 + $0x50] sm:$0x1] }
 0x189   : > { %2349 = vrot.lane.b32.xlu1 %v4483_v44, %s3860_s5  ;;  %v1822_v55 = vor.u32 %v1821_v33, %v1817_v11  ;;  %v1126_v20 = vrot.slane %v1124_v14, 5  ;;  %v1130_v24 = vshll.u32 %v4527_v61, 16  ;;  %v2165_v25 = vpack.c.b16 %v2150_v15, %v2149_v45 }
 0x18a   : > { %2261 = vrot.lane.b32.xlu0 %v3435_v32, %s3858_s30  ;;  %v1813_v26 = vrot.slane %v1812_v16, 4  ;;  %v1134_v27 = vshrl.u32 %v4527_v61, 16  ;;  %v1140_v19 = vshll.u32 %v4531_v12, 16  ;;  %v1710_v30 = vshrl.u32 %v1685_v17, 16 }
 0x18b   : > { %v1823_v22 = vrot.slane %v1822_v55, 4  ;;  %v1127_v23 = vor.u32 %v1126_v20, %v1123_v18  ;;  %v1132_v28 = vrot.slane %v1130_v24, 5  ;;  %2173 = vrot.lane.b32.xlu2 %v2165_v25, %s3859_s12  ;;  %v1713_v37 = vshll.u32 %v1685_v17, 16  ;;  %v1382_v20 = vld [vmem:[#allocation2 + $0x18] sm:$0xf]  ;;  %v3432_v24 = vld [vmem:[#allocation2 + $0x48] sm:$0xff] }
 0x18c   : > { %v1818_v44 = vsel %vm4427_vm15, %v1813_v26, %v1817_v11  ;;  %v1136_v13 = vrot.slane %v1134_v27, 4  ;;  %v1142_v36 = vrot.slane %v1140_v19, 5  ;;  %v1712_v42 = vrot.slane %v1710_v30, 4  ;;  %v1293_v11 = vld [vmem:[#allocation2 + $0x3c] sm:$0xe] }
 0x18d   : > { %v1828_v29 = vsel %vm4427_vm15, %v1823_v22, %v1827_v49  ;;  %v2285_v39 = vunpack.c.l.b16 %v1818_v44  ;;  %v1128_v40 = vrot.slane %v1127_v23, 4  ;;  %v1715_v46 = vrot.slane %v1713_v37, 5 }
 0x18e   : > { %v2286_v43 = vunpack.c.l.b16 %v1828_v29  ;;  %v1137_v45 = vor.u32 %v1136_v13, %v1132_v28  ;;  %v1719_v63 = vshll.u32 %v4497_v60, 16  ;;  %v1723_v48 = vshrl.u32 %v4497_v60, 16 }
 0x18f   : > { %v1133_v47 = vsel %vm4427_vm15, %v1128_v40, %v1132_v28  ;;  %v1729_v50 = vshll.u32 %v4499_v21, 16  ;;  %v1525_v52 = vshrl.u32 %v1390_v38, 16  ;;  %v1716_v32 = vor.u32 %v1715_v46, %v1712_v42 }
 0x190   : > { %v2297_v53 = vpack.c.b16 %v2286_v43, %v2285_v39  ;;  %v1138_v54 = vrot.slane %v1137_v45, 4  ;;  %v2023_v56 = vunpack.c.l.b16 %v1133_v47  ;;  %v1721_v58 = vrot.slane %v1719_v63, 5  ;;  %v4572_v45 = vld [vmem:[#allocation2 + $0x20] sm:$0x1] }
 0x191   : > { %2055 = vrot.lane.b32.xlu1 %v2042_v8, %s3856_s18  ;;  %v1725_v59 = vrot.slane %v1723_v48, 4  ;;  %v1731_v62 = vrot.slane %v1729_v50, 5  ;;  %v1527_v10 = vrot.slane %v1525_v52, 4  ;;  %v1717_v21 = vrot.slane %v1716_v32, 4  ;;  %v1289_v52 = vld [vmem:[#allocation2 + $0xc] sm:$0xe] }
 0x192   : > { %2341 = vrot.lane.b32.xlu0 %v2333_v41, %s3860_s5  ;;  %v1143_v60 = vsel %vm4427_vm15, %v1138_v54, %v1142_v36  ;;  %v1528_v33 = vshll.u32 %v1390_v38, 16  ;;  %v1534_v14 = vshll.u32 %v4549_v51, 16  ;;  %v1538_v49 = vshrl.u32 %v4549_v51, 16  ;;  %v4567_v36 = vld [vmem:[#allocation2 + $0x1c] sm:$0xf] }
 0x193   : > { %v2024_v15 = vunpack.c.l.b16 %v1143_v60  ;;  %v1726_v16 = vor.u32 %v1725_v59, %v1721_v58  ;;  %v1544_v8 = vshll.u32 %v4551_v57, 16  ;;  %2309 = vrot.lane.b32.xlu2 %v2297_v53, %s3861_s13  ;;  %v1722_v17 = vsel %vm4427_vm15, %v1717_v21, %v1721_v58  ;;  %v3428_v60 = vld [vmem:[#allocation2 + $0x18] sm:$0xff] }
 0x194   : > { %v1530_v41 = vrot.slane %v1528_v33, 5  ;;  %v1536_v55 = vrot.slane %v1534_v14, 5  ;;  %v3262_v18 = vrot.slane %v1293_v11, 9  ;;  %v2277_v27 = vunpack.c.l.b16 %v1722_v17  ;;  %v1695_v11 = vld [vmem:[#allocation2 + $0x54] sm:$0xf] }
 0x195   : > { %v2038_v25 = vpack.c.b16 %v2024_v15, %v2023_v56  ;;  %v1727_v26 = vrot.slane %v1726_v16, 4  ;;  %v1540_v19 = vrot.slane %v1538_v49, 4  ;;  %v1546_v23 = vrot.slane %v1544_v8, 5 }
 0x196   : > { %v1531_v22 = vor.u32 %v1530_v41, %v1527_v10  ;;  %v1360_v28 = vrot.slane %v4478_v35, 5  ;;  %v1363_v30 = vrot.slane %v4481_v34, 5  ;;  %v1429_v37 = vshrl.u32 %v1382_v20, 16  ;;  %v4587_v41 = vld [vmem:[#allocation2 + $0x58] sm:$0xf] }
 0x197   : > { %v1732_v44 = vsel %vm4427_vm15, %v1727_v26, %v1731_v62  ;;  %v1541_v13 = vor.u32 %v1540_v19, %v1536_v55  ;;  %v1432_v38 = vshll.u32 %v1382_v20, 16  ;;  %v1438_v50 = vshll.u32 %v4567_v36, 16 }
 0x198   : > { %v2278_v29 = vunpack.c.l.b16 %v1732_v44  ;;  %v1532_v39 = vrot.slane %v1531_v22, 4  ;;  %v1361_v40 = vsel %vm4406_vm12, %v3262_v18, %v1360_v28  ;;  %v1362_v42 = vrot.slane %v1360_v28, 4  ;;  %v4595_v22 = vld [vmem:[#allocation2 + $0x28] sm:$0xf] }
 0x199   : > { %2143 = vrot.lane.b32.xlu1 %v3432_v24, %s3854_s16  ;;  %v1542_v43 = vrot.slane %v1541_v13, 4  ;;  %v2071_v35 = vunpack.c.l.b16 %v1361_v40  ;;  %v1431_v34 = vrot.slane %v1429_v37, 4  ;;  %v1434_v46 = vrot.slane %v1432_v38, 5  ;;  %v4593_v24 = vld [vmem:[#allocation2 + $0x5c] sm:$0x1] }
 0x19a   : > { %2047 = vrot.lane.b32.xlu0 %v2038_v25, %s3856_s18  ;;  %v2293_v63 = vpack.c.b16 %v2278_v29, %v2277_v27  ;;  %v1537_v47 = vsel %vm4427_vm15, %v1532_v39, %v1536_v55  ;;  %v1364_v48 = vsel %vm4406_vm12, %v1362_v42, %v1363_v30  ;;  %v1440_v59 = vrot.slane %v1438_v50, 5  ;;  %v1702_v39 = vld [vmem:[#allocation2 + $0x2c] sm:$0x1]  ;;  %v3440_v50 = vld [vmem:[#allocation2 + $0x54] sm:$0xff] }
 0x19b   : > { %v1547_v53 = vsel %vm4427_vm15, %v1542_v43, %v1546_v23  ;;  %v2159_v54 = vunpack.c.l.b16 %v1537_v47  ;;  %v2072_v56 = vunpack.c.l.b16 %v1364_v48  ;;  %v1435_v32 = vor.u32 %v1434_v46, %v1431_v34  ;;  %v1902_v23 = vld [vmem:[#allocation2 + $0x24] sm:$0xe]  ;;  %v1601_v34 = vld [vmem:[#allocation2 + $0x48] sm:$0xe] }
 0x19c   : > { %2301 = vrot.lane.b32.xlu2 %v2293_v63, %s3861_s13  ;;  %v2160_v58 = vunpack.c.l.b16 %v1547_v53  ;;  %v1442_v62 = vshrl.u32 %v4567_v36, 16  ;;  %v1448_v10 = vshll.u32 %v4572_v45, 16  ;;  %v3258_v14 = vrot.slane %v1289_v52, 9 }
 0x19d   : > { %v2082_v21 = vpack.c.b16 %v2072_v56, %v2071_v35  ;;  %v1436_v33 = vrot.slane %v1435_v32, 4  ;;  %v1332_v15 = vrot.slane %v4527_v61, 5  ;;  %v1335_v17 = vrot.slane %v4531_v12, 5  ;;  %v1687_v32 = vld [vmem:[#allocation2 + $0x24] sm:$0xf] }
 0x19e   : > { %v2170_v16 = vpack.c.b16 %v2160_v58, %v2159_v54  ;;  %v1444_v49 = vrot.slane %v1442_v62, 4  ;;  %v1450_v8 = vrot.slane %v1448_v10, 5  ;;  %v1830_v25 = vshrl.u32 %v1695_v11, 16 }
 0x19f   : > { %v1441_v55 = vsel %vm4427_vm15, %v1436_v33, %v1440_v59  ;;  %v1333_v18 = vsel %vm4406_vm12, %v3258_v14, %v1332_v15  ;;  %v1334_v20 = vrot.slane %v1332_v15, 4  ;;  %v1833_v19 = vshll.u32 %v1695_v11, 16 }
 0x1a0   : > { %v1445_v26 = vor.u32 %v1444_v49, %v1440_v59  ;;  %v2151_v27 = vunpack.c.l.b16 %v1441_v55  ;;  %v2063_v61 = vunpack.c.l.b16 %v1333_v18  ;;  %v1832_v28 = vrot.slane %v1830_v25, 4  ;;  %v1073_v18 = vld [vmem:[#allocation2 + $0x18] sm:$0xf] }
 0x1a1   : > { %2135 = vrot.lane.b32.xlu1 %v3428_v60, %s3854_s16  ;;  %v1336_v12 = vsel %vm4406_vm12, %v1334_v20, %v1335_v17  ;;  %v1839_v30 = vshll.u32 %v4587_v41, 16  ;;  %v1843_v44 = vshrl.u32 %v4587_v41, 16  ;;  %v1835_v38 = vrot.slane %v1833_v19, 5 }
 0x1a2   : > { %2183 = vrot.lane.b32.xlu0 %v2170_v16, %s3859_s12  ;;  %v1446_v13 = vrot.slane %v1445_v26, 4  ;;  %v2064_v37 = vunpack.c.l.b16 %v1336_v12  ;;  %v1849_v29 = vshll.u32 %v4593_v24, 16  ;;  %v3274_v43 = vrot.slane %v1902_v23, 9  ;;  %v4626_v12 = vld [vmem:[#allocation2 + $0x1c] sm:$0xf] }
 0x1a3   : > { %v1841_v40 = vrot.slane %v1839_v30, 5  ;;  %v1845_v42 = vrot.slane %v1843_v44, 4  ;;  %v1942_v35 = vrot.slane %v4595_v22, 5  ;;  %v1836_v47 = vor.u32 %v1835_v38, %v1832_v28  ;;  %v3436_v28 = vld [vmem:[#allocation2 + $0x24] sm:$0xff] }
 0x1a4   : > { %2095 = vrot.lane.b32.xlu2 %v2082_v21, %s3855_s1  ;;  %v1451_v46 = vsel %vm4427_vm15, %v1446_v13, %v1450_v8  ;;  %v2078_v63 = vpack.c.b16 %v2064_v37, %v2063_v61  ;;  %v1851_v48 = vrot.slane %v1849_v29, 5  ;;  %v1945_v59 = vrot.slane %v1702_v39, 5 }
 0x1a5   : > { %v2152_v52 = vunpack.c.l.b16 %v1451_v46  ;;  %v1846_v53 = vor.u32 %v1845_v42, %v1841_v40  ;;  %v1943_v54 = vsel %vm4406_vm12, %v3274_v43, %v1942_v35  ;;  %v1944_v56 = vrot.slane %v1942_v35, 4  ;;  %v4631_v43 = vld [vmem:[#allocation2 + $0x20] sm:$0x1]  ;;  %v1597_v35 = vld [vmem:[#allocation2 + $0x18] sm:$0xe] }
 0x1a6   : > { %v1837_v58 = vrot.slane %v1836_v47, 4  ;;  %v2319_v62 = vunpack.c.l.b16 %v1943_v54  ;;  %v3270_v10 = vrot.slane %v1601_v34, 9  ;;  %v1665_v21 = vrot.slane %v4549_v51, 5 }
 0x1a7   : > { %v2166_v11 = vpack.c.b16 %v2152_v52, %v2151_v27  ;;  %v1847_v60 = vrot.slane %v1846_v53, 4  ;;  %v1668_v33 = vrot.slane %v4551_v57, 5  ;;  %v1946_v15 = vsel %vm4406_vm12, %v1944_v56, %v1945_v59 }
 0x1a8   : > { %v1842_v14 = vsel %vm4427_vm15, %v1837_v58, %v1841_v40  ;;  %v1734_v16 = vshrl.u32 %v1687_v32, 16  ;;  %v1737_v49 = vshll.u32 %v1687_v32, 16  ;;  %v2320_v55 = vunpack.c.l.b16 %v1946_v15  ;;  %v4644_v15 = vld [vmem:[#allocation2 + $0x50] sm:$0x1] }
 0x1a9   : > { %2271 = vrot.lane.b32.xlu1 %v3440_v50, %s3858_s30  ;;  %v1852_v8 = vsel %vm4427_vm15, %v1847_v60, %v1851_v48  ;;  %v2287_v17 = vunpack.c.l.b16 %v1842_v14  ;;  %v1666_v51 = vsel %vm4406_vm12, %v3270_v10, %v1665_v21  ;;  %v1667_v20 = vrot.slane %v1665_v21, 4  ;;  %v1294_v10 = vld [vmem:[#allocation2 + $0x48] sm:$0xe]  ;;  %v4642_v14 = vld [vmem:[#allocation2 + $0x4c] sm:$0xf] }
 0x1aa   : > { %2175 = vrot.lane.b32.xlu0 %v2166_v11, %s3859_s12  ;;  %v2288_v57 = vunpack.c.l.b16 %v1852_v8  ;;  %v2199_v25 = vunpack.c.l.b16 %v1666_v51  ;;  %v1736_v26 = vrot.slane %v1734_v16, 4  ;;  %v4622_v27 = vpack.c.b16 %v2320_v55, %v2319_v62 }
 0x1ab   : > { %v1739_v61 = vrot.slane %v1737_v49, 5  ;;  %v1743_v19 = vshll.u32 %v4595_v22, 16  ;;  %v1747_v23 = vshrl.u32 %v4595_v22, 16  ;;  %v1669_v44 = vsel %vm4406_vm12, %v1667_v20, %v1668_v33 }
 0x1ac   : > { %2087 = vrot.lane.b32.xlu2 %v2078_v63, %s3855_s1  ;;  %v2298_v30 = vpack.c.b16 %v2288_v57, %v2287_v17  ;;  %v1753_v13 = vshll.u32 %v1702_v39, 16  ;;  %v1145_v37 = vshrl.u32 %v1073_v18, 16  ;;  %v2200_v38 = vunpack.c.l.b16 %v1669_v44  ;;  %v1392_v17 = vld [vmem:[#allocation2 + $0x54] sm:$0xf] }
 0x1ad   : > { %v1740_v29 = vor.u32 %v1739_v61, %v1736_v26  ;;  %v1745_v40 = vrot.slane %v1743_v19, 5  ;;  %v1749_v42 = vrot.slane %v1747_v23, 4  ;;  %v1148_v46 = vshll.u32 %v1073_v18, 16 }
 0x1ae   : > { %v1755_v34 = vrot.slane %v1753_v13, 5  ;;  %v1147_v22 = vrot.slane %v1145_v37, 4  ;;  %v1154_v47 = vshll.u32 %v4626_v12, 16  ;;  %v2210_v48 = vpack.c.b16 %v2200_v38, %v2199_v25 }
 0x1af   : > { %v1741_v63 = vrot.slane %v1740_v29, 4  ;;  %v1750_v50 = vor.u32 %v1749_v42, %v1745_v40  ;;  %v1158_v52 = vshrl.u32 %v4626_v12, 16  ;;  %v1150_v53 = vrot.slane %v1148_v46, 5  ;;  %v4663_v29 = vld [vmem:[#allocation2 + $0x5c] sm:$0x1] }
 0x1b0   : > { %v1156_v39 = vrot.slane %v1154_v47, 5  ;;  %v1164_v54 = vshll.u32 %v4631_v43, 16  ;;  %v3266_v56 = vrot.slane %v1597_v35, 9  ;;  %v1637_v62 = vrot.slane %v4567_v36, 5 }
 0x1b1   : > { %2263 = vrot.lane.b32.xlu1 %v3436_v28, %s3858_s30  ;;  %v1746_v32 = vsel %vm4427_vm15, %v1741_v63, %v1745_v40  ;;  %v1751_v58 = vrot.slane %v1750_v50, 4  ;;  %v1160_v59 = vrot.slane %v1158_v52, 4  ;;  %v1151_v60 = vor.u32 %v1150_v53, %v1147_v22  ;;  %v4657_v28 = vld [vmem:[#allocation2 + $0x58] sm:$0xf]  ;;  %v1906_v40 = vld [vmem:[#allocation2 + $0x54] sm:$0xe] }
 0x1b2   : > { %2311 = vrot.lane.b32.xlu0 %v2298_v30, %s3861_s13  ;;  %v2279_v11 = vunpack.c.l.b16 %v1746_v32  ;;  %v1166_v21 = vrot.slane %v1164_v54, 5  ;;  %v1640_v33 = vrot.slane %v4572_v45, 5  ;;  %v1638_v8 = vsel %vm4406_vm12, %v3266_v56, %v1637_v62  ;;  %v1290_v50 = vld [vmem:[#allocation2 + $0x18] sm:$0xe] }
 0x1b3   : > { %v1756_v16 = vsel %vm4427_vm15, %v1751_v58, %v1755_v34  ;;  %v1161_v49 = vor.u32 %v1160_v59, %v1156_v39  ;;  %v1639_v36 = vrot.slane %v1637_v62, 4  ;;  %v1152_v51 = vrot.slane %v1151_v60, 4  ;;  %v1384_v59 = vld [vmem:[#allocation2 + $0x24] sm:$0xf] }
 0x1b4   : > { %2223 = vrot.lane.b32.xlu2 %v2210_v48, %s3857_s0  ;;  %v2280_v55 = vunpack.c.l.b16 %v1756_v16  ;;  %v2191_v18 = vunpack.c.l.b16 %v1638_v8  ;;  %v3263_v57 = vrot.slane %v1294_v10, 9  ;;  %v1367_v25 = vrot.slane %v4642_v14, 5 }
 0x1b5   : > { %v1162_v45 = vrot.slane %v1161_v49, 4  ;;  %v1641_v20 = vsel %vm4406_vm12, %v1639_v36, %v1640_v33  ;;  %v1370_v26 = vrot.slane %v4644_v15, 5  ;;  %v1157_v19 = vsel %vm4427_vm15, %v1152_v51, %v1156_v39 }
 0x1b6   : > { %v2294_v61 = vpack.c.b16 %v2280_v55, %v2279_v11  ;;  %v2192_v23 = vunpack.c.l.b16 %v1641_v20  ;;  %v1549_v30 = vshrl.u32 %v1392_v17, 16  ;;  %v2025_v13 = vunpack.c.l.b16 %v1157_v19  ;;  %v4691_v19 = vld [vmem:[#allocation2 + $0x2c] sm:$0x1] }
 0x1b7   : > { %v1167_v44 = vsel %vm4427_vm15, %v1162_v45, %v1166_v21  ;;  %v1368_v37 = vsel %vm4406_vm12, %v3263_v57, %v1367_v25  ;;  %v1369_v38 = vrot.slane %v1367_v25, 4  ;;  %v1552_v47 = vshll.u32 %v1392_v17, 16  ;;  %v4684_v25 = vld [vmem:[#allocation2 + $0x28] sm:$0xf] }
 0x1b8   : > { %v2026_v42 = vunpack.c.l.b16 %v1167_v44  ;;  %v2206_v35 = vpack.c.b16 %v2192_v23, %v2191_v18  ;;  %v2073_v34 = vunpack.c.l.b16 %v1368_v37  ;;  %v1551_v22 = vrot.slane %v1549_v30, 4  ;;  %v1081_v30 = vld [vmem:[#allocation2 + $0x48] sm:$0xf] }
 0x1b9   : > { %2343 = vrot.lane.b32.xlu1 %v4622_v27, %s3860_s5  ;;  %v1371_v46 = vsel %vm4406_vm12, %v1369_v38, %v1370_v26  ;;  %v1558_v48 = vshll.u32 %v4657_v28, 16  ;;  %v1562_v63 = vshrl.u32 %v4657_v28, 16  ;;  %v1568_v39 = vshll.u32 %v4663_v29, 16 }
 0x1ba   : > { %2303 = vrot.lane.b32.xlu0 %v2294_v61, %s3861_s13  ;;  %v2039_v52 = vpack.c.b16 %v2026_v42, %v2025_v13  ;;  %v2074_v53 = vunpack.c.l.b16 %v1371_v46  ;;  %v3278_v54 = vrot.slane %v1906_v40, 9  ;;  %v1554_v56 = vrot.slane %v1552_v47, 5 }
 0x1bb   : > { %v1560_v32 = vrot.slane %v1558_v48, 5  ;;  %v1564_v58 = vrot.slane %v1562_v63, 4  ;;  %v1970_v27 = vrot.slane %v4587_v41, 5  ;;  %v1570_v10 = vrot.slane %v1568_v39, 5  ;;  %v1602_v39 = vld [vmem:[#allocation2 + $0x54] sm:$0xe] }
 0x1bc   : > { %2215 = vrot.lane.b32.xlu2 %v2206_v35, %s3857_s0  ;;  %v2083_v62 = vpack.c.b16 %v2074_v53, %v2073_v34  ;;  %v1973_v11 = vrot.slane %v4593_v24, 5  ;;  %v3259_v60 = vrot.slane %v1290_v50, 9  ;;  %v1555_v21 = vor.u32 %v1554_v56, %v1551_v22 }
 0x1bd   : > { %v1565_v33 = vor.u32 %v1564_v58, %v1560_v32  ;;  %v1971_v16 = vsel %vm4406_vm12, %v3278_v54, %v1970_v27  ;;  %v1972_v49 = vrot.slane %v1970_v27, 4  ;;  %v1339_v36 = vrot.slane %v4626_v12, 5 }
 0x1be   : > { %v2327_v8 = vunpack.c.l.b16 %v1971_v16  ;;  %v1342_v17 = vrot.slane %v4631_v43, 5  ;;  %v1453_v41 = vshrl.u32 %v1384_v59, 16  ;;  %v1556_v55 = vrot.slane %v1555_v21, 4 }
 0x1bf   : > { %v1566_v51 = vrot.slane %v1565_v33, 4  ;;  %v1974_v18 = vsel %vm4406_vm12, %v1972_v49, %v1973_v11  ;;  %v1456_v57 = vshll.u32 %v1384_v59, 16  ;;  %v1340_v45 = vsel %vm4406_vm12, %v3259_v60, %v1339_v36  ;;  %v1697_v11 = vld [vmem:[#allocation2 + $0x60] sm:$0xf] }
 0x1c0   : > { %v2328_v24 = vunpack.c.l.b16 %v1974_v18  ;;  %v1341_v20 = vrot.slane %v1339_v36, 4  ;;  %v1455_v26 = vrot.slane %v1453_v41, 4  ;;  %v1561_v12 = vsel %vm4427_vm15, %v1556_v55, %v1560_v32 }
 0x1c1   : > { %2049 = vrot.lane.b32.xlu1 %v2039_v52, %s3856_s18  ;;  %v1571_v43 = vsel %vm4427_vm15, %v1566_v51, %v1570_v10  ;;  %v2065_v61 = vunpack.c.l.b16 %v1340_v45  ;;  %v1458_v23 = vrot.slane %v1456_v57, 5  ;;  %v2161_v44 = vunpack.c.l.b16 %v1561_v12  ;;  %v4713_v45 = vld [vmem:[#allocation2 + $0x64] sm:$0xf]  ;;  %v4717_v12 = vld [vmem:[#allocation2 + $0x68] sm:$0x1] }
 0x1c2   : > { %2097 = vrot.lane.b32.xlu0 %v2083_v62, %s3855_s1  ;;  %v2162_v13 = vunpack.c.l.b16 %v1571_v43  ;;  %v2338_v37 = vpack.c.b16 %v2328_v24, %v2327_v8  ;;  %v1343_v38 = vsel %vm4406_vm12, %v1341_v20, %v1342_v17  ;;  %v1462_v35 = vshll.u32 %v4684_v25, 16  ;;  %v1598_v43 = vld [vmem:[#allocation2 + $0x24] sm:$0xe] }
 0x1c3   : > { %v2066_v40 = vunpack.c.l.b16 %v1343_v38  ;;  %v1459_v42 = vor.u32 %v1458_v23, %v1455_v26  ;;  %v1466_v34 = vshrl.u32 %v4684_v25, 16  ;;  %v1472_v46 = vshll.u32 %v4691_v19, 16 }
 0x1c4   : > { %v2171_v22 = vpack.c.b16 %v2162_v13, %v2161_v44  ;;  %2351 = vrot.lane.b32.xlu2 %v2338_v37, %s3860_s5  ;;  %v1241_v47 = vshrl.u32 %v1081_v30, 16  ;;  %v1244_v48 = vshll.u32 %v1081_v30, 16  ;;  %v1464_v52 = vrot.slane %v1462_v35, 5 }
 0x1c5   : > { %v2079_v63 = vpack.c.b16 %v2066_v40, %v2065_v61  ;;  %v1460_v50 = vrot.slane %v1459_v42, 4  ;;  %v1468_v53 = vrot.slane %v1466_v34, 4  ;;  %v1474_v54 = vrot.slane %v1472_v46, 5  ;;  %v1689_v46 = vld [vmem:[#allocation2 + $0x30] sm:$0xf] }
 0x1c6   : > { %v1243_v56 = vrot.slane %v1241_v47, 4  ;;  %v1246_v32 = vrot.slane %v1244_v48, 5  ;;  %v1250_v58 = vshll.u32 %v4642_v14, 16  ;;  %v1254_v62 = vshrl.u32 %v4642_v14, 16 }
 0x1c7   : > { %v1465_v27 = vsel %vm4427_vm15, %v1460_v50, %v1464_v52  ;;  %v1469_v59 = vor.u32 %v1468_v53, %v1464_v52  ;;  %v1260_v10 = vshll.u32 %v4644_v15, 16  ;;  %v3271_v16 = vrot.slane %v1602_v39, 9  ;;  %v4726_v52 = vld [vmem:[#allocation2 + $0x34] sm:$0xf] }
 0x1c8   : > { %v2153_v60 = vunpack.c.l.b16 %v1465_v27  ;;  %v1247_v21 = vor.u32 %v1246_v32, %v1243_v56  ;;  %v1252_v33 = vrot.slane %v1250_v58, 5  ;;  %v1256_v8 = vrot.slane %v1254_v62, 4 }
 0x1c9   : > { %2185 = vrot.lane.b32.xlu1 %v2171_v22, %s3859_s12  ;;  %v1470_v49 = vrot.slane %v1469_v59, 4  ;;  %v1262_v36 = vrot.slane %v1260_v10, 5  ;;  %v1672_v17 = vrot.slane %v4657_v28, 5  ;;  %v1675_v55 = vrot.slane %v4663_v29, 5 }
 0x1ca   : > { %2089 = vrot.lane.b32.xlu0 %v2079_v63, %s3855_s1  ;;  %v1248_v41 = vrot.slane %v1247_v21, 4  ;;  %v1854_v14 = vshrl.u32 %v1697_v11, 16  ;;  %v1857_v51 = vshll.u32 %v1697_v11, 16  ;;  %v1257_v18 = vor.u32 %v1256_v8, %v1252_v33  ;;  %v4738_v21 = vld [vmem:[#allocation2 + $0x38] sm:$0x1] }
 0x1cb   : > { %v1475_v15 = vsel %vm4427_vm15, %v1470_v49, %v1474_v54  ;;  %v1673_v57 = vsel %vm4406_vm12, %v3271_v16, %v1672_v17  ;;  %v1674_v24 = vrot.slane %v1672_v17, 4  ;;  %v1863_v38 = vshll.u32 %v4713_v45, 16  ;;  %v1907_v8 = vld [vmem:[#allocation2 + $0x60] sm:$0xe] }
 0x1cc   : > { %v2154_v20 = vunpack.c.l.b16 %v1475_v15  ;;  %v1253_v28 = vsel %vm4427_vm15, %v1248_v41, %v1252_v33  ;;  %v2201_v26 = vunpack.c.l.b16 %v1673_v57  ;;  %v1856_v29 = vrot.slane %v1854_v14, 4 }
 0x1cd   : > { %v1258_v61 = vrot.slane %v1257_v18, 4  ;;  %v2033_v23 = vunpack.c.l.b16 %v1253_v28  ;;  %v1676_v30 = vsel %vm4406_vm12, %v1674_v24, %v1675_v55  ;;  %v1859_v44 = vrot.slane %v1857_v51, 5  ;;  %v1084_v28 = vld [vmem:[#allocation2 + $0x58] sm:$0xf] }
 0x1ce   : > { %v2167_v13 = vpack.c.b16 %v2154_v20, %v2153_v60  ;;  %v2202_v37 = vunpack.c.l.b16 %v1676_v30  ;;  %v1867_v40 = vshrl.u32 %v4713_v45, 16  ;;  %v1873_v34 = vshll.u32 %v4717_v12, 16  ;;  %v4750_v30 = vld [vmem:[#allocation2 + $0x5c] sm:$0x1] }
 0x1cf   : > { %v1263_v42 = vsel %vm4427_vm15, %v1258_v61, %v1262_v36  ;;  %v1860_v35 = vor.u32 %v1859_v44, %v1856_v29  ;;  %v3267_v22 = vrot.slane %v1598_v43, 9  ;;  %v1865_v63 = vrot.slane %v1863_v38, 5  ;;  %v3433_v29 = vld [vmem:[#allocation2 + $0x54] sm:$0xff] }
 0x1d0   : > { %v2034_v47 = vunpack.c.l.b16 %v1263_v42  ;;  %v2211_v48 = vpack.c.b16 %v2202_v37, %v2201_v26  ;;  %v1869_v50 = vrot.slane %v1867_v40, 4  ;;  %v1875_v39 = vrot.slane %v1873_v34, 5  ;;  %v1295_v26 = vld [vmem:[#allocation2 + $0x54] sm:$0xe] }
 0x1d1   : > { %2177 = vrot.lane.b32.xlu1 %v2167_v13, %s3859_s12  ;;  %v1861_v53 = vrot.slane %v1860_v35, 4  ;;  %v1644_v54 = vrot.slane %v4684_v25, 5  ;;  %v1647_v56 = vrot.slane %v4691_v19, 5  ;;  %v1758_v27 = vshrl.u32 %v1689_v46, 16 }
 0x1d2   : > { %v2043_v32 = vpack.c.b16 %v2034_v47, %v2033_v23  ;;  %2225 = vrot.lane.b32.xlu0 %v2211_v48, %s3857_s0  ;;  %v1870_v58 = vor.u32 %v1869_v50, %v1865_v63  ;;  %v1761_v59 = vshll.u32 %v1689_v46, 16  ;;  %v1767_v25 = vshll.u32 %v4726_v52, 16  ;;  %v4752_v13 = vpop.permute.xlu1 %2141 }
 0x1d3   : > { %v1866_v62 = vsel %vm4427_vm15, %v1861_v53, %v1865_v63  ;;  %v4734_v10 = vpop.permute.xlu2 %2085  ;;  %v1645_v11 = vsel %vm4406_vm12, %v3267_v22, %v1644_v54  ;;  %v1646_v60 = vrot.slane %v1644_v54, 4  ;;  %v1760_v49 = vrot.slane %v1758_v27, 4  ;;  %v1083_v27 = vld [vmem:[#allocation2 + $0x54] sm:$0xf] }
 0x1d4   : > { %2057 = vrot.lane.b32.xlu2 %v2043_v32, %s3856_s18  ;;  %v1871_v19 = vrot.slane %v1870_v58, 4  ;;  %v2289_v33 = vunpack.c.l.b16 %v1866_v62  ;;  %v2193_v16 = vunpack.c.l.b16 %v1645_v11  ;;  %v1763_v17 = vrot.slane %v1761_v59, 5 }
 0x1d5   : > { %v1648_v36 = vsel %vm4406_vm12, %v1646_v60, %v1647_v56  ;;  %v1769_v41 = vrot.slane %v1767_v25, 5  ;;  %v1771_v55 = vshrl.u32 %v4726_v52, 16  ;;  %v1777_v15 = vshll.u32 %v4738_v21, 16 }
 0x1d6   : > { %v1876_v14 = vsel %vm4427_vm15, %v1871_v19, %v1875_v39  ;;  %v2194_v51 = vunpack.c.l.b16 %v1648_v36  ;;  %v1764_v57 = vor.u32 %v1763_v17, %v1760_v49  ;;  %v3279_v20 = vrot.slane %v1907_v8, 9  ;;  %v4777_v19 = vld [vmem:[#allocation2 + $0x28] sm:$0xf]  ;;  %v4779_v17 = vld [vmem:[#allocation2 + $0x2c] sm:$0x1] }
 0x1d7   : > { %v2290_v18 = vunpack.c.l.b16 %v1876_v14  ;;  %v1773_v24 = vrot.slane %v1771_v55, 4  ;;  %v1977_v61 = vrot.slane %v4713_v45, 5  ;;  %v1980_v23 = vrot.slane %v4717_v12, 5  ;;  %v2508_v12 = vld [vmem:[%s5602_s10 + $0x20] sm:$0xf] }
 0x1d8   : > { %v2207_v43 = vpack.c.b16 %v2194_v51, %v2193_v16  ;;  %v1765_v37 = vrot.slane %v1764_v57, 4  ;;  %v1779_v40 = vrot.slane %v1777_v15, 5  ;;  %v3264_v22 = vrot.slane %v1295_v26, 9  ;;  %v3429_v16 = vld [vmem:[#allocation2 + $0x24] sm:$0xff] }
 0x1d9   : > { %v2299_v44 = vpack.c.b16 %v2290_v18, %v2289_v33  ;;  %v1774_v38 = vor.u32 %v1773_v24, %v1769_v41  ;;  %v1978_v35 = vsel %vm4406_vm12, %v3279_v20, %v1977_v61  ;;  %v1979_v34 = vrot.slane %v1977_v61, 4  ;;  %v1291_v15 = vld [vmem:[#allocation2 + $0x24] sm:$0xe]  ;;  %v3446_v20 = vld [vmem:[%s5603_s6 + $0x18] sm:$0xff] }
 0x1da   : > { %2217 = vrot.lane.b32.xlu0 %v2207_v43, %s3857_s0  ;;  %v4755_v42 = vpop.permute.xlu0 %2093  ;;  %v1374_v45 = vrot.slane %v1084_v28, 5  ;;  %v1770_v46 = vsel %vm4427_vm15, %v1765_v37, %v1769_v41  ;;  %v2329_v48 = vunpack.c.l.b16 %v1978_v35  ;;  %v1377_v63 = vrot.slane %v4750_v30, 5  ;;  %v3423_v41 = vld [vmem:[#allocation2 + $0x30] sm:$0xff]  ;;  %v3419_v35 = vld [vmem:[#allocation2] sm:$0xff] }
 0x1db   : > { %2313 = vrot.lane.b32.xlu1 %v2299_v44, %s3861_s13  ;;  %v1775_v47 = vrot.slane %v1774_v38, 4  ;;  %v2281_v50 = vunpack.c.l.b16 %v1770_v46  ;;  %v1981_v39 = vsel %vm4406_vm12, %v1979_v34, %v1980_v23  ;;  %v2526_v58 = vunpack.c.l.b16 %v2508_v12  ;;  %v4788_v23 = vld [vmem:[#allocation2 + $0x64] sm:$0xf] }
 0x1dc   : > { %2145 = vrot.lane.b32.xlu2 %v3433_v29, %s3854_s16  ;;  %v4767_v53 = vpop.permute.xlu2 %2181  ;;  %v1376_v54 = vrot.slane %v1374_v45, 4  ;;  %v2330_v32 = vunpack.c.l.b16 %v1981_v39  ;;  %vm2553_vm1 = vcmask 1043456   ;;  %v1375_v11 = vsel %vm4406_vm12, %v3264_v22, %v1374_v45 }
 0x1dd   : > { %v1780_v56 = vsel %vm4427_vm15, %v1775_v47, %v1779_v40  ;;  %v2531_v25 = vpack.c.b16 %v2526_v58, %v2526_v58  ;;  %v1265_v49 = vshrl.u32 %v1083_v27, 16  ;;  %v1268_v8 = vshll.u32 %v1083_v27, 16  ;;  %v1603_v40 = vld [vmem:[#allocation2 + $0x60] sm:$0xe] }
 0x1de   : > { %v2282_v59 = vunpack.c.l.b16 %v1780_v56  ;;  %v2339_v62 = vpack.c.b16 %v2330_v32, %v2329_v48  ;;  %v1378_v60 = vsel %vm4406_vm12, %v1376_v54, %v1377_v63  ;;  %v1274_v36 = vshll.u32 %v1084_v28, 16  ;;  %v3445_v63 = vld [vmem:[%s5603_s6 + $0x10] sm:$0xff]  ;;  %v3441_v58 = vld [vmem:[#allocation2 + $0x60] sm:$0xff] }
 0x1df   : > { %v2555_v55 = vsel %vm2553_vm1, %v2531_v25, 0  ;;  %v1278_v14 = vshrl.u32 %v1084_v28, 16  ;;  %v1284_v51 = vshll.u32 %v4750_v30, 16  ;;  %v1267_v18 = vrot.slane %v1265_v49, 4 }
 0x1e0   : > { %v2295_v33 = vpack.c.b16 %v2282_v59, %v2281_v50  ;;  %3448 = vmatpush.bf16.msra.mxu3 %v2555_v55  ;;  %v1270_v57 = vrot.slane %v1268_v8, 5  ;;  %v1276_v24 = vrot.slane %v1274_v36, 5  ;;  %v2075_v29 = vunpack.c.l.b16 %v1375_v11  ;;  %2560 = vmatpush.bf16.msra.mxu1 %v2555_v55  ;;  %v4800_v50 = vld [vmem:[#allocation2 + $0x68] sm:$0x1] }
 0x1e1   : > { %v2076_v43 = vunpack.c.l.b16 %v1378_v60  ;;  %v1280_v61 = vrot.slane %v1278_v14, 4  ;;  %v1346_v28 = vrot.slane %v4777_v19, 5  ;;  %vm2357_vm2 = vcmask 64512   ;;  %v3444_v8 = vld [vmem:[%s5603_s6 + $0x8] sm:$0xff] }
 0x1e2   : > { %2353 = vrot.lane.b32.xlu0 %v2339_v62, %s3860_s5  ;;  %v1271_v44 = vor.u32 %v1270_v57, %v1267_v18  ;;  %v3260_v37 = vrot.slane %v1291_v15, 9  ;;  %v1349_v38 = vrot.slane %v4779_v17, 5  ;;  %v1286_v45 = vrot.slane %v1284_v51, 5  ;;  %v1903_v62 = vld [vmem:[#allocation2 + $0x30] sm:$0xe] }
 0x1e3   : > { %2305 = vrot.lane.b32.xlu1 %v2295_v33, %s3861_s13  ;;  %v2046_v26 = vpop.permute.xlu1 %2045  ;;  %v1281_v22 = vor.u32 %v1280_v61, %v1276_v24  ;;  %vm2398_vm3 = vcmask 195584   ;;  %v1348_v48 = vrot.slane %v1346_v28, 4  ;;  %v2084_v39 = vpack.c.b16 %v2076_v43, %v2075_v29  ;;  %v4822_v18 = vld [vmem:[#allocation2 + $0x34] sm:$0xf]  ;;  %v1599_v57 = vld [vmem:[#allocation2 + $0x30] sm:$0xe] }
 0x1e4   : > { %2137 = vrot.lane.b32.xlu2 %v3429_v16, %s3854_s16  ;;  %v2054_v30 = vpop.permute.xlu0 %2053  ;;  %v1272_v47 = vrot.slane %v1271_v44, 4  ;;  %3449 = vmatpush.bf16.msra.mxu3 %v3446_v20  ;;  %v3272_v56 = vrot.slane %v1603_v40, 9  ;;  %v1679_v32 = vrot.slane %v4788_v23, 5  ;;  %vm2415_vm4 = vcmask 261120   ;;  %v1075_v29 = vld [vmem:[#allocation2 + $0x24] sm:$0xf] }
 0x1e5   : > { %v2372_v34 = vsel %vm2357_vm2, %v3423_v41, %v2054_v30  ;;  %v4795_v46 = vpop.permute.xlu2 %2173  ;;  %v1282_v54 = vrot.slane %v1281_v22, 4  ;;  %2561 = vmatpush.bf16.msra.mxu1 %v3446_v20  ;;  %v1347_v27 = vsel %vm4406_vm12, %v3260_v37, %v1346_v28  ;;  %v1350_v59 = vsel %vm4406_vm12, %v1348_v48, %v1349_v38  ;;  %v3443_v44 = vld [vmem:[%s5603_s6] sm:$0xff] }
 0x1e6   : > { %v2391_v12 = vsel %vm519_vm0, %v2372_v34, %v4755_v42  ;;  %v1277_v42 = vsel %vm4427_vm15, %v1272_v47, %v1276_v24  ;;  %v1682_v33 = vrot.slane %v4800_v50, 5  ;;  %v2360_v16 = vsel %vm2357_vm2, %v3419_v35, %v2046_v26 }
 0x1e7   : > { %v2408_v11 = vsel %vm2398_vm3, %v2391_v12, %v4752_v13  ;;  %v1287_v60 = vsel %vm4427_vm15, %v1282_v54, %v1286_v45  ;;  %v2035_v25 = vunpack.c.l.b16 %v1277_v42  ;;  %v1681_v36 = vrot.slane %v1679_v32, 4  ;;  %v3437_v45 = vld [vmem:[#allocation2 + $0x30] sm:$0xff] }
 0x1e8   : > { %v2036_v49 = vunpack.c.l.b16 %v1287_v60  ;;  %3450 = vmatpush.bf16.msra.mxu3 %v3445_v63  ;;  %v1949_v41 = vrot.slane %v4726_v52, 5  ;;  %v2067_v55 = vunpack.c.l.b16 %v1347_v27  ;;  %v2068_v14 = vunpack.c.l.b16 %v1350_v59 }
 0x1e9   : > { %v1680_v51 = vsel %vm4406_vm12, %v3272_v56, %v1679_v32  ;;  %v3275_v15 = vrot.slane %v1903_v62, 9  ;;  %2562 = vmatpush.bf16.msra.mxu1 %v3445_v63  ;;  %v2425_v24 = vsel %vm2415_vm4, %v2408_v11, %v4767_v53  ;;  %vm2432_vm5 = vcmask 326656   ;;  %v4852_v32 = vld [vmem:[#allocation2 + $0x70] sm:$0xf]  ;;  %v1908_v11 = vld [vmem:[#allocation2 + $0x6c] sm:$0xe] }
 0x1ea   : > { %v2044_v52 = vpack.c.b16 %v2036_v49, %v2035_v25  ;;  %v1952_v26 = vrot.slane %v4738_v21, 5  ;;  %vm2449_vm6 = vcmask 392192   ;;  %v1683_v43 = vsel %vm4406_vm12, %v1681_v36, %v1682_v33  ;;  %v4838_v21 = vld [vmem:[#allocation2 + $0x38] sm:$0x1]  ;;  %v4860_v49 = vld [vmem:[#allocation2 + $0x74] sm:$0x1] }
 0x1eb   : > { %2099 = vrot.lane.b32.xlu1 %v2084_v39, %s3855_s1  ;;  %v2222_v13 = vpop.permute.xlu1 %2221  ;;  %v1951_v61 = vrot.slane %v1949_v41, 4  ;;  %v2383_v28 = vsel %vm519_vm0, %v2360_v16, %v4734_v10  ;;  %v2203_v53 = vunpack.c.l.b16 %v1680_v51  ;;  %v3268_v37 = vrot.slane %v1599_v57, 9 }
 0x1ec   : > { %2273 = vrot.lane.b32.xlu2 %v3441_v58, %s3858_s30  ;;  %v2134_v20 = vpop.permute.xlu0 %2133  ;;  %2059 = vrot.lane.b32.xlu0 %v2044_v52, %s3856_s18  ;;  %v1651_v38 = vrot.slane %v4822_v18, 5  ;;  %v2442_v40 = vsel %vm2432_vm5, %v2425_v24, %v2222_v13  ;;  %v2080_v35 = vpack.c.b16 %v2068_v14, %v2067_v55  ;;  %v1950_v10 = vsel %vm4406_vm12, %v3275_v15, %v1949_v41  ;;  %v3434_v58 = vld [vmem:[#allocation2 + $0x60] sm:$0xff] }
 0x1ed   : > { %v4833_v30 = vpop.permute.xlu2 %2309  ;;  %3451 = vmatpush.bf16.msra.mxu3 %v3444_v8  ;;  %2563 = vmatpush.bf16.msra.mxu1 %v3444_v8  ;;  %v1169_v34 = vshrl.u32 %v1075_v29, 16  ;;  %v4845_v22 = vsel %vm2398_vm3, %v2383_v28, %v2134_v20  ;;  %v2204_v12 = vunpack.c.l.b16 %v1683_v43  ;;  %v1953_v47 = vsel %vm4406_vm12, %v1951_v61, %v1952_v26 }
 0x1ee   : > { %vm2466_vm7 = vcmask 457728   ;;  %v1172_v48 = vshll.u32 %v1075_v29, 16  ;;  %vm2483_vm8 = vcmask 523264   ;;  %v1654_v63 = vrot.slane %v4838_v21, 5 }
 0x1ef   : > { %v1171_v39 = vrot.slane %v1169_v34, 4  ;;  %v1178_v54 = vshll.u32 %v4777_v19, 16  ;;  %v1182_v56 = vshrl.u32 %v4777_v19, 16  ;;  %v4856_v42 = vsel %vm4406_vm12, %v3268_v37, %v1651_v38 }
 0x1f0   : > { %v1653_v27 = vrot.slane %v1651_v38, 4  ;;  %v1174_v59 = vrot.slane %v1172_v48, 5  ;;  %v1188_v62 = vshll.u32 %v4779_v17, 16  ;;  %v2321_v25 = vunpack.c.l.b16 %v1950_v10  ;;  %v1394_v17 = vld [vmem:[#allocation2 + $0x60] sm:$0xf] }
 0x1f1   : > { %3452 = vmatpush.bf16.msra.mxu3 %v3443_v44  ;;  %v2322_v33 = vunpack.c.l.b16 %v1953_v47  ;;  %2564 = vmatpush.bf16.msra.mxu1 %v3443_v44  ;;  %v1180_v19 = vrot.slane %v1178_v54, 5  ;;  %v1184_v16 = vrot.slane %v1182_v56, 4  ;;  %v2212_v36 = vpack.c.b16 %v2204_v12, %v2203_v53  ;;  %v3430_v12 = vld [vmem:[#allocation2 + $0x30] sm:$0xff] }
 0x1f2   : > { %vm2536_vm9 = vcmask 588800   ;;  %v1175_v41 = vor.u32 %v1174_v59, %v1171_v39  ;;  %v1984_v13 = vrot.slane %v4852_v32, 5  ;;  %v2195_v55 = vunpack.c.l.b16 %v4856_v42 }
 0x1f3   : > { %2091 = vrot.lane.b32.xlu1 %v2080_v35, %s3855_s1  ;;  %v2214_v60 = vpop.permute.xlu1 %2213  ;;  %v1185_v14 = vor.u32 %v1184_v16, %v1180_v19  ;;  %v1190_v51 = vrot.slane %v1188_v62, 5  ;;  %v3280_v15 = vrot.slane %v1908_v11, 9  ;;  %v1655_v24 = vsel %vm4406_vm12, %v1653_v27, %v1654_v63  ;;  %v4888_v11 = vld [vmem:[#allocation2 + $0x40] sm:$0xf] }
 0x1f4   : > { %2265 = vrot.lane.b32.xlu2 %v3437_v45, %s3858_s30  ;;  %v2270_v8 = vpop.permute.xlu0 %2269  ;;  %2147 = vrot.lane.b32.xlu0 %v3434_v58, %s3854_s16  ;;  %v1176_v52 = vrot.slane %v1175_v41, 4  ;;  %v1986_v20 = vrot.slane %v1984_v13, 4  ;;  %v1987_v26 = vrot.slane %v4860_v49, 5  ;;  %v2335_v29 = vpack.c.b16 %v2322_v33, %v2321_v25  ;;  %v1386_v25 = vld [vmem:[#allocation2 + $0x30] sm:$0xf] }
 0x1f5   : > { %v1186_v43 = vrot.slane %v1185_v14, 4  ;;  %v1573_v61 = vshrl.u32 %v1394_v17, 16  ;;  %v1576_v28 = vshll.u32 %v1394_v17, 16  ;;  %v2459_v53 = vsel %vm2449_vm6, %v2442_v40, %v2270_v8  ;;  %v1904_v17 = vld [vmem:[#allocation2 + $0x3c] sm:$0xe] }
 0x1f6   : > { %v4866_v57 = vpop.permute.xlu2 %2301  ;;  %v1181_v44 = vsel %vm4427_vm15, %v1176_v52, %v1180_v19  ;;  %v1582_v37 = vshll.u32 %v4788_v23, 16  ;;  %v1586_v38 = vshrl.u32 %v4788_v23, 16  ;;  %v2196_v35 = vunpack.c.l.b16 %v1655_v24  ;;  %v1699_v52 = vld [vmem:[#allocation2 + $0x6c] sm:$0xf] }
 0x1f7   : > { %v1191_v10 = vsel %vm4427_vm15, %v1186_v43, %v1190_v51  ;;  %v1985_v34 = vsel %vm4406_vm12, %v3280_v15, %v1984_v13  ;;  %v1575_v45 = vrot.slane %v1573_v61, 4  ;;  %v1988_v47 = vsel %vm4406_vm12, %v1986_v20, %v1987_v26  ;;  %v3442_v61 = vld [vmem:[#allocation2 + $0x6c] sm:$0xff] }
 0x1f8   : > { %v1578_v40 = vrot.slane %v1576_v28, 5  ;;  %v1584_v48 = vrot.slane %v1582_v37, 5  ;;  %v1588_v63 = vrot.slane %v1586_v38, 4  ;;  %v2476_v23 = vsel %vm2466_vm7, %v2459_v53, %v4833_v30 }
 0x1f9   : > { %v2027_v54 = vunpack.c.l.b16 %v1181_v44  ;;  %v1592_v56 = vshll.u32 %v4800_v50, 16  ;;  %v2028_v27 = vunpack.c.l.b16 %v1191_v10  ;;  %v2417_v33 = vsel %vm2415_vm4, %v4845_v22, %v4795_v46 }
 0x1fa   : > { %v1579_v59 = vor.u32 %v1578_v40, %v1575_v45  ;;  %v1589_v62 = vor.u32 %v1588_v63, %v1584_v48  ;;  %v2331_v30 = vunpack.c.l.b16 %v1985_v34  ;;  %v2332_v19 = vunpack.c.l.b16 %v1988_v47  ;;  %v4913_v47 = vld [vmem:[#allocation2 + $0x44] sm:$0x1] }
 0x1fb   : > { %2227 = vrot.lane.b32.xlu1 %v2212_v36, %s3857_s0  ;;  %v2350_v39 = vpop.permute.xlu1 %2349  ;;  %v1594_v50 = vrot.slane %v1592_v56, 5  ;;  %v2434_v16 = vsel %vm2432_vm5, %v2417_v33, %v2214_v60  ;;  %v2208_v8 = vpack.c.b16 %v2196_v35, %v2195_v55  ;;  %v1956_v14 = vrot.slane %v4888_v11, 5  ;;  %v1691_v56 = vld [vmem:[#allocation2 + $0x3c] sm:$0xf] }
 0x1fc   : > { %2345 = vrot.lane.b32.xlu2 %v2335_v29, %s3860_s5  ;;  %v2493_v58 = vsel %vm2483_vm8, %v2476_v23, %v2350_v39  ;;  %v2262_v42 = vpop.permute.xlu0 %2261  ;;  %2139 = vrot.lane.b32.xlu0 %v3430_v12, %s3854_s16  ;;  %v1580_v41 = vrot.slane %v1579_v59, 4  ;;  %v1590_v13 = vrot.slane %v1589_v62, 4  ;;  %v1477_v51 = vshrl.u32 %v1386_v25, 16 }
 0x1fd   : > { %3397 = vmatmul.msk.bf16.vlgmr.msra.gmra.mxu3 %vm2536_vm9, %v2493_v58  ;;  %v1480_v15 = vshll.u32 %v1386_v25, 16  ;;  %v1486_v46 = vshll.u32 %v4822_v18, 16  ;;  %v2040_v22 = vpack.c.b16 %v2028_v27, %v2027_v54  ;;  %v1490_v55 = vshrl.u32 %v4822_v18, 16 }
 0x1fe   : > { %v4896_v36 = vpop.permute.xlu2 %2095  ;;  %v1585_v24 = vsel %vm4427_vm15, %v1580_v41, %v1584_v48  ;;  %v1595_v60 = vsel %vm4427_vm15, %v1590_v13, %v1594_v50  ;;  %v2451_v20 = vsel %vm2449_vm6, %v2434_v16, %v2262_v42  ;;  %v2340_v26 = vpack.c.b16 %v2332_v19, %v2331_v30 }
 0x1ff   : > { %v3276_v29 = vrot.slane %v1904_v17, 9  ;;  %v1479_v43 = vrot.slane %v1477_v51, 4  ;;  %v1482_v28 = vrot.slane %v1480_v15, 5  ;;  %v1488_v53 = vrot.slane %v1486_v46, 5  ;;  %v3438_v17 = vld [vmem:[#allocation2 + $0x3c] sm:$0xff] }
 0x200   : > { %v1492_v44 = vrot.slane %v1490_v55, 4  ;;  %v1496_v37 = vshll.u32 %v4838_v21, 16  ;;  %v2163_v35 = vunpack.c.l.b16 %v1585_v24  ;;  %v2164_v10 = vunpack.c.l.b16 %v1595_v60 }
 0x201   : > { %v1878_v34 = vshrl.u32 %v1699_v52, 16  ;;  %v1881_v18 = vshll.u32 %v1699_v52, 16  ;;  %v2468_v12 = vsel %vm2466_vm7, %v2451_v20, %v4866_v57  ;;  %v1958_v40 = vrot.slane %v1956_v14, 4 }
 0x202   : > { %v1483_v48 = vor.u32 %v1482_v28, %v1479_v43  ;;  %v1493_v63 = vor.u32 %v1492_v44, %v1488_v53  ;;  %v1498_v39 = vrot.slane %v1496_v37, 5  ;;  %v1887_v57 = vshll.u32 %v4852_v32, 16 }
 0x203   : > { %2219 = vrot.lane.b32.xlu1 %v2208_v8, %s3857_s0  ;;  %v4908_v38 = vpop.permute.xlu1 %2055  ;;  %v1880_v23 = vrot.slane %v1878_v34, 4  ;;  %v1883_v54 = vrot.slane %v1881_v18, 5  ;;  %v1891_v59 = vshrl.u32 %v4852_v32, 16  ;;  %v2172_v62 = vpack.c.b16 %v2164_v10, %v2163_v35  ;;  %s3862_s0 = smov 96  }
 0x204   : > { %2051 = vrot.lane.b32.xlu2 %v2040_v22, %s3856_s18  ;;  %v2342_v45 = vpop.permute.xlu0 %2341  ;;  %2275 = vrot.lane.b32.xlu0 %v3442_v61, %s3858_s30  ;;  %v1484_v42 = vrot.slane %v1483_v48, 4  ;;  %v1494_v27 = vrot.slane %v1493_v63, 4  ;;  %v1959_v25 = vrot.slane %v4913_v47, 5  ;;  %v1897_v30 = vshll.u32 %v4860_v49, 16  ;;  %v3424_v63 = vld [vmem:[#allocation2 + $0x3c] sm:$0xff]  ;;  %s5604_s18 = sld [smem:[#allocation32_spill]] }
 0x205   : > { %v2485_v21 = vsel %vm2483_vm8, %v2468_v12, %v2342_v45  ;;  %v1884_v33 = vor.u32 %v1883_v54, %v1880_v23  ;;  %v1889_v50 = vrot.slane %v1887_v57, 5  ;;  %v1893_v16 = vrot.slane %v1891_v59, 4 }
 0x206   : > { %3393 = vmatmul.msk.bf16.vlgmr.msra.gmra.mxu1 %vm2536_vm9, %v2485_v21  ;;  %v4918_v58 = vpop.permute.xlu2 %2087  ;;  %v1489_v19 = vsel %vm4427_vm15, %v1484_v42, %v1488_v53  ;;  %v1782_v8 = vshrl.u32 %v1691_v56, 16  ;;  %v1499_v41 = vsel %vm4427_vm15, %v1494_v27, %v1498_v39  ;;  %v1785_v13 = vshll.u32 %v1691_v56, 16 }
 0x207   : > { %v1894_v51 = vor.u32 %v1893_v16, %v1889_v50  ;;  %v1791_v32 = vshll.u32 %v4888_v11, 16  ;;  %v1957_v49 = vsel %vm4406_vm12, %v3276_v29, %v1956_v14  ;;  %v1960_v46 = vsel %vm4406_vm12, %v1958_v40, %v1959_v25 }
 0x208   : > { %v2155_v22 = vunpack.c.l.b16 %v1489_v19  ;;  %v1795_v24 = vshrl.u32 %v4888_v11, 16  ;;  %v2156_v55 = vunpack.c.l.b16 %v1499_v41  ;;  %v1885_v52 = vrot.slane %v1884_v33, 4  ;;  %v3420_v19 = vld [vmem:[#allocation2 + $0xc] sm:$0xff] }
 0x209   : > { %v1899_v20 = vrot.slane %v1897_v30, 5  ;;  %v1784_v43 = vrot.slane %v1782_v8, 4  ;;  %v1895_v61 = vrot.slane %v1894_v51, 4  ;;  %v1787_v28 = vrot.slane %v1785_v13, 5 }
 0x20a   : > { %v1797_v53 = vrot.slane %v1795_v24, 4  ;;  %v2323_v14 = vunpack.c.l.b16 %v1957_v49  ;;  %v2324_v29 = vunpack.c.l.b16 %v1960_v46  ;;  %v2168_v44 = vpack.c.b16 %v2156_v55, %v2155_v22 }
 0x20b   : > { %2355 = vrot.lane.b32.xlu1 %v2340_v26, %s3860_s5  ;;  %v2144_v15 = vpop.permute.xlu1 %2143  ;;  %v1793_v26 = vrot.slane %v1791_v32, 5  ;;  %v1890_v11 = vsel %vm4427_vm15, %v1885_v52, %v1889_v50  ;;  %v1900_v37 = vsel %vm4427_vm15, %v1895_v61, %v1899_v20  ;;  %v1788_v35 = vor.u32 %v1787_v28, %v1784_v43 }
 0x20c   : > { %2187 = vrot.lane.b32.xlu2 %v2172_v62, %s3859_s12  ;;  %v2048_v60 = vpop.permute.xlu0 %2047  ;;  %2267 = vrot.lane.b32.xlu0 %v3438_v17, %s3858_s30  ;;  %v1801_v34 = vshll.u32 %v4913_v47, 16  ;;  %v2336_v18 = vpack.c.b16 %v2324_v29, %v2323_v14  ;;  %v2291_v40 = vunpack.c.l.b16 %v1890_v11  ;;  %v2292_v48 = vunpack.c.l.b16 %v1900_v37  ;;  %v3425_v29 = vld [vmem:[#allocation2 + $0x48] sm:$0xff] }
 0x20d   : > { %v1798_v10 = vor.u32 %v1797_v53, %v1793_v26  ;;  %v1789_v21 = vrot.slane %v1788_v35, 4  ;;  %v2375_v56 = vsel %vm2357_vm2, %v3424_v63, %v4908_v38  ;;  %v2363_v16 = vsel %vm2357_vm2, %v3420_v19, %v2048_v60 }
 0x20e   : > { %v2224_v31 = vpop.permute.xlu2 %2223  ;;  %v1803_v23 = vrot.slane %v1801_v34, 5  ;;  %v2300_v54 = vpack.c.b16 %v2292_v48, %v2291_v40  ;;  %v2393_v59 = vsel %vm519_vm0, %v2375_v56, %v4896_v36  ;;  %v2385_v51 = vsel %vm519_vm0, %v2363_v16, %v4918_v58 }
 0x20f   : > { %v1799_v39 = vrot.slane %v1798_v10, 4  ;;  %v1794_v47 = vsel %vm4427_vm15, %v1789_v21, %v1793_v26  ;;  %v2410_v30 = vsel %vm2398_vm3, %v2393_v59, %v2144_v15  ;;  %vm2714_vm10 = vcmask 1041409  }
 0x210   : > { %v2283_v25 = vunpack.c.l.b16 %v1794_v47  ;;  %vm2717_vm11 = vcmask 1042434   ;;  %vm2720_vm12 = vcmask 1043459   ;;  %vm2723_vm13 = vcmask 1044484  }
 0x211   : > { %v1804_v42 = vsel %vm4427_vm15, %v1799_v39, %v1803_v23  ;;  %vm2726_vm14 = vcmask 1045509   ;;  %vm2729_vm15 = vcmask 1046534   ;;  %vm2732_vm1 = vcmask 1047559  }
 0x212   : > { %v2284_v33 = vunpack.c.l.b16 %v1804_v42 }
 0x213   : > { %v2136_v45 = vpop.permute.xlu1 %2135 }
 0x214   : > { %2179 = vrot.lane.b32.xlu2 %v2168_v44, %s3859_s12  ;;  %v2184_v12 = vpop.permute.xlu0 %2183  ;;  %2347 = vrot.lane.b32.xlu0 %v2336_v18, %s3860_s5  ;;  %v2296_v50 = vpack.c.b16 %v2284_v33, %v2283_v25  ;;  %v2402_v15 = vsel %vm2398_vm3, %v2385_v51, %v2136_v45  ;;  %v3421_v44 = vld [vmem:[#allocation2 + $0x18] sm:$0xff] }
 0x215   : > { %v2427_v38 = vsel %vm2415_vm4, %v2410_v30, %v2184_v12 }
 0x216   : > { %v2216_v27 = vpop.permute.xlu2 %2215  ;;  %v2444_v9 = vsel %vm2432_vm5, %v2427_v38, %v2224_v31 }
 0x21b   : > { %v2272_v57 = vpop.permute.xlu1 %2271 }
 0x21c   : > { %2315 = vrot.lane.b32.xlu2 %v2300_v54, %s3861_s13  ;;  %v2176_v62 = vpop.permute.xlu0 %2175  ;;  %v2461_v41 = vsel %vm2449_vm6, %v2444_v9, %v2272_v57  ;;  %v3426_v9 = vld [vmem:[#allocation2 + $0x54] sm:$0xff] }
 0x21d   : > { %v2419_v49 = vsel %vm2415_vm4, %v2402_v15, %v2176_v62  ;;  %v3422_v15 = vld [vmem:[#allocation2 + $0x24] sm:$0xff] }
 0x21e   : > { %v2352_v13 = vpop.permute.xlu2 %2351  ;;  %v2436_v46 = vsel %vm2432_vm5, %v2419_v49, %v2216_v27 }
 0x223   : > { %v2264_v8 = vpop.permute.xlu1 %2263 }
 0x224   : > { %2307 = vrot.lane.b32.xlu2 %v2296_v50, %s3861_s13  ;;  %v2312_v36 = vpop.permute.xlu0 %2311  ;;  %v2453_v24 = vsel %vm2449_vm6, %v2436_v46, %v2264_v8  ;;  %s3863_s13 = smov 80  }
 0x225   : > { %v2478_v17 = vsel %vm2466_vm7, %v2461_v41, %v2312_v36 }
 0x226   : > { %v2495_v32 = vsel %vm2483_vm8, %v2478_v17, %v2352_v13 }
 0x227   : > { %3398 = vmatmul.msk.bf16.gmra.mxu3 %vm2536_vm9, %v2495_v32 }
 0x22b   : > { %v2344_v22 = vpop.permute.xlu1 %2343 }
 0x22c   : > { %v2304_v60 = vpop.permute.xlu0 %2303 }
 0x22d   : > { %v2470_v55 = vsel %vm2466_vm7, %v2453_v24, %v2304_v60 }
 0x22e   : > { %v2058_v52 = vpop.permute.xlu2 %2057  ;;  %v2487_v20 = vsel %vm2483_vm8, %v2470_v55, %v2344_v22 }
 0x22f   : > { %3394 = vmatmul.msk.bf16.gmra.mxu1 %vm2536_vm9, %v2487_v20  ;;  %v2378_v37 = vsel %vm2357_vm2, %v3425_v29, %v2058_v52 }
 0x233   : > { %v2050_v58 = vpop.permute.xlu1 %2049 }
 0x234   : > { %v2098_v43 = vpop.permute.xlu0 %2097  ;;  %v2366_v35 = vsel %vm2357_vm2, %v3421_v44, %v2050_v58 }
 0x235   : > { %v2395_v10 = vsel %vm519_vm0, %v2378_v37, %v2098_v43 }
 0x236   : > { %v2146_v61 = vpop.permute.xlu2 %2145 }
 0x237   : > { %v2412_v12 = vsel %vm2398_vm3, %v2395_v10, %v2146_v61  ;;  %v2606_v10 = vld [vmem:[%s5604_s18] sm:$0x3] }
 0x23b   : > { %v2186_v28 = vpop.permute.xlu1 %2185 }
 0x23c   : > { %v2090_v26 = vpop.permute.xlu0 %2089  ;;  %v2429_v48 = vsel %vm2415_vm4, %v2412_v12, %v2186_v28 }
 0x23d   : > { %v2387_v18 = vsel %vm519_vm0, %v2366_v35, %v2090_v26 }
 0x23e   : > { %v2138_v53 = vpop.permute.xlu2 %2137 }
 0x23f   : > { %v2404_v63 = vsel %vm2398_vm3, %v2387_v18, %v2138_v53 }
 0x243   : > { %v2178_v14 = vpop.permute.xlu1 %2177 }
 0x244   : > { %v2226_v31 = vpop.permute.xlu0 %2225  ;;  %v2421_v39 = vsel %vm2415_vm4, %v2404_v63, %v2178_v14 }
 0x245   : > { %v2446_v21 = vsel %vm2432_vm5, %v2429_v48, %v2226_v31 }
 0x246   : > { %v2274_v11 = vpop.permute.xlu2 %2273 }
 0x247   : > { %v2463_v54 = vsel %vm2449_vm6, %v2446_v21, %v2274_v11 }
 0x24c   : > { %v2218_v34 = vpop.permute.xlu0 %2217 }
 0x24d   : > { %v2314_v45 = vpop.permute.xlu1 %2313  ;;  %v2438_v23 = vsel %vm2432_vm5, %v2421_v39, %v2218_v34  ;;  %v5010_v34 = vperm.slane %v2606_v10, 0 }
 0x24e   : > { %v2266_v40 = vpop.permute.xlu2 %2265  ;;  %v2480_v56 = vsel %vm2466_vm7, %v2463_v54, %v2314_v45  ;;  %v5012_v45 = vperm.slane %v2606_v10, 1 }
 0x24f   : > { %v2455_v42 = vsel %vm2449_vm6, %v2438_v23, %v2266_v40 }
 0x254   : > { %v2354_v47 = vpop.permute.xlu0 %2353 }
 0x255   : > { %v2306_v27 = vpop.permute.xlu1 %2305  ;;  %v2497_v57 = vsel %vm2483_vm8, %v2480_v56, %v2354_v47  ;;  %v2675_v47 = vunpack.c.l.bf16 %v4169_v1 }
 0x256   : > { %v2472_v59 = vsel %vm2466_vm7, %v2455_v42, %v2306_v27  ;;  %v2346_v62 = vpop.permute.xlu2 %2345  ;;  %3399 = vmatmul.msk.bf16.gmra.mxu3 %vm2536_vm9, %v2497_v57 }
 0x257   : > { %v2489_v25 = vsel %vm2483_vm8, %v2472_v59, %v2346_v62 }
 0x258   : > { %3395 = vmatmul.msk.bf16.gmra.mxu1 %vm2536_vm9, %v2489_v25 }
 0x25d   : > { %v2100_v33 = vpop.permute.xlu1 %2099 }
 0x25e   : > { %v2052_v30 = vpop.permute.xlu2 %2051  ;;  %v2060_v19 = vpop.permute.xlu0 %2059 }
 0x25f   : > { %v2381_v36 = vsel %vm2357_vm2, %v3426_v9, %v2060_v19  ;;  %v2369_v55 = vsel %vm2357_vm2, %v3422_v15, %v2052_v30  ;;  %v2673_v19 = vunpack.c.l.bf16 %v4166_v0  ;;  %vm3000_vm2 = vcmask 654336  }
 0x260   : > { %v2397_v17 = vsel %vm519_vm0, %v2381_v36, %v2100_v33  ;;  %v2676_v33 = vunpack.c.h.bf16 %v4169_v1 }
 0x265   : > { %v2092_v38 = vpop.permute.xlu1 %2091 }
 0x266   : > { %v2188_v50 = vpop.permute.xlu2 %2187  ;;  %v2148_v16 = vpop.permute.xlu0 %2147  ;;  %v2389_v43 = vsel %vm519_vm0, %v2369_v55, %v2092_v38 }
 0x267   : > { %v2414_v51 = vsel %vm2398_vm3, %v2397_v17, %v2148_v16  ;;  %v2674_v16 = vunpack.c.h.bf16 %v4166_v0 }
 0x268   : > { %v2431_v49 = vsel %vm2415_vm4, %v2414_v51, %v2188_v50 }
 0x26d   : > { %v2228_v8 = vpop.permute.xlu1 %2227 }
 0x26e   : > { %v2140_v41 = vpop.permute.xlu0 %2139  ;;  %v2180_v13 = vpop.permute.xlu2 %2179  ;;  %v2448_v22 = vsel %vm2432_vm5, %v2431_v49, %v2228_v8 }
 0x26f   : > { %v2406_v61 = vsel %vm2398_vm3, %v2389_v43, %v2140_v41  ;;  %vm3004_vm3 = vcmask 916480  }
 0x270   : > { %v2423_v26 = vsel %vm2415_vm4, %v2406_v61, %v2180_v13  ;;  %v2677_v61 = vunpack.c.l.bf16 %v4172_v2 }
 0x275   : > { %v2220_v32 = vpop.permute.xlu1 %2219 }
 0x276   : > { %v2276_v46 = vpop.permute.xlu0 %2275  ;;  %v2316_v60 = vpop.permute.xlu2 %2315  ;;  %v2440_v53 = vsel %vm2432_vm5, %v2423_v26, %v2220_v32  ;;  %vm3002_vm5 = vcmask 785408  }
 0x277   : > { %v2465_v24 = vsel %vm2449_vm6, %v2448_v22, %v2276_v46 }
 0x278   : > { %v2482_v52 = vsel %vm2466_vm7, %v2465_v24, %v2316_v60 }
 0x27d   : > { %v2356_v20 = vpop.permute.xlu1 %2355 }
 0x27e   : > { %v2499_v58 = vsel %vm2483_vm8, %v2482_v52, %v2356_v20  ;;  %v2268_v28 = vpop.permute.xlu0 %2267  ;;  %v2308_v29 = vpop.permute.xlu2 %2307 }
 0x27f   : > { %3400 = vmatmul.msk.bf16.gmra.mxu3 %vm2536_vm9, %v2499_v58  ;;  %v2457_v14 = vsel %vm2449_vm6, %v2440_v53, %v2268_v28  ;;  %v2678_v53 = vunpack.c.h.bf16 %v4172_v2 }
 0x280   : > { %v2474_v31 = vsel %vm2466_vm7, %v2457_v14, %v2308_v29  ;;  %v2586_v51 = vpop.f32.mrf.mxu3 }
 0x281   : > { %v2616_v46 = vmul.f32 %v5010_v34, %v2586_v51 }
 0x283   : > { %v2566_v37 = vpop.f32.mrf.mxu1  ;;  %v2633_v52 = vadd.f32 %v5012_v45, %v2616_v46 }
 0x284   : > { %v2608_v40 = vmul.f32 %v5010_v34, %v2566_v37  ;;  %v2681_v37 = vunpack.c.l.bf16 %v4178_v4 }
 0x285   : > { %v2649_v26 = vmul.f32 0.1, %v2633_v52 }
 0x286   : > { %v2348_v44 = vpop.permute.xlu0 %2347  ;;  %v2625_v39 = vadd.f32 %v5012_v45, %v2608_v40 }
 0x287   : > { %v2491_v11 = vsel %vm2483_vm8, %v2474_v31, %v2348_v44 }
 0x288   : > { %3396 = vmatmul.msk.bf16.gmra.mxu1 %vm2536_vm9, %v2491_v11  ;;  %v2641_v27 = vmul.f32 0.1, %v2625_v39  ;;  %v2588_v32 = vpop.f32.mrf.mxu3  ;;  %v2665_v11 = vmax.f32 %v2633_v52, %v2649_v26 }
 0x289   : > { %v2617_v20 = vmul.f32 %v5010_v34, %v2588_v32 }
 0x28a   : > { %v2657_v30 = vmax.f32 %v2625_v39, %v2641_v27  ;;  %v2682_v39 = vunpack.c.h.bf16 %v4178_v4 }
 0x28b   : > { %v2568_v35 = vpop.f32.mrf.mxu1  ;;  %v2634_v14 = vadd.f32 %v5012_v45, %v2617_v20 }
 0x28c   : > { %v2609_v63 = vmul.f32 %v5010_v34, %v2568_v35  ;;  %v5031_v41 = vadd.f32 %v2673_v19, %v2657_v30 }
 0x28e   : > { %v2626_v54 = vadd.f32 %v5012_v45, %v2609_v63  ;;  %v2803_v51 = vrot.slane %v5031_v41, 5  ;;  %v2786_v32 = vrot.slane %v5031_v41, 4  ;;  %v2837_v46 = vrot.slane %v5031_v41, 7 }
 0x290   : > { %v2642_v59 = vmul.f32 0.1, %v2626_v54 }
 0x292   : > { %v2658_v50 = vmax.f32 %v2626_v54, %v2642_v59 }
 0x294   : > { %v5033_v13 = vadd.f32 %v2674_v16, %v2658_v50  ;;  %v2683_v16 = vunpack.c.l.bf16 %v4181_v5 }
 0x296   : > { %v2928_v26 = vrot.slane %v5033_v13, 4 }
 0x2aa   : > { %v2591_v22 = vpop.f32.mrf.mxu3 }
 0x2ab   : > { %v2618_v31 = vmul.f32 %v5010_v34, %v2591_v22 }
 0x2ac   : > { %v2571_v18 = vpop.f32.mrf.mxu1 }
 0x2ad   : > { %v2610_v12 = vmul.f32 %v5010_v34, %v2571_v18  ;;  %v2650_v18 = vmul.f32 0.1, %v2634_v14 }
 0x2af   : > { %v2627_v48 = vadd.f32 %v5012_v45, %v2610_v12  ;;  %v2635_v12 = vadd.f32 %v5012_v45, %v2618_v31  ;;  %v2962_v31 = vrot.slane %v5033_v13, 6 }
 0x2b1   : > { %v2643_v21 = vmul.f32 0.1, %v2627_v48  ;;  %v2651_v54 = vmul.f32 0.1, %v2635_v12 }
 0x2b2   : > { %v2593_v35 = vpop.f32.mrf.mxu3 }
 0x2b3   : > { %v2659_v56 = vmax.f32 %v2627_v48, %v2643_v21  ;;  %v2619_v40 = vmul.f32 %v5010_v34, %v2593_v35  ;;  %v5059_v48 = vadd.f32 %v2681_v37, %v2665_v11  ;;  %v2666_v21 = vmax.f32 %v2634_v14, %v2650_v18 }
 0x2b4   : > { %v2573_v23 = vpop.f32.mrf.mxu1  ;;  %v2667_v50 = vmax.f32 %v2635_v12, %v2651_v54 }
 0x2b5   : > { %v2611_v42 = vmul.f32 %v5010_v34, %v2573_v23  ;;  %v5023_v62 = vadd.f32 %v2675_v47, %v2659_v56  ;;  %v2636_v56 = vadd.f32 %v5012_v45, %v2619_v40  ;;  %v5071_v27 = vadd.f32 %v2682_v39, %v2666_v21 }
 0x2b6   : > { %v2758_v59 = vrot.slane %v5059_v48, 6  ;;  %v2827_v4 = vrot.slane %v5059_v48, 2  ;;  %v2810_v30 = vrot.slane %v5059_v48, 1  ;;  %v5094_v52 = vadd.f32 %v2683_v16, %v2667_v50 }
 0x2b7   : > { %v2628_v57 = vadd.f32 %v5012_v45, %v2611_v42  ;;  %v2713_v8 = vrot.slane %v5023_v62, 7  ;;  %v2775_v42 = vrot.slane %v5059_v48, 7  ;;  %v2753_v14 = vrot.slane %v5023_v62, 1 }
 0x2b8   : > { %v2804_v11 = vrot.slane %v5023_v62, 4  ;;  %v2787_v37 = vrot.slane %v5023_v62, 3  ;;  %v2838_v35 = vrot.slane %v5023_v62, 6  ;;  %v2777_v40 = vrot.slane %v5094_v52, 6 }
 0x2b9   : > { %v2644_v25 = vmul.f32 0.1, %v2628_v57  ;;  %v2715_v1 = vsel %vm2714_vm10, %v2713_v8, %v5031_v41  ;;  %v2652_v8 = vmul.f32 0.1, %v2636_v56  ;;  %v2760_v21 = vrot.slane %v5094_v52, 5 }
 0x2ba   : > { %v2743_v39 = vrot.slane %v5094_v52, 4  ;;  %v2829_v54 = vrot.slane %v5094_v52, 1 }
 0x2bb   : > { %v2660_v38 = vmax.f32 %v2628_v57, %v2644_v25  ;;  %v2741_v25 = vrot.slane %v5059_v48, 5  ;;  %v2668_v20 = vmax.f32 %v2636_v56, %v2652_v8  ;;  %v2794_v56 = vrot.slane %v5094_v52, 7 }
 0x2bd   : > { %v5028_v9 = vadd.f32 %v2676_v33, %v2660_v38  ;;  %v2769_v33 = vrot.slane %v5031_v41, 3 }
 0x2bf   : > { %v2862_v36 = vrot.slane %v5028_v9, 7 }
 0x2c1   : > { %v2863_v17 = vsel %vm2714_vm10, %v2862_v36, %v5033_v13  ;;  %v2752_v36 = vrot.slane %v5031_v41, 2 }
 0x2c3   : > { %v2754_v50 = vsel %vm2714_vm10, %v2753_v14, %v2752_v36 }
 0x2d5   : > { %v2576_v0 = vpop.f32.mrf.mxu1 }
 0x2d6   : > { %v2612_v15 = vmul.f32 %v5010_v34, %v2576_v0  ;;  %v2883_v0 = vrot.slane %v5071_v27, 5 }
 0x2d8   : > { %v2629_v49 = vadd.f32 %v5012_v45, %v2612_v15 }
 0x2d9   : > { %v2596_v57 = vpop.f32.mrf.mxu3 }
 0x2da   : > { %v2645_v60 = vmul.f32 0.1, %v2629_v49  ;;  %v2620_v22 = vmul.f32 %v5010_v34, %v2596_v57 }
 0x2dc   : > { %v2661_v43 = vmax.f32 %v2629_v49, %v2645_v60 }
 0x2dd   : > { %v2578_v24 = vpop.f32.mrf.mxu1 }
 0x2de   : > { %v2613_v55 = vmul.f32 %v5010_v34, %v2578_v24  ;;  %v5051_v44 = vadd.f32 %v2677_v61, %v2661_v43  ;;  %v2877_v61 = vrot.slane %v5033_v13, 1 }
 0x2e0   : > { %v2630_v58 = vadd.f32 %v5012_v45, %v2613_v55  ;;  %v2716_v2 = vrot.slane %v5051_v44, 6  ;;  %v2878_v38 = vsel %vm2714_vm10, %v5028_v9, %v2877_v61  ;;  %v2823_v14 = vrot.slane %v5051_v44, 4 }
 0x2e1   : > { %v2598_v12 = vpop.f32.mrf.mxu3 }
 0x2e2   : > { %v2646_v28 = vmul.f32 0.1, %v2630_v58  ;;  %v5068_v47 = vsel %vm2717_vm11, %v2716_v2, %v2715_v1  ;;  %v2735_v1 = vrot.slane %v5031_v41, 1  ;;  %v2945_v2 = vrot.slane %v5033_v13, 5 }
 0x2e3   : > { %v2621_v19 = vmul.f32 %v5010_v34, %v2598_v12 }
 0x2e4   : > { %v2662_v29 = vmax.f32 %v2630_v58, %v2646_v28  ;;  %v2684_v58 = vunpack.c.h.bf16 %v4181_v5  ;;  %v2911_v28 = vrot.slane %v5033_v13, 3  ;;  %v2637_v5 = vadd.f32 %v5012_v45, %v2620_v22 }
 0x2e5   : > { %v2736_v16 = vsel %vm2714_vm10, %v5023_v62, %v2735_v1  ;;  %v2638_v12 = vadd.f32 %v5012_v45, %v2621_v19  ;;  %v2789_v19 = vrot.slane %v5051_v44, 2  ;;  %v2686_v1 = vunpack.c.h.bf16 %v4184_v6 }
 0x2e6   : > { %v5054_v10 = vadd.f32 %v2678_v53, %v2662_v29  ;;  %v2770_v53 = vrot.slane %v5023_v62, 2  ;;  %v2821_v29 = vrot.slane %v5023_v62, 5  ;;  %v5110_v18 = vadd.f32 %v2684_v58, %v2668_v20 }
 0x2e7   : > { %v2653_v22 = vmul.f32 0.1, %v2637_v5  ;;  %v2788_v20 = vsel %vm2714_vm10, %v2787_v37, %v2786_v32  ;;  %v5127_v58 = vsel %vm2714_vm10, %v2838_v35, %v2837_v46  ;;  %v2895_v32 = vrot.slane %v5028_v9, 1 }
 0x2e8   : > { %v2864_v63 = vrot.slane %v5054_v10, 6  ;;  %v2771_v57 = vsel %vm2714_vm10, %v2770_v53, %v2769_v33  ;;  %v2912_v33 = vrot.slane %v5028_v9, 2  ;;  %v2929_v46 = vrot.slane %v5028_v9, 3 }
 0x2e9   : > { %v2963_v37 = vrot.slane %v5028_v9, 5  ;;  %v2946_v35 = vrot.slane %v5028_v9, 4  ;;  %v2654_v24 = vmul.f32 0.1, %v2638_v12  ;;  %v2755_v62 = vsel %vm2717_vm11, %v5051_v44, %v2754_v50 }
 0x2ea   : > { %v5064_v23 = vsel %vm2717_vm11, %v2864_v63, %v2863_v17  ;;  %v2820_v17 = vrot.slane %v5031_v41, 6  ;;  %v2894_v41 = vrot.slane %v5033_v13, 2  ;;  %v2979_v63 = vrot.slane %v5033_v13, 7 }
 0x2eb   : > { %v2805_v13 = vsel %vm2714_vm10, %v2804_v11, %v2803_v51  ;;  %v2685_v11 = vunpack.c.l.bf16 %v4184_v6  ;;  %v2913_v43 = vsel %vm2714_vm10, %v2912_v33, %v2911_v28  ;;  %v2980_v51 = vrot.slane %v5028_v9, 6 }
 0x2ec   : > { %v2822_v8 = vsel %vm2714_vm10, %v2821_v29, %v2820_v17  ;;  %v2669_v29 = vmax.f32 %v2637_v5, %v2653_v22  ;;  %v2772_v5 = vrot.slane %v5051_v44, 1  ;;  %v2737_v22 = vrot.slane %v5051_v44, 7 }
 0x2ed   : > { %v2806_v17 = vrot.slane %v5051_v44, 3  ;;  %v2896_v60 = vsel %vm2714_vm10, %v2895_v32, %v2894_v41  ;;  %v5157_v61 = vsel %vm2714_vm10, %v2929_v46, %v2928_v26  ;;  %v5163_v33 = vsel %vm2714_vm10, %v2963_v37, %v2962_v31 }
 0x2ee   : > { %v5159_v28 = vadd.f32 %v2685_v11, %v2669_v29  ;;  %v5172_v41 = vsel %vm2714_vm10, %v2980_v51, %v2979_v63  ;;  %v2773_v46 = vsel %vm2717_vm11, %v2772_v5, %v2771_v57  ;;  %v2824_v31 = vsel %vm2717_vm11, %v2823_v14, %v2822_v8 }
 0x2ef   : > { %v5179_v29 = vsel %vm2717_vm11, %v2806_v17, %v2805_v13  ;;  %v5182_v6 = vsel %vm2717_vm11, %v2789_v19, %v2788_v20  ;;  %v2840_v50 = vrot.slane %v5051_v44, 5  ;;  %v2687_v51 = vunpack.c.l.bf16 %v4187_v7 }
 0x2f0   : > { %v2779_v11 = vrot.slane %v5159_v28, 5  ;;  %v2762_v57 = vrot.slane %v5159_v28, 4  ;;  %v2879_v37 = vrot.slane %v5054_v10, 7  ;;  %v2914_v13 = vrot.slane %v5054_v10, 1 }
 0x2f1   : > { %v2745_v17 = vrot.slane %v5159_v28, 3  ;;  %v2813_v44 = vrot.slane %v5159_v28, 7 }
 0x2f2   : > { %v2880_v49 = vsel %vm2717_vm11, %v2879_v37, %v2878_v38 }
 0x302   : > { %v2601_v36 = vpop.f32.mrf.mxu3 }
 0x303   : > { %v2622_v53 = vmul.f32 %v5010_v34, %v2601_v36  ;;  %v5166_v36 = vsel %vm2714_vm10, %v2946_v35, %v2945_v2  ;;  %v2796_v35 = vrot.slane %v5159_v28, 6 }
 0x305   : > { %v2639_v9 = vadd.f32 %v5012_v45, %v2622_v53  ;;  %v2581_v32 = vpop.f32.mrf.mxu1  ;;  %v2738_v53 = vsel %vm2717_vm11, %v2737_v22, %v2736_v16  ;;  %v2670_v16 = vmax.f32 %v2638_v12, %v2654_v24  ;;  %v2679_v22 = vunpack.c.l.bf16 %v4175_v3 }
 0x306   : > { %v2614_v2 = vmul.f32 %v5010_v34, %v2581_v32  ;;  %v5198_v24 = vsel %vm2717_vm11, %v5054_v10, %v2896_v60  ;;  %v5202_v12 = vsel %vm2717_vm11, %v2840_v50, %v5127_v58  ;;  %v2915_v60 = vsel %vm2717_vm11, %v2914_v13, %v2913_v43 }
 0x307   : > { %v2655_v26 = vmul.f32 0.1, %v2639_v9 }
 0x308   : > { %v2631_v8 = vadd.f32 %v5012_v45, %v2614_v2  ;;  %v5209_v2 = vadd.f32 %v2686_v1, %v2670_v16 }
 0x309   : > { %v2671_v63 = vmax.f32 %v2639_v9, %v2655_v26  ;;  %v2931_v9 = vrot.slane %v5054_v10, 2  ;;  %v2965_v26 = vrot.slane %v5054_v10, 4 }
 0x30a   : > { %v2603_v14 = vpop.f32.mrf.mxu3  ;;  %v2647_v5 = vmul.f32 0.1, %v2631_v8 }
 0x30b   : > { %v2623_v20 = vmul.f32 %v5010_v34, %v2603_v14  ;;  %v5204_v19 = vadd.f32 %v2687_v51, %v2671_v63  ;;  %v2680_v51 = vunpack.c.h.bf16 %v4175_v3 }
 0x30c   : > { %v2663_v14 = vmax.f32 %v2631_v8, %v2647_v5 }
 0x30d   : > { %v5214_v55 = vadd.f32 %v5012_v45, %v2623_v20  ;;  %v2583_v58 = vpop.f32.mrf.mxu1  ;;  %v2781_v1 = vrot.slane %v5204_v19, 4  ;;  %v2764_v38 = vrot.slane %v5204_v19, 3  ;;  %v2747_v43 = vrot.slane %v5204_v19, 2 }
 0x30e   : > { %v5216_v50 = vadd.f32 %v2679_v22, %v2663_v14  ;;  %v2615_v63 = vmul.f32 %v5010_v34, %v2583_v58 }
 0x30f   : > { %v2656_v34 = vmul.f32 0.1, %v5214_v55 }
 0x310   : > { %v2632_v16 = vadd.f32 %v5012_v45, %v2615_v63  ;;  %v2774_v8 = vsel %vm2720_vm12, %v5216_v50, %v2773_v46  ;;  %v2756_v37 = vrot.slane %v5216_v50, 7  ;;  %v2739_v13 = vrot.slane %v5216_v50, 6 }
 0x311   : > { %v2776_v3 = vsel %vm2723_vm13, %v2775_v42, %v2774_v8  ;;  %v2825_v20 = vrot.slane %v5216_v50, 3  ;;  %v2808_v5 = vrot.slane %v5216_v50, 2 }
 0x312   : > { %v2648_v22 = vmul.f32 0.1, %v2632_v16  ;;  %v2778_v45 = vsel %vm2726_vm14, %v2777_v40, %v2776_v3  ;;  %v2757_v46 = vsel %vm2720_vm12, %v2756_v37, %v2755_v62  ;;  %v2740_v14 = vsel %vm2720_vm12, %v2739_v13, %v2738_v53 }
 0x313   : > { %v2780_v58 = vsel %vm2729_vm15, %v2779_v11, %v2778_v45  ;;  %v2759_v63 = vsel %vm2723_vm13, %v2758_v59, %v2757_v46  ;;  %v2742_v42 = vsel %vm2723_vm13, %v2741_v25, %v2740_v14  ;;  %v2826_v8 = vsel %vm2720_vm12, %v2825_v20, %v2824_v31 }
 0x314   : > { %v2664_v32 = vmax.f32 %v2632_v16, %v2648_v22  ;;  %v2782_v15 = vsel %vm2732_vm1, %v2781_v1, %v2780_v58  ;;  %v2761_v40 = vsel %vm2726_vm14, %v2760_v21, %v2759_v63  ;;  %v2744_v62 = vsel %vm2726_vm14, %v2743_v39, %v2742_v42 }
 0x315   : > { %2783 = vrot.lane.b32.xlu2 %v2782_v15, %s3858_s30  ;;  %v2763_v59 = vsel %vm2729_vm15, %v2762_v57, %v2761_v40  ;;  %v2746_v53 = vsel %vm2729_vm15, %v2745_v17, %v2744_v62  ;;  %v2828_v25 = vsel %vm2723_vm13, %v2827_v4, %v2826_v8  ;;  %v2809_v31 = vsel %vm2720_vm12, %v2808_v5, %v5179_v29 }
 0x316   : > { %v5262_v11 = vadd.f32 %v2680_v51, %v2664_v32  ;;  %v2765_v21 = vsel %vm2732_vm1, %v2764_v38, %v2763_v59  ;;  %v2748_v1 = vsel %vm2732_vm1, %v2747_v43, %v2746_v53  ;;  %v2830_v15 = vsel %vm2726_vm14, %v2829_v54, %v2828_v25 }
 0x317   : > { %2766 = vrot.lane.b32.xlu0 %v2765_v21, %s3859_s12  ;;  %2749 = vrot.lane.b32.xlu1 %v2748_v1, %s3855_s1  ;;  %v2811_v4 = vsel %vm2723_vm13, %v2810_v30, %v2809_v31  ;;  %v2791_v39 = vrot.slane %v5216_v50, 1  ;;  %v2932_v29 = vsel %vm2717_vm11, %v2931_v9, %v5157_v61  ;;  %v2966_v57 = vsel %vm2717_vm11, %v2965_v26, %v5163_v33 }
 0x318   : > { %v2688_v17 = vunpack.c.h.bf16 %v4187_v7  ;;  %v2812_v54 = vsel %vm2726_vm14, %v5094_v52, %v2811_v4  ;;  %v2881_v32 = vrot.slane %v5262_v11, 6  ;;  %v2887_v51 = vrot.slane %v5209_v2, 3 }
 0x319   : > { %v2672_v38 = vmax.f32 %v5214_v55, %v2656_v34  ;;  %v2831_v30 = vsel %vm2729_vm15, %v5159_v28, %v2830_v15  ;;  %v2792_v61 = vsel %vm2720_vm12, %v2791_v39, %v5182_v6  ;;  %v2916_v33 = vsel %vm2720_vm12, %v5262_v11, %v2915_v60 }
 0x31a   : > { %v2832_v7 = vrot.slane %v5204_v19, 7  ;;  %v2815_v9 = vrot.slane %v5204_v19, 6  ;;  %v2793_v26 = vsel %vm2723_vm13, %v5059_v48, %v2792_v61  ;;  %v2882_v43 = vsel %vm2720_vm12, %v2881_v32, %v2880_v49 }
 0x31b   : > { %v2814_v55 = vsel %vm2729_vm15, %v2813_v44, %v2812_v54  ;;  %v2795_v6 = vsel %vm2726_vm14, %v2794_v56, %v2793_v26  ;;  %v2884_v60 = vsel %vm2723_vm13, %v2883_v0, %v2882_v43  ;;  %v2898_v16 = vrot.slane %v5262_v11, 7 }
 0x31c   : > { %v2833_v37 = vsel %vm2732_vm1, %v2832_v7, %v2831_v30  ;;  %v2797_v49 = vsel %vm2729_vm15, %v2796_v35, %v2795_v6  ;;  %v2798_v13 = vrot.slane %v5204_v19, 5  ;;  %v5605_v44 = vrot.slane %v5071_v27, 7 }
 0x31d   : > { %v5314_v3 = vadd.f32 %v2688_v17, %v2672_v38  ;;  %2834 = vrot.lane.b32.xlu2 %v2833_v37, %s3862_s0  ;;  %v5606_v0 = vrot.slane %v5110_v18, 4  ;;  %v2899_v20 = vsel %vm2720_vm12, %v2898_v16, %v5198_v24  ;;  %v2933_v35 = vrot.slane %v5262_v11, 1 }
 0x31e   : > { %v2918_v34 = vsel %vm2723_vm13, %v5605_v44, %v2916_v33  ;;  %v2816_v5 = vsel %vm2732_vm1, %v2815_v9, %v2814_v55  ;;  %v2799_v22 = vsel %vm2732_vm1, %v2798_v13, %v2797_v49  ;;  %v5607_v45 = vrot.slane %v5071_v27, 6 }
 0x31f   : > { %v2886_v56 = vsel %vm2726_vm14, %v5606_v0, %v2884_v60  ;;  %v2967_v14 = vrot.slane %v5262_v11, 3  ;;  %2817 = vrot.lane.b32.xlu0 %v2816_v5, %s3863_s13  ;;  %2800 = vrot.lane.b32.xlu1 %v2799_v22, %s3860_s5  ;;  %v5608_v58 = vrot.slane %v5110_v18, 6  ;;  %v5609_v63 = vrot.slane %v5110_v18, 5 }
 0x320   : > { %v2901_v46 = vsel %vm2723_vm13, %v5607_v45, %v2899_v20  ;;  %v5610_v8 = vrot.slane %v5054_v10, 3  ;;  %v2950_v62 = vrot.slane %v5262_v11, 2  ;;  %v2888_v59 = vsel %vm2729_vm15, %v2887_v51, %v2886_v56 }
 0x321   : > { %v2920_v24 = vsel %vm2726_vm14, %v5608_v58, %v2918_v34  ;;  %v2903_v42 = vsel %vm2726_vm14, %v5609_v63, %v2901_v46  ;;  %v2921_v53 = vrot.slane %v5209_v2, 5  ;;  %v2904_v25 = vrot.slane %v5209_v2, 4 }
 0x322   : > { %v2949_v40 = vsel %vm2717_vm11, %v5610_v8, %v5166_v36  ;;  %v2934_v31 = vsel %vm2720_vm12, %v2933_v35, %v2932_v29  ;;  %v2889_v21 = vrot.slane %v5314_v3, 2  ;;  %v2968_v1 = vsel %vm2720_vm12, %v2967_v14, %v2966_v57 }
 0x323   : > { %v2951_v15 = vsel %vm2720_vm12, %v2950_v62, %v2949_v40  ;;  %v2982_v4 = vrot.slane %v5054_v10, 5  ;;  %v2922_v36 = vsel %vm2729_vm15, %v2921_v53, %v2920_v24  ;;  %v2905_v39 = vsel %vm2729_vm15, %v2904_v25, %v2903_v42 }
 0x324   : > { %v2938_v17 = vrot.slane %v5209_v2, 6  ;;  %v2728_v54 = vrot.slane %v5159_v28, 2  ;;  %v2890_v32 = vsel %vm2732_vm1, %v2889_v21, %v2888_v59  ;;  %v2923_v29 = vrot.slane %v5314_v3, 4 }
 0x325   : > { %v2906_v51 = vrot.slane %v5314_v3, 3  ;;  %v2935_v57 = vsel %vm2723_vm13, %v5071_v27, %v2934_v31  ;;  %v5611_v38 = vrot.slane %v5071_v27, 2  ;;  %v5612_v30 = vrot.slane %v5071_v27, 1  ;;  %2891 = vrot.lane.b32.xlu2 %v2890_v32, %s3855_s1  ;;  %s5622_s1 = sld [smem:[#allocation17_spill]] }
 0x326   : > { %v2984_v33 = vrot.slane %v5262_v11, 4  ;;  %v2866_v7 = vrot.slane %v5262_v11, 5  ;;  %v2924_v9 = vsel %vm2732_vm1, %v2923_v29, %v2922_v36  ;;  %v2955_v43 = vrot.slane %v5209_v2, 7 }
 0x327   : > { %v2970_v10 = vsel %vm2723_vm13, %v5611_v38, %v2968_v1  ;;  %v2953_v61 = vsel %vm2723_vm13, %v5612_v30, %v2951_v15  ;;  %v2907_v26 = vsel %vm2732_vm1, %v2906_v51, %v2905_v39  ;;  %v2983_v55 = vsel %vm2717_vm11, %v2982_v4, %v5172_v41  ;;  %2925 = vrot.lane.b32.xlu0 %v2924_v9, %s3858_s30  ;;  %s3864_s30 = smov 112  }
 0x328   : > { %v5613_v6 = vrot.slane %v5110_v18, 7  ;;  %v2842_v16 = vrot.slane %v5216_v50, 4  ;;  %v2867_v11 = vsel %vm2720_vm12, %v2866_v7, %v5064_v23  ;;  %v2719_v37 = vrot.slane %v5216_v50, 5  ;;  %2908 = vrot.lane.b32.xlu1 %v2907_v26, %s3859_s12  ;;  %s5623_s12 = sld [smem:[#allocation18_spill]] }
 0x329   : > { %v5614_v49 = vrot.slane %v5110_v18, 1  ;;  %v2954_v41 = vsel %vm2726_vm14, %v5110_v18, %v2953_v61  ;;  %v5615_v44 = vrot.slane %v5071_v27, 4  ;;  %v2872_v0 = vrot.slane %v5209_v2, 2 }
 0x32a   : > { %v2937_v60 = vsel %vm2726_vm14, %v5613_v6, %v2935_v57  ;;  %v2985_v23 = vsel %vm2720_vm12, %v2984_v33, %v2983_v55  ;;  %v5616_v50 = vrot.slane %v5110_v18, 3  ;;  %v2874_v20 = vrot.slane %v5314_v3, 1 }
 0x32b   : > { %v2972_v13 = vsel %vm2726_vm14, %v5614_v49, %v2970_v10  ;;  %v2869_v34 = vsel %vm2723_vm13, %v5615_v44, %v2867_v11  ;;  %v2721_v35 = vsel %vm2720_vm12, %v2719_v37, %v5068_v47  ;;  %v2939_v5 = vsel %vm2729_vm15, %v2938_v17, %v2937_v60 }
 0x32c   : > { %v2871_v56 = vsel %vm2726_vm14, %v5616_v50, %v2869_v34  ;;  %v5617_v45 = vrot.slane %v5059_v48, 4  ;;  %v2731_v14 = vrot.slane %v5204_v19, 1  ;;  %v2940_v58 = vrot.slane %v5314_v3, 5 }
 0x32d   : > { %v2873_v22 = vsel %vm2729_vm15, %v2872_v0, %v2871_v56  ;;  %v2843_v24 = vsel %vm2720_vm12, %v2842_v16, %v5202_v12  ;;  %v5618_v42 = vrot.slane %v5094_v52, 3  ;;  %v2973_v8 = vsel %vm2729_vm15, %v5209_v2, %v2972_v13 }
 0x32e   : > { %v2724_v46 = vsel %vm2723_vm13, %v5617_v45, %v2721_v35  ;;  %v2875_v63 = vsel %vm2732_vm1, %v2874_v20, %v2873_v22  ;;  %v2956_v40 = vsel %vm2729_vm15, %v2955_v43, %v2954_v41  ;;  %v5619_v62 = vrot.slane %v5071_v27, 3  ;;  %s3403_s29 = sshll.u32 %s5623_s12, 2 }
 0x32f   : > { %v2727_v47 = vsel %vm2726_vm14, %v5618_v42, %v2724_v46  ;;  %v2941_v25 = vsel %vm2732_vm1, %v2940_v58, %v2939_v5  ;;  %v2974_v12 = vrot.slane %v5314_v3, 7  ;;  %v2957_v31 = vrot.slane %v5314_v3, 6 }
 0x330   : > { %v2987_v59 = vsel %vm2723_vm13, %v5619_v62, %v2985_v23  ;;  %v2730_v53 = vsel %vm2729_vm15, %v2728_v54, %v2727_v47  ;;  %2942 = vrot.lane.b32.xlu2 %v2941_v25, %s3860_s5  ;;  %v5620_v1 = vrot.slane %v5059_v48, 3  ;;  %v5621_v36 = vrot.slane %v5110_v18, 2  ;;  %s3402_s5 = sshll.u32 %s5622_s1, 1 }
 0x331   : > { %v2733_v21 = vsel %vm2732_vm1, %v2731_v14, %v2730_v53  ;;  %v2975_v27 = vsel %vm2732_vm1, %v2974_v12, %v2973_v8  ;;  %v2958_v4 = vsel %vm2732_vm1, %v2957_v31, %v2956_v40  ;;  %v2846_v17 = vrot.slane %v5094_v52, 2  ;;  %s3027_s19 = sadd.s32 %s3403_s29, %s3402_s5 }
 0x332   : > { %v2845_v15 = vsel %vm2723_vm13, %v5620_v1, %v2843_v24  ;;  %v2989_v39 = vsel %vm2726_vm14, %v5621_v36, %v2987_v59  ;;  %2976 = vrot.lane.b32.xlu0 %v2975_v27, %s3862_s0  ;;  %2959 = vrot.lane.b32.xlu1 %v2958_v4, %s3863_s13  ;;  %v2990_v54 = vrot.slane %v5209_v2, 1  ;;  %v2848_v29 = vrot.slane %v5159_v28, 1  ;;  %s3404_s10 = sshll.u32 %s3027_s19, 3  ;;  %s3714_s0 = scalar_lea.hbm %s5624_s23, 64 }
 0x333   : > { %v2847_v48 = vsel %vm2726_vm14, %v2846_v17, %v2845_v15  ;;  %s3029_s24 = scalar_lea.hbm %s5624_s23, %s3404_s10 }
 0x334   : > { %v2991_v32 = vsel %vm2729_vm15, %v2990_v54, %v2989_v39  ;;  %v2849_v51 = vsel %vm2729_vm15, %v2848_v29, %v2847_v48  ;;  %s3033_s27 = sshll.u32 %s3029_s24, 4  ;;  %s3034_s27 = int_to_ptr.hbm [resolvable:$true] %s3033_s27 }
 0x335   : > { %v2992_v18 = vsel %vm2732_vm1, %v5314_v3, %v2991_v32  ;;  %v2850_v52 = vsel %vm2732_vm1, %v5204_v19, %v2849_v51  ;;  %s3708_s11 = sshra.s32 %s3034_s27, 4  ;;  %s3709_s11 = int_to_ptr.hbm [resolvable:$true] %s3708_s11 }
 0x336   : > { %s3710_s3 = scalar_lea.hbm %s3709_s11, 16  ;;  %p3715_p8 = scmp.lt.s32.totalorder %s3709_s11, %s5624_s23 }
 0x337   : > { %p3711_p7 = scmp.ne.s32.totalorder %s3709_s11, %s3710_s3  ;;  %p3716_p9 = scmp.lt.s32.totalorder %s3714_s0, %s3710_s3 }
 0x338   : > { %2993 = vrot.lane.b32.xlu2 %v2992_v18, %s3864_s30 }
 0x339   : > { %p3712_p3 = pnand %p3711_p7, %p4076_p4  ;;  %p3717_p10 = por %p3716_p9, %p3715_p8 }
 0x33a   : > { %2851 = vrot.lane.b32.xlu1 %v2850_v52, %s3864_s30 }
 0x33b   : > { %p3713_p5 = pneg %p3712_p3 }
 0x33d   : > { %p3718_p12 = pnand %p3717_p10, %p3713_p5 }
 0x36f   : > { %v2784_v2 = vpop.permute.xlu2 %2783 }
 0x377   : > { %v2835_v57 = vpop.permute.xlu2 %2834 }
 0x37f   : > { %v2892_v30 = vpop.permute.xlu2 %2891 }
 0x380   : > { %v3006_v3 = vsel %vm519_vm0, %v2875_v63, %v2892_v30 }
 0x389   : > { %v2767_v38 = vpop.permute.xlu0 %2766  ;;  %v2750_v10 = vpop.permute.xlu1 %2749 }
 0x38a   : > { %v2943_v33 = vpop.permute.xlu2 %2942  ;;  %v2996_v43 = vsel %vm519_vm0, %v2733_v21, %v2750_v10 }
 0x38b   : > { %v2997_v55 = vsel %vm2415_vm4, %v2996_v43, %v2767_v38 }
 0x38c   : > { %v2998_v11 = vsel %vm2449_vm6, %v2997_v55, %v2784_v2 }
 0x391   : > { %v2818_v61 = vpop.permute.xlu0 %2817  ;;  %v2801_v28 = vpop.permute.xlu1 %2800 }
 0x392   : > { %v2994_v49 = vpop.permute.xlu2 %2993  ;;  %v2999_v13 = vsel %vm2483_vm8, %v2998_v11, %v2801_v28 }
 0x393   : > { %v3001_v34 = vsel %vm3000_vm2, %v2999_v13, %v2818_v61 }
 0x394   : > { %v3003_v0 = vsel %vm3002_vm5, %v3001_v34, %v2835_v57 }
 0x399   : > { %v2926_v7 = vpop.permute.xlu0 %2925 }
 0x39a   : > { %v2909_v9 = vpop.permute.xlu1 %2908 }
 0x39b   : > { %v3007_v26 = vsel %vm2415_vm4, %v3006_v3, %v2909_v9 }
 0x39c   : > { %v3008_v19 = vsel %vm2449_vm6, %v3007_v26, %v2926_v7 }
 0x39d   : > { %v3009_v16 = vsel %vm2483_vm8, %v3008_v19, %v2943_v33 }
 0x3a4   : > { %v2977_v6 = vpop.permute.xlu0 %2976  ;;  %v2960_v60 = vpop.permute.xlu1 %2959 }
 0x3a5   : > { %v3010_v37 = vsel %vm3000_vm2, %v3009_v16, %v2960_v60 }
 0x3a6   : > { %v3011_v41 = vsel %vm3002_vm5, %v3010_v37, %v2977_v6 }
 0x3a7   : > { %v3012_v44 = vsel %vm3004_vm3, %v3011_v41, %v2994_v49 }
 0x3a8   : > { %3014 = vst [vmem:[%s4395_s20 + $0x8] sm:$0xff] %v3012_v44 }
 0x3ac   : > { %v2852_v23 = vpop.permute.xlu1 %2851 }
 0x3ad   : > { %v3005_v50 = vsel %vm3004_vm3, %v3003_v0, %v2852_v23 }
 0x3ae   : > { %3013 = vst [vmem:[%s4395_s20] sm:$0xff] %v3005_v50 }
 0x3af   : > { %3721 = shalt.err (!%p3718_p12)
}
 0x3b0   : > { %3459 = dma.vmem_to_hbm [thread:$0]  (%p4076_p4), %s3032_s22, 256, %s3034_s27, %s3016_s4  }
 0x3b1 PF: > { %s5625_s17 = sld [smem:[#allocation15_spill]]  ;;  %p3476_p13 = scmp.ge.s32.totalorder %s3848_s14, 2 }
 0x3b3   : > { %p3472_p1 = pnand %p3476_p13, %p4080_p6 }
 0x3b5   : > { %p3473_p2 = pneg %p3472_p1 }
 0x3b7   : > { %s3045_s30 = sand.u32 1, %s5625_s17  }
 0x3b8   : > { %s3046_s12 = scalar_lea.sflag [#allocation5], %s3045_s30 }
 0x3b9   : > { %3791 = dma.done.wait (%p3473_p2), %s3046_s12, 256  }
 0x3ba   : > { %3793 = vsyncadd (%p3473_p2), %s3046_s12, 4294967040  ;;  %s26_s14 = sadd.s32 1, %s3848_s14   ;;  %s5628_s7 = sld [smem:[#allocation14_spill]] }
 0x3bb   : > { %p5477_p11 = scmp.ge.s32.totalorder %s26_s14, 6   ;;  %s5629_s29 = sld [smem:[#allocation24_spill]] }
 0x3bc   : > { %s5630_s19 = sld [smem:[#allocation16_spill]]  ;;  %s5636_s24 = smov %s3800_s25 }
 0x3bd   : > { %s5631_s9 = sld [smem:[#allocation25_spill]]  ;;  %s5637_s25 = smov %s3804_s26 }
 0x3be   : > { %s5632_s10 = sld [smem:[#allocation19_spill]]  ;;  %s5638_s26 = smov %s4123_s21 }
 0x3bf   : > { %s5633_s11 = sld [smem:[#allocation20_spill]]  ;;  %s5639_s27 = smov %s3812_s28 }
 0x3c0   : > { %s5634_s12 = sld [smem:[#allocation21_spill]]  ;;  %s5640_s28 = smov %s5628_s7 }
 0x3c1   : > { %s5635_s13 = sld [smem:[#allocation22_spill]]  ;;  %s5641_s30 = smov %s3824_s8 }
 0x3c2   : > { %s5642_s8 = smov %s5630_s19  ;;  %25 = sbr.rel (!%p5477_p11) target bundleno = 20 (0x14), region = 128 }
 0x3c7   :  { %3052 = vsyncpa [#allocation4], 1 }
 0x3c8   :  { %3054 = vsyncpa [#allocation4 + $0x1], 1 }
 0x3c9   :  { %3055 = vsyncpa [#allocation7], 1 }
 0x3ca   :  { %3057 = vsyncpa [#allocation7 + $0x1], 1 }
 0x3cb   :  { %3058 = vsyncpa [#allocation5], 1 }
 0x3cc   :  { %3060 = vsyncpa [#allocation5 + $0x1], 1 }

</bundles_post_ra>
